<compile_context>
chip_gen: v7x
topology: tpu7x:2x2x1
jax: 0.10.0
libtpu: 0.0.40
codegen_flags: <defaults>
</compile_context>

<pallas_src>
import jax
import jax.numpy as jnp
import numpy as np
from jax.experimental import pallas as pl
from jax.experimental.pallas import tpu as pltpu

# ----------------------------- model sizes ---------------------------------
EMB_DIM = 16                      # E
HID_DIM = 32                      # H (per direction)
NUM_LAYERS = 2                    # L
BATCH = 2                         # B
SEQ = 8                           # S
GATE_DIM = 8 * HID_DIM            # 256 = interleaved fwd/bwd gates
OUT_DIM = NUM_LAYERS * 2 * HID_DIM  # 128


# ------------------------------- kernel ------------------------------------
def qenc_kernel(x_ref,       # (B, S, E)    question embeddings
                amask_ref,   # (B, S, 1)    attention mask (0/1)
                lens_ref,    # (B, 1)       sequence lengths (f32)
                watt_ref,    # (1, 1, E)    attention linear weight
                batt_ref,    # (1, 1, 1)    attention linear bias
                wx0_ref,     # (E, 256)     layer-0 x->gates (both dirs)
                wx1_ref,     # (2H, 256)    layer-1 x->gates (both dirs)
                wh_ref,      # (2, 2H, 256) block-diag h->gates per layer
                b_ref,       # (2, 1, 256)  fused biases per layer
                out_ref,     # (B, 4H)      pooled output
                gx_ref,      # (B, S, 256)  VMEM scratch: precomputed x-gates
                l0_ref):     # (B, S, 2H)   VMEM scratch: layer-0 outputs
    f32 = jnp.float32
    B, S, E, H, G = BATCH, SEQ, EMB_DIM, HID_DIM, GATE_DIM
    H2 = 2 * H

    # ---- masked linear self-attention: VPU multiply + lane reduce ----------
    x = x_ref[...]
    scores = jnp.sum(x * watt_ref[...], axis=-1, keepdims=True) + batt_ref[...]
    scores = jnp.where(amask_ref[...] > 0.5, scores, -1e30)
    scores = scores - jnp.max(scores, axis=1, keepdims=True)
    ex = jnp.exp(scores)
    att = ex / jnp.sum(ex, axis=1, keepdims=True)                 # (B, S, 1)

    # ---- constant lane masks (hoisted out of the recurrence) ---------------
    lane64 = jax.lax.broadcasted_iota(jnp.int32, (1, H2), 1)
    half_mask = lane64 < H                                        # fwd half lanes
    lane_g = jax.lax.broadcasted_iota(jnp.int32, (1, G), 1)
    fwd_gmask = (lane_g & H) == 0                                 # fwd gate lanes
    lens_v = lens_ref[...]                                        # (B, 1)

    def run_layer(layer_idx, store_l0):
        """One bidirectional layer; fwd and bwd chains interleaved per step."""
        wh = wh_ref[layer_idx]                                    # (2H, 256)
        h = jnp.zeros((B, H2), f32)                               # [h_f | h_b]
        c = jnp.zeros((B, H2), f32)
        acc = jnp.zeros((B, H2), f32)                             # pooled output
        for s in range(S):                                        # static unroll
            tf, tb = s, S - 1 - s
            # x-gate contributions were precomputed (off the serial chain);
            # pick fwd lanes from time tf and bwd lanes from time tb.
            gx = jnp.where(fwd_gmask, gx_ref[:, tf, :], gx_ref[:, tb, :])
            gates = gx + jnp.dot(h, wh, preferred_element_type=f32)   # (B, 256)
            sig = jax.nn.sigmoid(gates)                           # one EUP pass
            tnh = jnp.tanh(gates)                                 # one EUP pass
            i_g = sig[:, 0 * H2:1 * H2]                           # [i_f | i_b]
            f_g = sig[:, 1 * H2:2 * H2]
            g_g = tnh[:, 2 * H2:3 * H2]
            o_g = sig[:, 3 * H2:4 * H2]
            c_new = f_g * c + i_g * g_g
            h_new = o_g * jnp.tanh(c_new)
            # packed-sequence validity: freeze state & zero output past length
            t_sel = jnp.where(half_mask, float(tf), float(tb))    # (1, 2H)
            keep = lens_v > t_sel                                 # (B, 2H)
            h = jnp.where(keep, h_new, h)
            c = jnp.where(keep, c_new, c)
            h_out = jnp.where(keep, h_new, 0.0)
            if store_l0:
                l0_ref[:, tf, 0:H] = h_out[:, 0:H]
                l0_ref[:, tb, H:H2] = h_out[:, H:H2]
            # attention-weighted pooling accumulated on the fly (off chain)
            att_sel = jnp.where(half_mask, att[:, tf, :], att[:, tb, :])
            acc = acc + att_sel * h_out
        return acc

    # ---- layer 0: precompute x-gates with one fused matmul per batch row ---
    for bb in range(B):
        gx_ref[bb] = jnp.dot(x_ref[bb], wx0_ref[...],
                             preferred_element_type=f32) + b_ref[0]
    acc0 = run_layer(0, store_l0=True)

    # ---- layer 1: precompute x-gates from layer-0 outputs (reuse scratch) --
    for bb in range(B):
        gx_ref[bb] = jnp.dot(l0_ref[bb], wx1_ref[...],
                             preferred_element_type=f32) + b_ref[1]
    acc1 = run_layer(1, store_l0=False)

    # ---- single lane-dense (B, 128) output store ---------------------------
    out_ref[...] = jnp.concatenate([acc0, acc1], axis=-1)


# ------------------------------ wrapper -------------------------------------
def _vmem_spec():
    return pl.BlockSpec(memory_space=pltpu.MemorySpace.VMEM)


def pack_params(params):
    """One-time weight preprocessing (init-side, NOT per-forward glue)."""
    H, E = HID_DIM, EMB_DIM

    def interleave(wf, wb):
        # wf, wb: (Din, 4H) with columns [i, f, g, o]
        # -> (Din, 8H) with columns [i_f, i_b, f_f, f_b, g_f, g_b, o_f, o_b]
        parts = []
        for g in range(4):
            parts.append(wf[:, g * H:(g + 1) * H])
            parts.append(wb[:, g * H:(g + 1) * H])
        return jnp.concatenate(parts, axis=1)

    def cell(layer, rev):
        sfx = '_reverse' if rev else ''
        w_ih = params[f'w_ih_l{layer}{sfx}'].T                    # (Din, 4H)
        w_hh = params[f'w_hh_l{layer}{sfx}'].T                    # (H, 4H)
        bias = (params[f'b_ih_l{layer}{sfx}']
                + params[f'b_hh_l{layer}{sfx}'])[None, :]         # (1, 4H)
        return w_ih, w_hh, bias

    wx0f, wh0f, b0f = cell(0, False)
    wx0b, wh0b, b0b = cell(0, True)
    wx1f, wh1f, b1f = cell(1, False)
    wx1b, wh1b, b1b = cell(1, True)

    def blockdiag_h(whf, whb):
        z = jnp.zeros_like(whf)                                   # (H, 4H)
        wf_pad = jnp.concatenate([whf, z], axis=0)                # (2H, 4H)
        wb_pad = jnp.concatenate([z, whb], axis=0)                # (2H, 4H)
        return interleave(wf_pad, wb_pad)                         # (2H, 8H)

    packed = {
        'wx0': interleave(wx0f, wx0b),                            # (E, 256)
        'wx1': interleave(wx1f, wx1b),                            # (2H, 256)
        'wh': jnp.stack([blockdiag_h(wh0f, wh0b),
                         blockdiag_h(wh1f, wh1b)]),               # (2, 2H, 256)
        'b': jnp.stack([interleave(b0f, b0b),
                        interleave(b1f, b1b)]),                   # (2, 1, 256)
        'watt': params['w_att'].reshape(1, 1, E),
        'batt': params['b_att'].reshape(1, 1, 1),
    }
    return {k: v.astype(jnp.float32) for k, v in packed.items()}


@jax.jit
def question_encoding_forward(packed, qst_embed, qst_mask, qst_lengths):
    """Mirrors QuestionEncodingLayer.forward (dropout = 0 / inference)."""
    B, S, E = qst_embed.shape
    amask = qst_mask.astype(jnp.float32)[:, :, None]              # (B, S, 1)
    lens = qst_lengths.astype(jnp.float32)[:, None]               # (B, 1)

    return pl.pallas_call(
        qenc_kernel,
        out_shape=jax.ShapeDtypeStruct((B, OUT_DIM), jnp.float32),
        in_specs=[_vmem_spec() for _ in range(9)],
        out_specs=_vmem_spec(),
        scratch_shapes=[pltpu.VMEM((B, S, GATE_DIM), jnp.float32),
                        pltpu.VMEM((B, S, 2 * HID_DIM), jnp.float32)],
    )(qst_embed.astype(jnp.float32), amask, lens,
      packed['watt'], packed['batt'],
      packed['wx0'], packed['wx1'], packed['wh'], packed['b'])


# --------------------------- pure-JAX reference ------------------------------
def reference_forward(params, qst_embed, qst_mask, qst_lengths):
    B, S, E = qst_embed.shape
    H = HID_DIM

    scores = jnp.einsum('bse,oe->bso', qst_embed, params['w_att'])[..., 0]
    scores = scores + params['b_att'][0]
    scores = jnp.where(qst_mask > 0, scores, -jnp.inf)
    att = jax.nn.softmax(scores, axis=-1)                         # (B, S)

    def lstm_dir(x_seq, w_ih, w_hh, b_ih, b_hh, reverse):
        h = jnp.zeros((B, H), jnp.float32)
        c = jnp.zeros((B, H), jnp.float32)
        outs = [None] * S
        steps = range(S - 1, -1, -1) if reverse else range(S)
        for t in steps:
            gates = x_seq[:, t, :] @ w_ih.T + b_ih + h @ w_hh.T + b_hh
            i_g = jax.nn.sigmoid(gates[:, :H])
            f_g = jax.nn.sigmoid(gates[:, H:2 * H])
            g_g = jnp.tanh(gates[:, 2 * H:3 * H])
            o_g = jax.nn.sigmoid(gates[:, 3 * H:])
            c_new = f_g * c + i_g * g_g
            h_new = o_g * jnp.tanh(c_new)
            v = (t < qst_lengths)[:, None]
            h = jnp.where(v, h_new, h)
            c = jnp.where(v, c_new, c)
            outs[t] = jnp.where(v, h_new, 0.0)
        return jnp.stack(outs, axis=1)                            # (B, S, H)

    def bilstm(x_seq, layer):
        parts = []
        for rev, sfx in ((False, ''), (True, '_reverse')):
            parts.append(lstm_dir(
                x_seq,
                params[f'w_ih_l{layer}{sfx}'], params[f'w_hh_l{layer}{sfx}'],
                params[f'b_ih_l{layer}{sfx}'], params[f'b_hh_l{layer}{sfx}'],
                rev))
        return jnp.concatenate(parts, axis=-1)                    # (B, S, 2H)

    l0 = bilstm(qst_embed, 0)
    l1 = bilstm(l0, 1)
    lstm_outputs = jnp.concatenate([l0, l1], axis=-1)             # (B, S, L*2H)
    return jnp.einsum('bs,bsd->bd', att, lstm_outputs)


# --------------------------------- main --------------------------------------
if __name__ == "__main__":
    key = jax.random.PRNGKey(0)
    B, S, E, H = BATCH, SEQ, EMB_DIM, HID_DIM

    keys = iter(jax.random.split(key, 24))

    def rnd(shape, scale=0.1):
        return jax.random.normal(next(keys), shape, jnp.float32) * scale

    params = {}
    for layer in range(NUM_LAYERS):
        din = E if layer == 0 else 2 * H
        for sfx in ('', '_reverse'):
            params[f'w_ih_l{layer}{sfx}'] = rnd((4 * H, din))
            params[f'w_hh_l{layer}{sfx}'] = rnd((4 * H, H))
            params[f'b_ih_l{layer}{sfx}'] = rnd((4 * H,))
            params[f'b_hh_l{layer}{sfx}'] = rnd((4 * H,))
    params['w_att'] = rnd((1, E))
    params['b_att'] = rnd((1,))

    qst_embed = jax.random.normal(next(keys), (B, S, E), jnp.float32)
    qst_lengths = jnp.array([S, 5], dtype=jnp.int32)      # one full, one padded seq
    qst_mask = (jnp.arange(S)[None, :] < qst_lengths[:, None]).astype(jnp.float32)

    packed = pack_params(params)                          # one-time init preprocessing

    out = question_encoding_forward(packed, qst_embed, qst_mask, qst_lengths)
    jax.block_until_ready(out)

    ref = reference_forward(params, qst_embed, qst_mask, qst_lengths)
    jax.block_until_ready(ref)

    assert out.shape == (B, OUT_DIM)
    np.testing.assert_allclose(np.asarray(out), np.asarray(ref), rtol=1e-2, atol=1e-2)
    print("KERNEL_OK")
</pallas_src>

<mosaic_0001>
module attributes {stable_mosaic.version = 11 : i64} {
  func.func @qenc_kernel(%arg0: memref<2x8x16xf32, #tpu.memory_space<vmem>>, %arg1: memref<2x8x1xf32, #tpu.memory_space<vmem>>, %arg2: memref<2x1xf32, #tpu.memory_space<vmem>>, %arg3: memref<1x1x16xf32, #tpu.memory_space<vmem>>, %arg4: memref<1x1x1xf32, #tpu.memory_space<vmem>>, %arg5: memref<16x256xf32, #tpu.memory_space<vmem>>, %arg6: memref<64x256xf32, #tpu.memory_space<vmem>>, %arg7: memref<2x64x256xf32, #tpu.memory_space<vmem>>, %arg8: memref<2x1x256xf32, #tpu.memory_space<vmem>>, %arg9: memref<2x128xf32, #tpu.memory_space<vmem>>, %arg10: memref<2x8x256xf32, #tpu.memory_space<vmem>>, %arg11: memref<2x8x64xf32, #tpu.memory_space<vmem>>) attributes {dimension_semantics = [], scalar_prefetch = 0 : i64, scratch_operands = 2 : i64, tpu.core_type = #tpu.core_type<tc>} {
    %c0 = arith.constant 0 : index
    %c0_0 = arith.constant 0 : index
    %c0_1 = arith.constant 0 : index
    %0 = vector.load %arg0[%c0, %c0_0, %c0_1] : memref<2x8x16xf32, #tpu.memory_space<vmem>>, vector<2x8x16xf32>
    %c0_2 = arith.constant 0 : index
    %c0_3 = arith.constant 0 : index
    %c0_4 = arith.constant 0 : index
    %1 = vector.load %arg3[%c0_2, %c0_3, %c0_4] : memref<1x1x16xf32, #tpu.memory_space<vmem>>, vector<1x1x16xf32>
    %2 = vector.broadcast %1 : vector<1x1x16xf32> to vector<2x8x16xf32>
    %3 = arith.mulf %0, %2 : vector<2x8x16xf32>
    %cst = arith.constant dense<0.000000e+00> : vector<2x8xf32>
    %4 = vector.multi_reduction <add>, %3, %cst [2] : vector<2x8x16xf32> to vector<2x8xf32>
    %5 = vector.shape_cast %4 : vector<2x8xf32> to vector<2x8x1xf32>
    %c0_5 = arith.constant 0 : index
    %c0_6 = arith.constant 0 : index
    %c0_7 = arith.constant 0 : index
    %6 = vector.load %arg4[%c0_5, %c0_6, %c0_7] : memref<1x1x1xf32, #tpu.memory_space<vmem>>, vector<1x1x1xf32>
    %7 = vector.broadcast %6 : vector<1x1x1xf32> to vector<2x8x1xf32>
    %8 = arith.addf %5, %7 : vector<2x8x1xf32>
    %c0_8 = arith.constant 0 : index
    %c0_9 = arith.constant 0 : index
    %c0_10 = arith.constant 0 : index
    %9 = vector.load %arg1[%c0_8, %c0_9, %c0_10] : memref<2x8x1xf32, #tpu.memory_space<vmem>>, vector<2x8x1xf32>
    %cst_11 = arith.constant 5.000000e-01 : f32
    %10 = vector.broadcast %cst_11 : f32 to vector<2x8x1xf32>
    %11 = arith.cmpf ogt, %9, %10 : vector<2x8x1xf32>
    %cst_12 = arith.constant -1.000000e+30 : f32
    %12 = vector.broadcast %cst_12 : f32 to vector<2x8x1xf32>
    %13 = arith.select %11, %8, %12 : vector<2x8x1xi1>, vector<2x8x1xf32>
    %cst_13 = arith.constant dense<0xFF800000> : vector<2x1xf32>
    %14 = vector.multi_reduction <maximumf>, %13, %cst_13 [1] : vector<2x8x1xf32> to vector<2x1xf32>
    %15 = vector.shape_cast %14 : vector<2x1xf32> to vector<2x1x1xf32>
    %16 = vector.broadcast %15 : vector<2x1x1xf32> to vector<2x8x1xf32>
    %17 = arith.subf %13, %16 : vector<2x8x1xf32>
    %18 = math.exp %17 : vector<2x8x1xf32>
    %cst_14 = arith.constant dense<0.000000e+00> : vector<2x1xf32>
    %19 = vector.multi_reduction <add>, %18, %cst_14 [1] : vector<2x8x1xf32> to vector<2x1xf32>
    %20 = vector.shape_cast %19 : vector<2x1xf32> to vector<2x1x1xf32>
    %21 = vector.broadcast %20 : vector<2x1x1xf32> to vector<2x8x1xf32>
    %22 = arith.divf %18, %21 : vector<2x8x1xf32>
    %23 = tpu.iota {dimensions = array<i32: 1>} : vector<1x64xi32>
    %c32_i32 = arith.constant 32 : i32
    %24 = vector.broadcast %c32_i32 : i32 to vector<1x64xi32>
    %25 = arith.cmpi slt, %23, %24 : vector<1x64xi32>
    %26 = tpu.iota {dimensions = array<i32: 1>} : vector<1x256xi32>
    %c32_i32_15 = arith.constant 32 : i32
    %27 = vector.broadcast %c32_i32_15 : i32 to vector<1x256xi32>
    %28 = arith.andi %26, %27 : vector<1x256xi32>
    %c0_i32 = arith.constant 0 : i32
    %29 = vector.broadcast %c0_i32 : i32 to vector<1x256xi32>
    %30 = arith.cmpi eq, %28, %29 : vector<1x256xi32>
    %c0_16 = arith.constant 0 : index
    %c0_17 = arith.constant 0 : index
    %31 = vector.load %arg2[%c0_16, %c0_17] : memref<2x1xf32, #tpu.memory_space<vmem>>, vector<2x1xf32>
    %c0_18 = arith.constant 0 : index
    %c0_19 = arith.constant 0 : index
    %c0_20 = arith.constant 0 : index
    %32 = vector.load %arg0[%c0_18, %c0_19, %c0_20] : memref<2x8x16xf32, #tpu.memory_space<vmem>>, vector<1x8x16xf32>
    %33 = vector.shape_cast %32 : vector<1x8x16xf32> to vector<8x16xf32>
    %c0_21 = arith.constant 0 : index
    %c0_22 = arith.constant 0 : index
    %34 = vector.load %arg5[%c0_21, %c0_22] : memref<16x256xf32, #tpu.memory_space<vmem>>, vector<16x256xf32>
    %cst_23 = arith.constant dense<0.000000e+00> : vector<8x256xf32>
    %35 = tpu.matmul %33, %34, %cst_23 {dimension_numbers = #tpu.dot_dimension_numbers<[1], [0], [0], [1], [0, 0, 1, 1], [], []>} : vector<8x16xf32>, vector<16x256xf32>, vector<8x256xf32> -> vector<8x256xf32>
    %c0_24 = arith.constant 0 : index
    %c0_25 = arith.constant 0 : index
    %c0_26 = arith.constant 0 : index
    %36 = vector.load %arg8[%c0_24, %c0_25, %c0_26] : memref<2x1x256xf32, #tpu.memory_space<vmem>>, vector<1x1x256xf32>
    %37 = vector.shape_cast %36 : vector<1x1x256xf32> to vector<1x256xf32>
    %38 = vector.broadcast %37 : vector<1x256xf32> to vector<8x256xf32>
    %39 = arith.addf %35, %38 : vector<8x256xf32>
    %c0_27 = arith.constant 0 : index
    %c0_28 = arith.constant 0 : index
    %c0_29 = arith.constant 0 : index
    %40 = vector.load %arg10[%c0_27, %c0_28, %c0_29] : memref<2x8x256xf32, #tpu.memory_space<vmem>>, vector<1x8x256xf32>
    %41 = vector.shape_cast %40 : vector<1x8x256xf32> to vector<8x256xf32>
    %42 = vector.shape_cast %39 : vector<8x256xf32> to vector<1x8x256xf32>
    tpu.vector_store %arg10[%c0_27, %c0_28, %c0_29], %42 {strides = array<i32>} : memref<2x8x256xf32, #tpu.memory_space<vmem>>, vector<1x8x256xf32>,
    %c1 = arith.constant 1 : index
    %c0_30 = arith.constant 0 : index
    %c0_31 = arith.constant 0 : index
    %43 = vector.load %arg0[%c1, %c0_30, %c0_31] : memref<2x8x16xf32, #tpu.memory_space<vmem>>, vector<1x8x16xf32>
    %44 = vector.shape_cast %43 : vector<1x8x16xf32> to vector<8x16xf32>
    %c0_32 = arith.constant 0 : index
    %c0_33 = arith.constant 0 : index
    %45 = vector.load %arg5[%c0_32, %c0_33] : memref<16x256xf32, #tpu.memory_space<vmem>>, vector<16x256xf32>
    %cst_34 = arith.constant dense<0.000000e+00> : vector<8x256xf32>
    %46 = tpu.matmul %44, %45, %cst_34 {dimension_numbers = #tpu.dot_dimension_numbers<[1], [0], [0], [1], [0, 0, 1, 1], [], []>} : vector<8x16xf32>, vector<16x256xf32>, vector<8x256xf32> -> vector<8x256xf32>
    %c0_35 = arith.constant 0 : index
    %c0_36 = arith.constant 0 : index
    %c0_37 = arith.constant 0 : index
    %47 = vector.load %arg8[%c0_35, %c0_36, %c0_37] : memref<2x1x256xf32, #tpu.memory_space<vmem>>, vector<1x1x256xf32>
    %48 = vector.shape_cast %47 : vector<1x1x256xf32> to vector<1x256xf32>
    %49 = vector.broadcast %48 : vector<1x256xf32> to vector<8x256xf32>
    %50 = arith.addf %46, %49 : vector<8x256xf32>
    %c1_38 = arith.constant 1 : index
    %c0_39 = arith.constant 0 : index
    %c0_40 = arith.constant 0 : index
    %51 = vector.load %arg10[%c1_38, %c0_39, %c0_40] : memref<2x8x256xf32, #tpu.memory_space<vmem>>, vector<1x8x256xf32>
    %52 = vector.shape_cast %51 : vector<1x8x256xf32> to vector<8x256xf32>
    %53 = vector.shape_cast %50 : vector<8x256xf32> to vector<1x8x256xf32>
    tpu.vector_store %arg10[%c1_38, %c0_39, %c0_40], %53 {strides = array<i32>} : memref<2x8x256xf32, #tpu.memory_space<vmem>>, vector<1x8x256xf32>,
    %c0_41 = arith.constant 0 : index
    %c0_42 = arith.constant 0 : index
    %c0_43 = arith.constant 0 : index
    %54 = vector.load %arg7[%c0_41, %c0_42, %c0_43] : memref<2x64x256xf32, #tpu.memory_space<vmem>>, vector<1x64x256xf32>
    %55 = vector.shape_cast %54 : vector<1x64x256xf32> to vector<64x256xf32>
    %cst_44 = arith.constant 0.000000e+00 : f32
    %56 = vector.broadcast %cst_44 : f32 to vector<2x64xf32>
    %cst_45 = arith.constant 0.000000e+00 : f32
    %57 = vector.broadcast %cst_45 : f32 to vector<2x64xf32>
    %cst_46 = arith.constant 0.000000e+00 : f32
    %58 = vector.broadcast %cst_46 : f32 to vector<2x64xf32>
    %c0_47 = arith.constant 0 : index
    %c0_48 = arith.constant 0 : index
    %c0_49 = arith.constant 0 : index
    %59 = vector.load %arg10[%c0_47, %c0_48, %c0_49] : memref<2x8x256xf32, #tpu.memory_space<vmem>>, vector<2x1x256xf32>
    %60 = vector.shape_cast %59 : vector<2x1x256xf32> to vector<2x256xf32>
    %c0_50 = arith.constant 0 : index
    %c7 = arith.constant 7 : index
    %c0_51 = arith.constant 0 : index
    %61 = vector.load %arg10[%c0_50, %c7, %c0_51] : memref<2x8x256xf32, #tpu.memory_space<vmem>>, vector<2x1x256xf32>
    %62 = vector.shape_cast %61 : vector<2x1x256xf32> to vector<2x256xf32>
    %63 = vector.shape_cast %30 : vector<1x256xi1> to vector<1x256xi1>
    %64 = vector.broadcast %63 : vector<1x256xi1> to vector<2x256xi1>
    %65 = arith.select %64, %60, %62 : vector<2x256xi1>, vector<2x256xf32>
    %cst_52 = arith.constant dense<0.000000e+00> : vector<2x256xf32>
    %66 = tpu.matmul %56, %55, %cst_52 {dimension_numbers = #tpu.dot_dimension_numbers<[1], [0], [0], [1], [0, 0, 1, 1], [], []>} : vector<2x64xf32>, vector<64x256xf32>, vector<2x256xf32> -> vector<2x256xf32>
    %67 = arith.addf %65, %66 : vector<2x256xf32>
    %68 = arith.negf %67 : vector<2x256xf32>
    %69 = math.exp %68 : vector<2x256xf32>
    %cst_53 = arith.constant 1.000000e+00 : f32
    %70 = vector.broadcast %cst_53 : f32 to vector<2x256xf32>
    %71 = arith.addf %70, %69 : vector<2x256xf32>
    %72 = arith.divf %70, %71 : vector<2x256xf32>
    %73 = math.tanh %67 : vector<2x256xf32>
    %74 = vector.extract_strided_slice %72 {offsets = [0, 0], sizes = [2, 64], strides = [1, 1]} : vector<2x256xf32> to vector<2x64xf32>
    %75 = vector.extract_strided_slice %72 {offsets = [0, 64], sizes = [2, 64], strides = [1, 1]} : vector<2x256xf32> to vector<2x64xf32>
    %76 = vector.extract_strided_slice %73 {offsets = [0, 128], sizes = [2, 64], strides = [1, 1]} : vector<2x256xf32> to vector<2x64xf32>
    %77 = vector.extract_strided_slice %72 {offsets = [0, 192], sizes = [2, 64], strides = [1, 1]} : vector<2x256xf32> to vector<2x64xf32>
    %78 = arith.mulf %75, %57 : vector<2x64xf32>
    %79 = arith.mulf %74, %76 : vector<2x64xf32>
    %80 = arith.addf %78, %79 : vector<2x64xf32>
    %81 = math.tanh %80 : vector<2x64xf32>
    %82 = arith.mulf %77, %81 : vector<2x64xf32>
    %cst_54 = arith.constant 0.000000e+00 : f32
    %cst_55 = arith.constant 7.000000e+00 : f32
    %83 = vector.broadcast %cst_54 : f32 to vector<1x64xf32>
    %84 = vector.broadcast %cst_55 : f32 to vector<1x64xf32>
    %85 = arith.select %25, %83, %84 : vector<1x64xi1>, vector<1x64xf32>
    %86 = vector.broadcast %31 : vector<2x1xf32> to vector<2x64xf32>
    %87 = vector.broadcast %85 : vector<1x64xf32> to vector<2x64xf32>
    %88 = arith.cmpf ogt, %86, %87 : vector<2x64xf32>
    %89 = arith.select %88, %82, %56 : vector<2x64xi1>, vector<2x64xf32>
    %90 = arith.select %88, %80, %57 : vector<2x64xi1>, vector<2x64xf32>
    %cst_56 = arith.constant 0.000000e+00 : f32
    %91 = vector.broadcast %cst_56 : f32 to vector<2x64xf32>
    %92 = arith.select %88, %82, %91 : vector<2x64xi1>, vector<2x64xf32>
    %93 = vector.extract_strided_slice %92 {offsets = [0, 0], sizes = [2, 32], strides = [1, 1]} : vector<2x64xf32> to vector<2x32xf32>
    %c0_57 = arith.constant 0 : index
    %c0_58 = arith.constant 0 : index
    %c0_59 = arith.constant 0 : index
    %94 = vector.load %arg11[%c0_57, %c0_58, %c0_59] : memref<2x8x64xf32, #tpu.memory_space<vmem>>, vector<2x1x32xf32>
    %95 = vector.shape_cast %94 : vector<2x1x32xf32> to vector<2x32xf32>
    %96 = vector.shape_cast %93 : vector<2x32xf32> to vector<2x1x32xf32>
    tpu.vector_store %arg11[%c0_57, %c0_58, %c0_59], %96 {strides = array<i32>} : memref<2x8x64xf32, #tpu.memory_space<vmem>>, vector<2x1x32xf32>,
    %97 = vector.extract_strided_slice %92 {offsets = [0, 32], sizes = [2, 32], strides = [1, 1]} : vector<2x64xf32> to vector<2x32xf32>
    %c0_60 = arith.constant 0 : index
    %c7_61 = arith.constant 7 : index
    %c32 = arith.constant 32 : index
    %98 = vector.load %arg11[%c0_60, %c7_61, %c32] : memref<2x8x64xf32, #tpu.memory_space<vmem>>, vector<2x1x32xf32>
    %99 = vector.shape_cast %98 : vector<2x1x32xf32> to vector<2x32xf32>
    %100 = vector.shape_cast %97 : vector<2x32xf32> to vector<2x1x32xf32>
    tpu.vector_store %arg11[%c0_60, %c7_61, %c32], %100 {strides = array<i32>} : memref<2x8x64xf32, #tpu.memory_space<vmem>>, vector<2x1x32xf32>,
    %101 = vector.extract_strided_slice %22 {offsets = [0, 0, 0], sizes = [2, 1, 1], strides = [1, 1, 1]} : vector<2x8x1xf32> to vector<2x1x1xf32>
    %102 = vector.shape_cast %101 : vector<2x1x1xf32> to vector<2x1xf32>
    %103 = vector.extract_strided_slice %22 {offsets = [0, 7, 0], sizes = [2, 1, 1], strides = [1, 1, 1]} : vector<2x8x1xf32> to vector<2x1x1xf32>
    %104 = vector.shape_cast %103 : vector<2x1x1xf32> to vector<2x1xf32>
    %105 = vector.shape_cast %25 : vector<1x64xi1> to vector<1x64xi1>
    %106 = vector.broadcast %105 : vector<1x64xi1> to vector<2x64xi1>
    %107 = vector.shape_cast %102 : vector<2x1xf32> to vector<2x1xf32>
    %108 = vector.broadcast %107 : vector<2x1xf32> to vector<2x64xf32>
    %109 = vector.shape_cast %104 : vector<2x1xf32> to vector<2x1xf32>
    %110 = vector.broadcast %109 : vector<2x1xf32> to vector<2x64xf32>
    %111 = arith.select %106, %108, %110 : vector<2x64xi1>, vector<2x64xf32>
    %112 = arith.mulf %111, %92 : vector<2x64xf32>
    %113 = arith.addf %58, %112 : vector<2x64xf32>
    %c0_62 = arith.constant 0 : index
    %c1_63 = arith.constant 1 : index
    %c0_64 = arith.constant 0 : index
    %114 = vector.load %arg10[%c0_62, %c1_63, %c0_64] : memref<2x8x256xf32, #tpu.memory_space<vmem>>, vector<2x1x256xf32>
    %115 = vector.shape_cast %114 : vector<2x1x256xf32> to vector<2x256xf32>
    %c0_65 = arith.constant 0 : index
    %c6 = arith.constant 6 : index
    %c0_66 = arith.constant 0 : index
    %116 = vector.load %arg10[%c0_65, %c6, %c0_66] : memref<2x8x256xf32, #tpu.memory_space<vmem>>, vector<2x1x256xf32>
    %117 = vector.shape_cast %116 : vector<2x1x256xf32> to vector<2x256xf32>
    %118 = vector.shape_cast %30 : vector<1x256xi1> to vector<1x256xi1>
    %119 = vector.broadcast %118 : vector<1x256xi1> to vector<2x256xi1>
    %120 = arith.select %119, %115, %117 : vector<2x256xi1>, vector<2x256xf32>
    %cst_67 = arith.constant dense<0.000000e+00> : vector<2x256xf32>
    %121 = tpu.matmul %89, %55, %cst_67 {dimension_numbers = #tpu.dot_dimension_numbers<[1], [0], [0], [1], [0, 0, 1, 1], [], []>} : vector<2x64xf32>, vector<64x256xf32>, vector<2x256xf32> -> vector<2x256xf32>
    %122 = arith.addf %120, %121 : vector<2x256xf32>
    %123 = arith.negf %122 : vector<2x256xf32>
    %124 = math.exp %123 : vector<2x256xf32>
    %cst_68 = arith.constant 1.000000e+00 : f32
    %125 = vector.broadcast %cst_68 : f32 to vector<2x256xf32>
    %126 = arith.addf %125, %124 : vector<2x256xf32>
    %127 = arith.divf %125, %126 : vector<2x256xf32>
    %128 = math.tanh %122 : vector<2x256xf32>
    %129 = vector.extract_strided_slice %127 {offsets = [0, 0], sizes = [2, 64], strides = [1, 1]} : vector<2x256xf32> to vector<2x64xf32>
    %130 = vector.extract_strided_slice %127 {offsets = [0, 64], sizes = [2, 64], strides = [1, 1]} : vector<2x256xf32> to vector<2x64xf32>
    %131 = vector.extract_strided_slice %128 {offsets = [0, 128], sizes = [2, 64], strides = [1, 1]} : vector<2x256xf32> to vector<2x64xf32>
    %132 = vector.extract_strided_slice %127 {offsets = [0, 192], sizes = [2, 64], strides = [1, 1]} : vector<2x256xf32> to vector<2x64xf32>
    %133 = arith.mulf %130, %90 : vector<2x64xf32>
    %134 = arith.mulf %129, %131 : vector<2x64xf32>
    %135 = arith.addf %133, %134 : vector<2x64xf32>
    %136 = math.tanh %135 : vector<2x64xf32>
    %137 = arith.mulf %132, %136 : vector<2x64xf32>
    %cst_69 = arith.constant 1.000000e+00 : f32
    %cst_70 = arith.constant 6.000000e+00 : f32
    %138 = vector.broadcast %cst_69 : f32 to vector<1x64xf32>
    %139 = vector.broadcast %cst_70 : f32 to vector<1x64xf32>
    %140 = arith.select %25, %138, %139 : vector<1x64xi1>, vector<1x64xf32>
    %141 = vector.broadcast %31 : vector<2x1xf32> to vector<2x64xf32>
    %142 = vector.broadcast %140 : vector<1x64xf32> to vector<2x64xf32>
    %143 = arith.cmpf ogt, %141, %142 : vector<2x64xf32>
    %144 = arith.select %143, %137, %89 : vector<2x64xi1>, vector<2x64xf32>
    %145 = arith.select %143, %135, %90 : vector<2x64xi1>, vector<2x64xf32>
    %cst_71 = arith.constant 0.000000e+00 : f32
    %146 = vector.broadcast %cst_71 : f32 to vector<2x64xf32>
    %147 = arith.select %143, %137, %146 : vector<2x64xi1>, vector<2x64xf32>
    %148 = vector.extract_strided_slice %147 {offsets = [0, 0], sizes = [2, 32], strides = [1, 1]} : vector<2x64xf32> to vector<2x32xf32>
    %c0_72 = arith.constant 0 : index
    %c1_73 = arith.constant 1 : index
    %c0_74 = arith.constant 0 : index
    %149 = vector.load %arg11[%c0_72, %c1_73, %c0_74] : memref<2x8x64xf32, #tpu.memory_space<vmem>>, vector<2x1x32xf32>
    %150 = vector.shape_cast %149 : vector<2x1x32xf32> to vector<2x32xf32>
    %151 = vector.shape_cast %148 : vector<2x32xf32> to vector<2x1x32xf32>
    tpu.vector_store %arg11[%c0_72, %c1_73, %c0_74], %151 {strides = array<i32>} : memref<2x8x64xf32, #tpu.memory_space<vmem>>, vector<2x1x32xf32>,
    %152 = vector.extract_strided_slice %147 {offsets = [0, 32], sizes = [2, 32], strides = [1, 1]} : vector<2x64xf32> to vector<2x32xf32>
    %c0_75 = arith.constant 0 : index
    %c6_76 = arith.constant 6 : index
    %c32_77 = arith.constant 32 : index
    %153 = vector.load %arg11[%c0_75, %c6_76, %c32_77] : memref<2x8x64xf32, #tpu.memory_space<vmem>>, vector<2x1x32xf32>
    %154 = vector.shape_cast %153 : vector<2x1x32xf32> to vector<2x32xf32>
    %155 = vector.shape_cast %152 : vector<2x32xf32> to vector<2x1x32xf32>
    tpu.vector_store %arg11[%c0_75, %c6_76, %c32_77], %155 {strides = array<i32>} : memref<2x8x64xf32, #tpu.memory_space<vmem>>, vector<2x1x32xf32>,
    %156 = vector.extract_strided_slice %22 {offsets = [0, 1, 0], sizes = [2, 1, 1], strides = [1, 1, 1]} : vector<2x8x1xf32> to vector<2x1x1xf32>
    %157 = vector.shape_cast %156 : vector<2x1x1xf32> to vector<2x1xf32>
    %158 = vector.extract_strided_slice %22 {offsets = [0, 6, 0], sizes = [2, 1, 1], strides = [1, 1, 1]} : vector<2x8x1xf32> to vector<2x1x1xf32>
    %159 = vector.shape_cast %158 : vector<2x1x1xf32> to vector<2x1xf32>
    %160 = vector.shape_cast %25 : vector<1x64xi1> to vector<1x64xi1>
    %161 = vector.broadcast %160 : vector<1x64xi1> to vector<2x64xi1>
    %162 = vector.shape_cast %157 : vector<2x1xf32> to vector<2x1xf32>
    %163 = vector.broadcast %162 : vector<2x1xf32> to vector<2x64xf32>
    %164 = vector.shape_cast %159 : vector<2x1xf32> to vector<2x1xf32>
    %165 = vector.broadcast %164 : vector<2x1xf32> to vector<2x64xf32>
    %166 = arith.select %161, %163, %165 : vector<2x64xi1>, vector<2x64xf32>
    %167 = arith.mulf %166, %147 : vector<2x64xf32>
    %168 = arith.addf %113, %167 : vector<2x64xf32>
    %c0_78 = arith.constant 0 : index
    %c2 = arith.constant 2 : index
    %c0_79 = arith.constant 0 : index
    %169 = vector.load %arg10[%c0_78, %c2, %c0_79] : memref<2x8x256xf32, #tpu.memory_space<vmem>>, vector<2x1x256xf32>
    %170 = vector.shape_cast %169 : vector<2x1x256xf32> to vector<2x256xf32>
    %c0_80 = arith.constant 0 : index
    %c5 = arith.constant 5 : index
    %c0_81 = arith.constant 0 : index
    %171 = vector.load %arg10[%c0_80, %c5, %c0_81] : memref<2x8x256xf32, #tpu.memory_space<vmem>>, vector<2x1x256xf32>
    %172 = vector.shape_cast %171 : vector<2x1x256xf32> to vector<2x256xf32>
    %173 = vector.shape_cast %30 : vector<1x256xi1> to vector<1x256xi1>
    %174 = vector.broadcast %173 : vector<1x256xi1> to vector<2x256xi1>
    %175 = arith.select %174, %170, %172 : vector<2x256xi1>, vector<2x256xf32>
    %cst_82 = arith.constant dense<0.000000e+00> : vector<2x256xf32>
    %176 = tpu.matmul %144, %55, %cst_82 {dimension_numbers = #tpu.dot_dimension_numbers<[1], [0], [0], [1], [0, 0, 1, 1], [], []>} : vector<2x64xf32>, vector<64x256xf32>, vector<2x256xf32> -> vector<2x256xf32>
    %177 = arith.addf %175, %176 : vector<2x256xf32>
    %178 = arith.negf %177 : vector<2x256xf32>
    %179 = math.exp %178 : vector<2x256xf32>
    %cst_83 = arith.constant 1.000000e+00 : f32
    %180 = vector.broadcast %cst_83 : f32 to vector<2x256xf32>
    %181 = arith.addf %180, %179 : vector<2x256xf32>
    %182 = arith.divf %180, %181 : vector<2x256xf32>
    %183 = math.tanh %177 : vector<2x256xf32>
    %184 = vector.extract_strided_slice %182 {offsets = [0, 0], sizes = [2, 64], strides = [1, 1]} : vector<2x256xf32> to vector<2x64xf32>
    %185 = vector.extract_strided_slice %182 {offsets = [0, 64], sizes = [2, 64], strides = [1, 1]} : vector<2x256xf32> to vector<2x64xf32>
    %186 = vector.extract_strided_slice %183 {offsets = [0, 128], sizes = [2, 64], strides = [1, 1]} : vector<2x256xf32> to vector<2x64xf32>
    %187 = vector.extract_strided_slice %182 {offsets = [0, 192], sizes = [2, 64], strides = [1, 1]} : vector<2x256xf32> to vector<2x64xf32>
    %188 = arith.mulf %185, %145 : vector<2x64xf32>
    %189 = arith.mulf %184, %186 : vector<2x64xf32>
    %190 = arith.addf %188, %189 : vector<2x64xf32>
    %191 = math.tanh %190 : vector<2x64xf32>
    %192 = arith.mulf %187, %191 : vector<2x64xf32>
    %cst_84 = arith.constant 2.000000e+00 : f32
    %cst_85 = arith.constant 5.000000e+00 : f32
    %193 = vector.broadcast %cst_84 : f32 to vector<1x64xf32>
    %194 = vector.broadcast %cst_85 : f32 to vector<1x64xf32>
    %195 = arith.select %25, %193, %194 : vector<1x64xi1>, vector<1x64xf32>
    %196 = vector.broadcast %31 : vector<2x1xf32> to vector<2x64xf32>
    %197 = vector.broadcast %195 : vector<1x64xf32> to vector<2x64xf32>
    %198 = arith.cmpf ogt, %196, %197 : vector<2x64xf32>
    %199 = arith.select %198, %192, %144 : vector<2x64xi1>, vector<2x64xf32>
    %200 = arith.select %198, %190, %145 : vector<2x64xi1>, vector<2x64xf32>
    %cst_86 = arith.constant 0.000000e+00 : f32
    %201 = vector.broadcast %cst_86 : f32 to vector<2x64xf32>
    %202 = arith.select %198, %192, %201 : vector<2x64xi1>, vector<2x64xf32>
    %203 = vector.extract_strided_slice %202 {offsets = [0, 0], sizes = [2, 32], strides = [1, 1]} : vector<2x64xf32> to vector<2x32xf32>
    %c0_87 = arith.constant 0 : index
    %c2_88 = arith.constant 2 : index
    %c0_89 = arith.constant 0 : index
    %204 = vector.load %arg11[%c0_87, %c2_88, %c0_89] : memref<2x8x64xf32, #tpu.memory_space<vmem>>, vector<2x1x32xf32>
    %205 = vector.shape_cast %204 : vector<2x1x32xf32> to vector<2x32xf32>
    %206 = vector.shape_cast %203 : vector<2x32xf32> to vector<2x1x32xf32>
    tpu.vector_store %arg11[%c0_87, %c2_88, %c0_89], %206 {strides = array<i32>} : memref<2x8x64xf32, #tpu.memory_space<vmem>>, vector<2x1x32xf32>,
    %207 = vector.extract_strided_slice %202 {offsets = [0, 32], sizes = [2, 32], strides = [1, 1]} : vector<2x64xf32> to vector<2x32xf32>
    %c0_90 = arith.constant 0 : index
    %c5_91 = arith.constant 5 : index
    %c32_92 = arith.constant 32 : index
    %208 = vector.load %arg11[%c0_90, %c5_91, %c32_92] : memref<2x8x64xf32, #tpu.memory_space<vmem>>, vector<2x1x32xf32>
    %209 = vector.shape_cast %208 : vector<2x1x32xf32> to vector<2x32xf32>
    %210 = vector.shape_cast %207 : vector<2x32xf32> to vector<2x1x32xf32>
    tpu.vector_store %arg11[%c0_90, %c5_91, %c32_92], %210 {strides = array<i32>} : memref<2x8x64xf32, #tpu.memory_space<vmem>>, vector<2x1x32xf32>,
    %211 = vector.extract_strided_slice %22 {offsets = [0, 2, 0], sizes = [2, 1, 1], strides = [1, 1, 1]} : vector<2x8x1xf32> to vector<2x1x1xf32>
    %212 = vector.shape_cast %211 : vector<2x1x1xf32> to vector<2x1xf32>
    %213 = vector.extract_strided_slice %22 {offsets = [0, 5, 0], sizes = [2, 1, 1], strides = [1, 1, 1]} : vector<2x8x1xf32> to vector<2x1x1xf32>
    %214 = vector.shape_cast %213 : vector<2x1x1xf32> to vector<2x1xf32>
    %215 = vector.shape_cast %25 : vector<1x64xi1> to vector<1x64xi1>
    %216 = vector.broadcast %215 : vector<1x64xi1> to vector<2x64xi1>
    %217 = vector.shape_cast %212 : vector<2x1xf32> to vector<2x1xf32>
    %218 = vector.broadcast %217 : vector<2x1xf32> to vector<2x64xf32>
    %219 = vector.shape_cast %214 : vector<2x1xf32> to vector<2x1xf32>
    %220 = vector.broadcast %219 : vector<2x1xf32> to vector<2x64xf32>
    %221 = arith.select %216, %218, %220 : vector<2x64xi1>, vector<2x64xf32>
    %222 = arith.mulf %221, %202 : vector<2x64xf32>
    %223 = arith.addf %168, %222 : vector<2x64xf32>
    %c0_93 = arith.constant 0 : index
    %c3 = arith.constant 3 : index
    %c0_94 = arith.constant 0 : index
    %224 = vector.load %arg10[%c0_93, %c3, %c0_94] : memref<2x8x256xf32, #tpu.memory_space<vmem>>, vector<2x1x256xf32>
    %225 = vector.shape_cast %224 : vector<2x1x256xf32> to vector<2x256xf32>
    %c0_95 = arith.constant 0 : index
    %c4 = arith.constant 4 : index
    %c0_96 = arith.constant 0 : index
    %226 = vector.load %arg10[%c0_95, %c4, %c0_96] : memref<2x8x256xf32, #tpu.memory_space<vmem>>, vector<2x1x256xf32>
    %227 = vector.shape_cast %226 : vector<2x1x256xf32> to vector<2x256xf32>
    %228 = vector.shape_cast %30 : vector<1x256xi1> to vector<1x256xi1>
    %229 = vector.broadcast %228 : vector<1x256xi1> to vector<2x256xi1>
    %230 = arith.select %229, %225, %227 : vector<2x256xi1>, vector<2x256xf32>
    %cst_97 = arith.constant dense<0.000000e+00> : vector<2x256xf32>
    %231 = tpu.matmul %199, %55, %cst_97 {dimension_numbers = #tpu.dot_dimension_numbers<[1], [0], [0], [1], [0, 0, 1, 1], [], []>} : vector<2x64xf32>, vector<64x256xf32>, vector<2x256xf32> -> vector<2x256xf32>
    %232 = arith.addf %230, %231 : vector<2x256xf32>
    %233 = arith.negf %232 : vector<2x256xf32>
    %234 = math.exp %233 : vector<2x256xf32>
    %cst_98 = arith.constant 1.000000e+00 : f32
    %235 = vector.broadcast %cst_98 : f32 to vector<2x256xf32>
    %236 = arith.addf %235, %234 : vector<2x256xf32>
    %237 = arith.divf %235, %236 : vector<2x256xf32>
    %238 = math.tanh %232 : vector<2x256xf32>
    %239 = vector.extract_strided_slice %237 {offsets = [0, 0], sizes = [2, 64], strides = [1, 1]} : vector<2x256xf32> to vector<2x64xf32>
    %240 = vector.extract_strided_slice %237 {offsets = [0, 64], sizes = [2, 64], strides = [1, 1]} : vector<2x256xf32> to vector<2x64xf32>
    %241 = vector.extract_strided_slice %238 {offsets = [0, 128], sizes = [2, 64], strides = [1, 1]} : vector<2x256xf32> to vector<2x64xf32>
    %242 = vector.extract_strided_slice %237 {offsets = [0, 192], sizes = [2, 64], strides = [1, 1]} : vector<2x256xf32> to vector<2x64xf32>
    %243 = arith.mulf %240, %200 : vector<2x64xf32>
    %244 = arith.mulf %239, %241 : vector<2x64xf32>
    %245 = arith.addf %243, %244 : vector<2x64xf32>
    %246 = math.tanh %245 : vector<2x64xf32>
    %247 = arith.mulf %242, %246 : vector<2x64xf32>
    %cst_99 = arith.constant 3.000000e+00 : f32
    %cst_100 = arith.constant 4.000000e+00 : f32
    %248 = vector.broadcast %cst_99 : f32 to vector<1x64xf32>
    %249 = vector.broadcast %cst_100 : f32 to vector<1x64xf32>
    %250 = arith.select %25, %248, %249 : vector<1x64xi1>, vector<1x64xf32>
    %251 = vector.broadcast %31 : vector<2x1xf32> to vector<2x64xf32>
    %252 = vector.broadcast %250 : vector<1x64xf32> to vector<2x64xf32>
    %253 = arith.cmpf ogt, %251, %252 : vector<2x64xf32>
    %254 = arith.select %253, %247, %199 : vector<2x64xi1>, vector<2x64xf32>
    %255 = arith.select %253, %245, %200 : vector<2x64xi1>, vector<2x64xf32>
    %cst_101 = arith.constant 0.000000e+00 : f32
    %256 = vector.broadcast %cst_101 : f32 to vector<2x64xf32>
    %257 = arith.select %253, %247, %256 : vector<2x64xi1>, vector<2x64xf32>
    %258 = vector.extract_strided_slice %257 {offsets = [0, 0], sizes = [2, 32], strides = [1, 1]} : vector<2x64xf32> to vector<2x32xf32>
    %c0_102 = arith.constant 0 : index
    %c3_103 = arith.constant 3 : index
    %c0_104 = arith.constant 0 : index
    %259 = vector.load %arg11[%c0_102, %c3_103, %c0_104] : memref<2x8x64xf32, #tpu.memory_space<vmem>>, vector<2x1x32xf32>
    %260 = vector.shape_cast %259 : vector<2x1x32xf32> to vector<2x32xf32>
    %261 = vector.shape_cast %258 : vector<2x32xf32> to vector<2x1x32xf32>
    tpu.vector_store %arg11[%c0_102, %c3_103, %c0_104], %261 {strides = array<i32>} : memref<2x8x64xf32, #tpu.memory_space<vmem>>, vector<2x1x32xf32>,
    %262 = vector.extract_strided_slice %257 {offsets = [0, 32], sizes = [2, 32], strides = [1, 1]} : vector<2x64xf32> to vector<2x32xf32>
    %c0_105 = arith.constant 0 : index
    %c4_106 = arith.constant 4 : index
    %c32_107 = arith.constant 32 : index
    %263 = vector.load %arg11[%c0_105, %c4_106, %c32_107] : memref<2x8x64xf32, #tpu.memory_space<vmem>>, vector<2x1x32xf32>
    %264 = vector.shape_cast %263 : vector<2x1x32xf32> to vector<2x32xf32>
    %265 = vector.shape_cast %262 : vector<2x32xf32> to vector<2x1x32xf32>
    tpu.vector_store %arg11[%c0_105, %c4_106, %c32_107], %265 {strides = array<i32>} : memref<2x8x64xf32, #tpu.memory_space<vmem>>, vector<2x1x32xf32>,
    %266 = vector.extract_strided_slice %22 {offsets = [0, 3, 0], sizes = [2, 1, 1], strides = [1, 1, 1]} : vector<2x8x1xf32> to vector<2x1x1xf32>
    %267 = vector.shape_cast %266 : vector<2x1x1xf32> to vector<2x1xf32>
    %268 = vector.extract_strided_slice %22 {offsets = [0, 4, 0], sizes = [2, 1, 1], strides = [1, 1, 1]} : vector<2x8x1xf32> to vector<2x1x1xf32>
    %269 = vector.shape_cast %268 : vector<2x1x1xf32> to vector<2x1xf32>
    %270 = vector.shape_cast %25 : vector<1x64xi1> to vector<1x64xi1>
    %271 = vector.broadcast %270 : vector<1x64xi1> to vector<2x64xi1>
    %272 = vector.shape_cast %267 : vector<2x1xf32> to vector<2x1xf32>
    %273 = vector.broadcast %272 : vector<2x1xf32> to vector<2x64xf32>
    %274 = vector.shape_cast %269 : vector<2x1xf32> to vector<2x1xf32>
    %275 = vector.broadcast %274 : vector<2x1xf32> to vector<2x64xf32>
    %276 = arith.select %271, %273, %275 : vector<2x64xi1>, vector<2x64xf32>
    %277 = arith.mulf %276, %257 : vector<2x64xf32>
    %278 = arith.addf %223, %277 : vector<2x64xf32>
    %c0_108 = arith.constant 0 : index
    %c4_109 = arith.constant 4 : index
    %c0_110 = arith.constant 0 : index
    %279 = vector.load %arg10[%c0_108, %c4_109, %c0_110] : memref<2x8x256xf32, #tpu.memory_space<vmem>>, vector<2x1x256xf32>
    %280 = vector.shape_cast %279 : vector<2x1x256xf32> to vector<2x256xf32>
    %c0_111 = arith.constant 0 : index
    %c3_112 = arith.constant 3 : index
    %c0_113 = arith.constant 0 : index
    %281 = vector.load %arg10[%c0_111, %c3_112, %c0_113] : memref<2x8x256xf32, #tpu.memory_space<vmem>>, vector<2x1x256xf32>
    %282 = vector.shape_cast %281 : vector<2x1x256xf32> to vector<2x256xf32>
    %283 = vector.shape_cast %30 : vector<1x256xi1> to vector<1x256xi1>
    %284 = vector.broadcast %283 : vector<1x256xi1> to vector<2x256xi1>
    %285 = arith.select %284, %280, %282 : vector<2x256xi1>, vector<2x256xf32>
    %cst_114 = arith.constant dense<0.000000e+00> : vector<2x256xf32>
    %286 = tpu.matmul %254, %55, %cst_114 {dimension_numbers = #tpu.dot_dimension_numbers<[1], [0], [0], [1], [0, 0, 1, 1], [], []>} : vector<2x64xf32>, vector<64x256xf32>, vector<2x256xf32> -> vector<2x256xf32>
    %287 = arith.addf %285, %286 : vector<2x256xf32>
    %288 = arith.negf %287 : vector<2x256xf32>
    %289 = math.exp %288 : vector<2x256xf32>
    %cst_115 = arith.constant 1.000000e+00 : f32
    %290 = vector.broadcast %cst_115 : f32 to vector<2x256xf32>
    %291 = arith.addf %290, %289 : vector<2x256xf32>
    %292 = arith.divf %290, %291 : vector<2x256xf32>
    %293 = math.tanh %287 : vector<2x256xf32>
    %294 = vector.extract_strided_slice %292 {offsets = [0, 0], sizes = [2, 64], strides = [1, 1]} : vector<2x256xf32> to vector<2x64xf32>
    %295 = vector.extract_strided_slice %292 {offsets = [0, 64], sizes = [2, 64], strides = [1, 1]} : vector<2x256xf32> to vector<2x64xf32>
    %296 = vector.extract_strided_slice %293 {offsets = [0, 128], sizes = [2, 64], strides = [1, 1]} : vector<2x256xf32> to vector<2x64xf32>
    %297 = vector.extract_strided_slice %292 {offsets = [0, 192], sizes = [2, 64], strides = [1, 1]} : vector<2x256xf32> to vector<2x64xf32>
    %298 = arith.mulf %295, %255 : vector<2x64xf32>
    %299 = arith.mulf %294, %296 : vector<2x64xf32>
    %300 = arith.addf %298, %299 : vector<2x64xf32>
    %301 = math.tanh %300 : vector<2x64xf32>
    %302 = arith.mulf %297, %301 : vector<2x64xf32>
    %cst_116 = arith.constant 4.000000e+00 : f32
    %cst_117 = arith.constant 3.000000e+00 : f32
    %303 = vector.broadcast %cst_116 : f32 to vector<1x64xf32>
    %304 = vector.broadcast %cst_117 : f32 to vector<1x64xf32>
    %305 = arith.select %25, %303, %304 : vector<1x64xi1>, vector<1x64xf32>
    %306 = vector.broadcast %31 : vector<2x1xf32> to vector<2x64xf32>
    %307 = vector.broadcast %305 : vector<1x64xf32> to vector<2x64xf32>
    %308 = arith.cmpf ogt, %306, %307 : vector<2x64xf32>
    %309 = arith.select %308, %302, %254 : vector<2x64xi1>, vector<2x64xf32>
    %310 = arith.select %308, %300, %255 : vector<2x64xi1>, vector<2x64xf32>
    %cst_118 = arith.constant 0.000000e+00 : f32
    %311 = vector.broadcast %cst_118 : f32 to vector<2x64xf32>
    %312 = arith.select %308, %302, %311 : vector<2x64xi1>, vector<2x64xf32>
    %313 = vector.extract_strided_slice %312 {offsets = [0, 0], sizes = [2, 32], strides = [1, 1]} : vector<2x64xf32> to vector<2x32xf32>
    %c0_119 = arith.constant 0 : index
    %c4_120 = arith.constant 4 : index
    %c0_121 = arith.constant 0 : index
    %314 = vector.load %arg11[%c0_119, %c4_120, %c0_121] : memref<2x8x64xf32, #tpu.memory_space<vmem>>, vector<2x1x32xf32>
    %315 = vector.shape_cast %314 : vector<2x1x32xf32> to vector<2x32xf32>
    %316 = vector.shape_cast %313 : vector<2x32xf32> to vector<2x1x32xf32>
    tpu.vector_store %arg11[%c0_119, %c4_120, %c0_121], %316 {strides = array<i32>} : memref<2x8x64xf32, #tpu.memory_space<vmem>>, vector<2x1x32xf32>,
    %317 = vector.extract_strided_slice %312 {offsets = [0, 32], sizes = [2, 32], strides = [1, 1]} : vector<2x64xf32> to vector<2x32xf32>
    %c0_122 = arith.constant 0 : index
    %c3_123 = arith.constant 3 : index
    %c32_124 = arith.constant 32 : index
    %318 = vector.load %arg11[%c0_122, %c3_123, %c32_124] : memref<2x8x64xf32, #tpu.memory_space<vmem>>, vector<2x1x32xf32>
    %319 = vector.shape_cast %318 : vector<2x1x32xf32> to vector<2x32xf32>
    %320 = vector.shape_cast %317 : vector<2x32xf32> to vector<2x1x32xf32>
    tpu.vector_store %arg11[%c0_122, %c3_123, %c32_124], %320 {strides = array<i32>} : memref<2x8x64xf32, #tpu.memory_space<vmem>>, vector<2x1x32xf32>,
    %321 = vector.extract_strided_slice %22 {offsets = [0, 4, 0], sizes = [2, 1, 1], strides = [1, 1, 1]} : vector<2x8x1xf32> to vector<2x1x1xf32>
    %322 = vector.shape_cast %321 : vector<2x1x1xf32> to vector<2x1xf32>
    %323 = vector.extract_strided_slice %22 {offsets = [0, 3, 0], sizes = [2, 1, 1], strides = [1, 1, 1]} : vector<2x8x1xf32> to vector<2x1x1xf32>
    %324 = vector.shape_cast %323 : vector<2x1x1xf32> to vector<2x1xf32>
    %325 = vector.shape_cast %25 : vector<1x64xi1> to vector<1x64xi1>
    %326 = vector.broadcast %325 : vector<1x64xi1> to vector<2x64xi1>
    %327 = vector.shape_cast %322 : vector<2x1xf32> to vector<2x1xf32>
    %328 = vector.broadcast %327 : vector<2x1xf32> to vector<2x64xf32>
    %329 = vector.shape_cast %324 : vector<2x1xf32> to vector<2x1xf32>
    %330 = vector.broadcast %329 : vector<2x1xf32> to vector<2x64xf32>
    %331 = arith.select %326, %328, %330 : vector<2x64xi1>, vector<2x64xf32>
    %332 = arith.mulf %331, %312 : vector<2x64xf32>
    %333 = arith.addf %278, %332 : vector<2x64xf32>
    %c0_125 = arith.constant 0 : index
    %c5_126 = arith.constant 5 : index
    %c0_127 = arith.constant 0 : index
    %334 = vector.load %arg10[%c0_125, %c5_126, %c0_127] : memref<2x8x256xf32, #tpu.memory_space<vmem>>, vector<2x1x256xf32>
    %335 = vector.shape_cast %334 : vector<2x1x256xf32> to vector<2x256xf32>
    %c0_128 = arith.constant 0 : index
    %c2_129 = arith.constant 2 : index
    %c0_130 = arith.constant 0 : index
    %336 = vector.load %arg10[%c0_128, %c2_129, %c0_130] : memref<2x8x256xf32, #tpu.memory_space<vmem>>, vector<2x1x256xf32>
    %337 = vector.shape_cast %336 : vector<2x1x256xf32> to vector<2x256xf32>
    %338 = vector.shape_cast %30 : vector<1x256xi1> to vector<1x256xi1>
    %339 = vector.broadcast %338 : vector<1x256xi1> to vector<2x256xi1>
    %340 = arith.select %339, %335, %337 : vector<2x256xi1>, vector<2x256xf32>
    %cst_131 = arith.constant dense<0.000000e+00> : vector<2x256xf32>
    %341 = tpu.matmul %309, %55, %cst_131 {dimension_numbers = #tpu.dot_dimension_numbers<[1], [0], [0], [1], [0, 0, 1, 1], [], []>} : vector<2x64xf32>, vector<64x256xf32>, vector<2x256xf32> -> vector<2x256xf32>
    %342 = arith.addf %340, %341 : vector<2x256xf32>
    %343 = arith.negf %342 : vector<2x256xf32>
    %344 = math.exp %343 : vector<2x256xf32>
    %cst_132 = arith.constant 1.000000e+00 : f32
    %345 = vector.broadcast %cst_132 : f32 to vector<2x256xf32>
    %346 = arith.addf %345, %344 : vector<2x256xf32>
    %347 = arith.divf %345, %346 : vector<2x256xf32>
    %348 = math.tanh %342 : vector<2x256xf32>
    %349 = vector.extract_strided_slice %347 {offsets = [0, 0], sizes = [2, 64], strides = [1, 1]} : vector<2x256xf32> to vector<2x64xf32>
    %350 = vector.extract_strided_slice %347 {offsets = [0, 64], sizes = [2, 64], strides = [1, 1]} : vector<2x256xf32> to vector<2x64xf32>
    %351 = vector.extract_strided_slice %348 {offsets = [0, 128], sizes = [2, 64], strides = [1, 1]} : vector<2x256xf32> to vector<2x64xf32>
    %352 = vector.extract_strided_slice %347 {offsets = [0, 192], sizes = [2, 64], strides = [1, 1]} : vector<2x256xf32> to vector<2x64xf32>
    %353 = arith.mulf %350, %310 : vector<2x64xf32>
    %354 = arith.mulf %349, %351 : vector<2x64xf32>
    %355 = arith.addf %353, %354 : vector<2x64xf32>
    %356 = math.tanh %355 : vector<2x64xf32>
    %357 = arith.mulf %352, %356 : vector<2x64xf32>
    %cst_133 = arith.constant 5.000000e+00 : f32
    %cst_134 = arith.constant 2.000000e+00 : f32
    %358 = vector.broadcast %cst_133 : f32 to vector<1x64xf32>
    %359 = vector.broadcast %cst_134 : f32 to vector<1x64xf32>
    %360 = arith.select %25, %358, %359 : vector<1x64xi1>, vector<1x64xf32>
    %361 = vector.broadcast %31 : vector<2x1xf32> to vector<2x64xf32>
    %362 = vector.broadcast %360 : vector<1x64xf32> to vector<2x64xf32>
    %363 = arith.cmpf ogt, %361, %362 : vector<2x64xf32>
    %364 = arith.select %363, %357, %309 : vector<2x64xi1>, vector<2x64xf32>
    %365 = arith.select %363, %355, %310 : vector<2x64xi1>, vector<2x64xf32>
    %cst_135 = arith.constant 0.000000e+00 : f32
    %366 = vector.broadcast %cst_135 : f32 to vector<2x64xf32>
    %367 = arith.select %363, %357, %366 : vector<2x64xi1>, vector<2x64xf32>
    %368 = vector.extract_strided_slice %367 {offsets = [0, 0], sizes = [2, 32], strides = [1, 1]} : vector<2x64xf32> to vector<2x32xf32>
    %c0_136 = arith.constant 0 : index
    %c5_137 = arith.constant 5 : index
    %c0_138 = arith.constant 0 : index
    %369 = vector.load %arg11[%c0_136, %c5_137, %c0_138] : memref<2x8x64xf32, #tpu.memory_space<vmem>>, vector<2x1x32xf32>
    %370 = vector.shape_cast %369 : vector<2x1x32xf32> to vector<2x32xf32>
    %371 = vector.shape_cast %368 : vector<2x32xf32> to vector<2x1x32xf32>
    tpu.vector_store %arg11[%c0_136, %c5_137, %c0_138], %371 {strides = array<i32>} : memref<2x8x64xf32, #tpu.memory_space<vmem>>, vector<2x1x32xf32>,
    %372 = vector.extract_strided_slice %367 {offsets = [0, 32], sizes = [2, 32], strides = [1, 1]} : vector<2x64xf32> to vector<2x32xf32>
    %c0_139 = arith.constant 0 : index
    %c2_140 = arith.constant 2 : index
    %c32_141 = arith.constant 32 : index
    %373 = vector.load %arg11[%c0_139, %c2_140, %c32_141] : memref<2x8x64xf32, #tpu.memory_space<vmem>>, vector<2x1x32xf32>
    %374 = vector.shape_cast %373 : vector<2x1x32xf32> to vector<2x32xf32>
    %375 = vector.shape_cast %372 : vector<2x32xf32> to vector<2x1x32xf32>
    tpu.vector_store %arg11[%c0_139, %c2_140, %c32_141], %375 {strides = array<i32>} : memref<2x8x64xf32, #tpu.memory_space<vmem>>, vector<2x1x32xf32>,
    %376 = vector.extract_strided_slice %22 {offsets = [0, 5, 0], sizes = [2, 1, 1], strides = [1, 1, 1]} : vector<2x8x1xf32> to vector<2x1x1xf32>
    %377 = vector.shape_cast %376 : vector<2x1x1xf32> to vector<2x1xf32>
    %378 = vector.extract_strided_slice %22 {offsets = [0, 2, 0], sizes = [2, 1, 1], strides = [1, 1, 1]} : vector<2x8x1xf32> to vector<2x1x1xf32>
    %379 = vector.shape_cast %378 : vector<2x1x1xf32> to vector<2x1xf32>
    %380 = vector.shape_cast %25 : vector<1x64xi1> to vector<1x64xi1>
    %381 = vector.broadcast %380 : vector<1x64xi1> to vector<2x64xi1>
    %382 = vector.shape_cast %377 : vector<2x1xf32> to vector<2x1xf32>
    %383 = vector.broadcast %382 : vector<2x1xf32> to vector<2x64xf32>
    %384 = vector.shape_cast %379 : vector<2x1xf32> to vector<2x1xf32>
    %385 = vector.broadcast %384 : vector<2x1xf32> to vector<2x64xf32>
    %386 = arith.select %381, %383, %385 : vector<2x64xi1>, vector<2x64xf32>
    %387 = arith.mulf %386, %367 : vector<2x64xf32>
    %388 = arith.addf %333, %387 : vector<2x64xf32>
    %c0_142 = arith.constant 0 : index
    %c6_143 = arith.constant 6 : index
    %c0_144 = arith.constant 0 : index
    %389 = vector.load %arg10[%c0_142, %c6_143, %c0_144] : memref<2x8x256xf32, #tpu.memory_space<vmem>>, vector<2x1x256xf32>
    %390 = vector.shape_cast %389 : vector<2x1x256xf32> to vector<2x256xf32>
    %c0_145 = arith.constant 0 : index
    %c1_146 = arith.constant 1 : index
    %c0_147 = arith.constant 0 : index
    %391 = vector.load %arg10[%c0_145, %c1_146, %c0_147] : memref<2x8x256xf32, #tpu.memory_space<vmem>>, vector<2x1x256xf32>
    %392 = vector.shape_cast %391 : vector<2x1x256xf32> to vector<2x256xf32>
    %393 = vector.shape_cast %30 : vector<1x256xi1> to vector<1x256xi1>
    %394 = vector.broadcast %393 : vector<1x256xi1> to vector<2x256xi1>
    %395 = arith.select %394, %390, %392 : vector<2x256xi1>, vector<2x256xf32>
    %cst_148 = arith.constant dense<0.000000e+00> : vector<2x256xf32>
    %396 = tpu.matmul %364, %55, %cst_148 {dimension_numbers = #tpu.dot_dimension_numbers<[1], [0], [0], [1], [0, 0, 1, 1], [], []>} : vector<2x64xf32>, vector<64x256xf32>, vector<2x256xf32> -> vector<2x256xf32>
    %397 = arith.addf %395, %396 : vector<2x256xf32>
    %398 = arith.negf %397 : vector<2x256xf32>
    %399 = math.exp %398 : vector<2x256xf32>
    %cst_149 = arith.constant 1.000000e+00 : f32
    %400 = vector.broadcast %cst_149 : f32 to vector<2x256xf32>
    %401 = arith.addf %400, %399 : vector<2x256xf32>
    %402 = arith.divf %400, %401 : vector<2x256xf32>
    %403 = math.tanh %397 : vector<2x256xf32>
    %404 = vector.extract_strided_slice %402 {offsets = [0, 0], sizes = [2, 64], strides = [1, 1]} : vector<2x256xf32> to vector<2x64xf32>
    %405 = vector.extract_strided_slice %402 {offsets = [0, 64], sizes = [2, 64], strides = [1, 1]} : vector<2x256xf32> to vector<2x64xf32>
    %406 = vector.extract_strided_slice %403 {offsets = [0, 128], sizes = [2, 64], strides = [1, 1]} : vector<2x256xf32> to vector<2x64xf32>
    %407 = vector.extract_strided_slice %402 {offsets = [0, 192], sizes = [2, 64], strides = [1, 1]} : vector<2x256xf32> to vector<2x64xf32>
    %408 = arith.mulf %405, %365 : vector<2x64xf32>
    %409 = arith.mulf %404, %406 : vector<2x64xf32>
    %410 = arith.addf %408, %409 : vector<2x64xf32>
    %411 = math.tanh %410 : vector<2x64xf32>
    %412 = arith.mulf %407, %411 : vector<2x64xf32>
    %cst_150 = arith.constant 6.000000e+00 : f32
    %cst_151 = arith.constant 1.000000e+00 : f32
    %413 = vector.broadcast %cst_150 : f32 to vector<1x64xf32>
    %414 = vector.broadcast %cst_151 : f32 to vector<1x64xf32>
    %415 = arith.select %25, %413, %414 : vector<1x64xi1>, vector<1x64xf32>
    %416 = vector.broadcast %31 : vector<2x1xf32> to vector<2x64xf32>
    %417 = vector.broadcast %415 : vector<1x64xf32> to vector<2x64xf32>
    %418 = arith.cmpf ogt, %416, %417 : vector<2x64xf32>
    %419 = arith.select %418, %412, %364 : vector<2x64xi1>, vector<2x64xf32>
    %420 = arith.select %418, %410, %365 : vector<2x64xi1>, vector<2x64xf32>
    %cst_152 = arith.constant 0.000000e+00 : f32
    %421 = vector.broadcast %cst_152 : f32 to vector<2x64xf32>
    %422 = arith.select %418, %412, %421 : vector<2x64xi1>, vector<2x64xf32>
    %423 = vector.extract_strided_slice %422 {offsets = [0, 0], sizes = [2, 32], strides = [1, 1]} : vector<2x64xf32> to vector<2x32xf32>
    %c0_153 = arith.constant 0 : index
    %c6_154 = arith.constant 6 : index
    %c0_155 = arith.constant 0 : index
    %424 = vector.load %arg11[%c0_153, %c6_154, %c0_155] : memref<2x8x64xf32, #tpu.memory_space<vmem>>, vector<2x1x32xf32>
    %425 = vector.shape_cast %424 : vector<2x1x32xf32> to vector<2x32xf32>
    %426 = vector.shape_cast %423 : vector<2x32xf32> to vector<2x1x32xf32>
    tpu.vector_store %arg11[%c0_153, %c6_154, %c0_155], %426 {strides = array<i32>} : memref<2x8x64xf32, #tpu.memory_space<vmem>>, vector<2x1x32xf32>,
    %427 = vector.extract_strided_slice %422 {offsets = [0, 32], sizes = [2, 32], strides = [1, 1]} : vector<2x64xf32> to vector<2x32xf32>
    %c0_156 = arith.constant 0 : index
    %c1_157 = arith.constant 1 : index
    %c32_158 = arith.constant 32 : index
    %428 = vector.load %arg11[%c0_156, %c1_157, %c32_158] : memref<2x8x64xf32, #tpu.memory_space<vmem>>, vector<2x1x32xf32>
    %429 = vector.shape_cast %428 : vector<2x1x32xf32> to vector<2x32xf32>
    %430 = vector.shape_cast %427 : vector<2x32xf32> to vector<2x1x32xf32>
    tpu.vector_store %arg11[%c0_156, %c1_157, %c32_158], %430 {strides = array<i32>} : memref<2x8x64xf32, #tpu.memory_space<vmem>>, vector<2x1x32xf32>,
    %431 = vector.extract_strided_slice %22 {offsets = [0, 6, 0], sizes = [2, 1, 1], strides = [1, 1, 1]} : vector<2x8x1xf32> to vector<2x1x1xf32>
    %432 = vector.shape_cast %431 : vector<2x1x1xf32> to vector<2x1xf32>
    %433 = vector.extract_strided_slice %22 {offsets = [0, 1, 0], sizes = [2, 1, 1], strides = [1, 1, 1]} : vector<2x8x1xf32> to vector<2x1x1xf32>
    %434 = vector.shape_cast %433 : vector<2x1x1xf32> to vector<2x1xf32>
    %435 = vector.shape_cast %25 : vector<1x64xi1> to vector<1x64xi1>
    %436 = vector.broadcast %435 : vector<1x64xi1> to vector<2x64xi1>
    %437 = vector.shape_cast %432 : vector<2x1xf32> to vector<2x1xf32>
    %438 = vector.broadcast %437 : vector<2x1xf32> to vector<2x64xf32>
    %439 = vector.shape_cast %434 : vector<2x1xf32> to vector<2x1xf32>
    %440 = vector.broadcast %439 : vector<2x1xf32> to vector<2x64xf32>
    %441 = arith.select %436, %438, %440 : vector<2x64xi1>, vector<2x64xf32>
    %442 = arith.mulf %441, %422 : vector<2x64xf32>
    %443 = arith.addf %388, %442 : vector<2x64xf32>
    %c0_159 = arith.constant 0 : index
    %c7_160 = arith.constant 7 : index
    %c0_161 = arith.constant 0 : index
    %444 = vector.load %arg10[%c0_159, %c7_160, %c0_161] : memref<2x8x256xf32, #tpu.memory_space<vmem>>, vector<2x1x256xf32>
    %445 = vector.shape_cast %444 : vector<2x1x256xf32> to vector<2x256xf32>
    %c0_162 = arith.constant 0 : index
    %c0_163 = arith.constant 0 : index
    %c0_164 = arith.constant 0 : index
    %446 = vector.load %arg10[%c0_162, %c0_163, %c0_164] : memref<2x8x256xf32, #tpu.memory_space<vmem>>, vector<2x1x256xf32>
    %447 = vector.shape_cast %446 : vector<2x1x256xf32> to vector<2x256xf32>
    %448 = vector.shape_cast %30 : vector<1x256xi1> to vector<1x256xi1>
    %449 = vector.broadcast %448 : vector<1x256xi1> to vector<2x256xi1>
    %450 = arith.select %449, %445, %447 : vector<2x256xi1>, vector<2x256xf32>
    %cst_165 = arith.constant dense<0.000000e+00> : vector<2x256xf32>
    %451 = tpu.matmul %419, %55, %cst_165 {dimension_numbers = #tpu.dot_dimension_numbers<[1], [0], [0], [1], [0, 0, 1, 1], [], []>} : vector<2x64xf32>, vector<64x256xf32>, vector<2x256xf32> -> vector<2x256xf32>
    %452 = arith.addf %450, %451 : vector<2x256xf32>
    %453 = arith.negf %452 : vector<2x256xf32>
    %454 = math.exp %453 : vector<2x256xf32>
    %cst_166 = arith.constant 1.000000e+00 : f32
    %455 = vector.broadcast %cst_166 : f32 to vector<2x256xf32>
    %456 = arith.addf %455, %454 : vector<2x256xf32>
    %457 = arith.divf %455, %456 : vector<2x256xf32>
    %458 = math.tanh %452 : vector<2x256xf32>
    %459 = vector.extract_strided_slice %457 {offsets = [0, 0], sizes = [2, 64], strides = [1, 1]} : vector<2x256xf32> to vector<2x64xf32>
    %460 = vector.extract_strided_slice %457 {offsets = [0, 64], sizes = [2, 64], strides = [1, 1]} : vector<2x256xf32> to vector<2x64xf32>
    %461 = vector.extract_strided_slice %458 {offsets = [0, 128], sizes = [2, 64], strides = [1, 1]} : vector<2x256xf32> to vector<2x64xf32>
    %462 = vector.extract_strided_slice %457 {offsets = [0, 192], sizes = [2, 64], strides = [1, 1]} : vector<2x256xf32> to vector<2x64xf32>
    %463 = arith.mulf %460, %420 : vector<2x64xf32>
    %464 = arith.mulf %459, %461 : vector<2x64xf32>
    %465 = arith.addf %463, %464 : vector<2x64xf32>
    %466 = math.tanh %465 : vector<2x64xf32>
    %467 = arith.mulf %462, %466 : vector<2x64xf32>
    %cst_167 = arith.constant 7.000000e+00 : f32
    %cst_168 = arith.constant 0.000000e+00 : f32
    %468 = vector.broadcast %cst_167 : f32 to vector<1x64xf32>
    %469 = vector.broadcast %cst_168 : f32 to vector<1x64xf32>
    %470 = arith.select %25, %468, %469 : vector<1x64xi1>, vector<1x64xf32>
    %471 = vector.broadcast %31 : vector<2x1xf32> to vector<2x64xf32>
    %472 = vector.broadcast %470 : vector<1x64xf32> to vector<2x64xf32>
    %473 = arith.cmpf ogt, %471, %472 : vector<2x64xf32>
    %cst_169 = arith.constant 0.000000e+00 : f32
    %474 = vector.broadcast %cst_169 : f32 to vector<2x64xf32>
    %475 = arith.select %473, %467, %474 : vector<2x64xi1>, vector<2x64xf32>
    %476 = vector.extract_strided_slice %475 {offsets = [0, 0], sizes = [2, 32], strides = [1, 1]} : vector<2x64xf32> to vector<2x32xf32>
    %c0_170 = arith.constant 0 : index
    %c7_171 = arith.constant 7 : index
    %c0_172 = arith.constant 0 : index
    %477 = vector.load %arg11[%c0_170, %c7_171, %c0_172] : memref<2x8x64xf32, #tpu.memory_space<vmem>>, vector<2x1x32xf32>
    %478 = vector.shape_cast %477 : vector<2x1x32xf32> to vector<2x32xf32>
    %479 = vector.shape_cast %476 : vector<2x32xf32> to vector<2x1x32xf32>
    tpu.vector_store %arg11[%c0_170, %c7_171, %c0_172], %479 {strides = array<i32>} : memref<2x8x64xf32, #tpu.memory_space<vmem>>, vector<2x1x32xf32>,
    %480 = vector.extract_strided_slice %475 {offsets = [0, 32], sizes = [2, 32], strides = [1, 1]} : vector<2x64xf32> to vector<2x32xf32>
    %c0_173 = arith.constant 0 : index
    %c0_174 = arith.constant 0 : index
    %c32_175 = arith.constant 32 : index
    %481 = vector.load %arg11[%c0_173, %c0_174, %c32_175] : memref<2x8x64xf32, #tpu.memory_space<vmem>>, vector<2x1x32xf32>
    %482 = vector.shape_cast %481 : vector<2x1x32xf32> to vector<2x32xf32>
    %483 = vector.shape_cast %480 : vector<2x32xf32> to vector<2x1x32xf32>
    tpu.vector_store %arg11[%c0_173, %c0_174, %c32_175], %483 {strides = array<i32>} : memref<2x8x64xf32, #tpu.memory_space<vmem>>, vector<2x1x32xf32>,
    %484 = vector.extract_strided_slice %22 {offsets = [0, 7, 0], sizes = [2, 1, 1], strides = [1, 1, 1]} : vector<2x8x1xf32> to vector<2x1x1xf32>
    %485 = vector.shape_cast %484 : vector<2x1x1xf32> to vector<2x1xf32>
    %486 = vector.extract_strided_slice %22 {offsets = [0, 0, 0], sizes = [2, 1, 1], strides = [1, 1, 1]} : vector<2x8x1xf32> to vector<2x1x1xf32>
    %487 = vector.shape_cast %486 : vector<2x1x1xf32> to vector<2x1xf32>
    %488 = vector.shape_cast %25 : vector<1x64xi1> to vector<1x64xi1>
    %489 = vector.broadcast %488 : vector<1x64xi1> to vector<2x64xi1>
    %490 = vector.shape_cast %485 : vector<2x1xf32> to vector<2x1xf32>
    %491 = vector.broadcast %490 : vector<2x1xf32> to vector<2x64xf32>
    %492 = vector.shape_cast %487 : vector<2x1xf32> to vector<2x1xf32>
    %493 = vector.broadcast %492 : vector<2x1xf32> to vector<2x64xf32>
    %494 = arith.select %489, %491, %493 : vector<2x64xi1>, vector<2x64xf32>
    %495 = arith.mulf %494, %475 : vector<2x64xf32>
    %496 = arith.addf %443, %495 : vector<2x64xf32>
    %c0_176 = arith.constant 0 : index
    %c0_177 = arith.constant 0 : index
    %c0_178 = arith.constant 0 : index
    %497 = vector.load %arg11[%c0_176, %c0_177, %c0_178] : memref<2x8x64xf32, #tpu.memory_space<vmem>>, vector<1x8x64xf32>
    %498 = vector.shape_cast %497 : vector<1x8x64xf32> to vector<8x64xf32>
    %c0_179 = arith.constant 0 : index
    %c0_180 = arith.constant 0 : index
    %499 = vector.load %arg6[%c0_179, %c0_180] : memref<64x256xf32, #tpu.memory_space<vmem>>, vector<64x256xf32>
    %cst_181 = arith.constant dense<0.000000e+00> : vector<8x256xf32>
    %500 = tpu.matmul %498, %499, %cst_181 {dimension_numbers = #tpu.dot_dimension_numbers<[1], [0], [0], [1], [0, 0, 1, 1], [], []>} : vector<8x64xf32>, vector<64x256xf32>, vector<8x256xf32> -> vector<8x256xf32>
    %c1_182 = arith.constant 1 : index
    %c0_183 = arith.constant 0 : index
    %c0_184 = arith.constant 0 : index
    %501 = vector.load %arg8[%c1_182, %c0_183, %c0_184] : memref<2x1x256xf32, #tpu.memory_space<vmem>>, vector<1x1x256xf32>
    %502 = vector.shape_cast %501 : vector<1x1x256xf32> to vector<1x256xf32>
    %503 = vector.broadcast %502 : vector<1x256xf32> to vector<8x256xf32>
    %504 = arith.addf %500, %503 : vector<8x256xf32>
    %c0_185 = arith.constant 0 : index
    %c0_186 = arith.constant 0 : index
    %c0_187 = arith.constant 0 : index
    %505 = vector.load %arg10[%c0_185, %c0_186, %c0_187] : memref<2x8x256xf32, #tpu.memory_space<vmem>>, vector<1x8x256xf32>
    %506 = vector.shape_cast %505 : vector<1x8x256xf32> to vector<8x256xf32>
    %507 = vector.shape_cast %504 : vector<8x256xf32> to vector<1x8x256xf32>
    tpu.vector_store %arg10[%c0_185, %c0_186, %c0_187], %507 {strides = array<i32>} : memref<2x8x256xf32, #tpu.memory_space<vmem>>, vector<1x8x256xf32>,
    %c1_188 = arith.constant 1 : index
    %c0_189 = arith.constant 0 : index
    %c0_190 = arith.constant 0 : index
    %508 = vector.load %arg11[%c1_188, %c0_189, %c0_190] : memref<2x8x64xf32, #tpu.memory_space<vmem>>, vector<1x8x64xf32>
    %509 = vector.shape_cast %508 : vector<1x8x64xf32> to vector<8x64xf32>
    %c0_191 = arith.constant 0 : index
    %c0_192 = arith.constant 0 : index
    %510 = vector.load %arg6[%c0_191, %c0_192] : memref<64x256xf32, #tpu.memory_space<vmem>>, vector<64x256xf32>
    %cst_193 = arith.constant dense<0.000000e+00> : vector<8x256xf32>
    %511 = tpu.matmul %509, %510, %cst_193 {dimension_numbers = #tpu.dot_dimension_numbers<[1], [0], [0], [1], [0, 0, 1, 1], [], []>} : vector<8x64xf32>, vector<64x256xf32>, vector<8x256xf32> -> vector<8x256xf32>
    %c1_194 = arith.constant 1 : index
    %c0_195 = arith.constant 0 : index
    %c0_196 = arith.constant 0 : index
    %512 = vector.load %arg8[%c1_194, %c0_195, %c0_196] : memref<2x1x256xf32, #tpu.memory_space<vmem>>, vector<1x1x256xf32>
    %513 = vector.shape_cast %512 : vector<1x1x256xf32> to vector<1x256xf32>
    %514 = vector.broadcast %513 : vector<1x256xf32> to vector<8x256xf32>
    %515 = arith.addf %511, %514 : vector<8x256xf32>
    %c1_197 = arith.constant 1 : index
    %c0_198 = arith.constant 0 : index
    %c0_199 = arith.constant 0 : index
    %516 = vector.load %arg10[%c1_197, %c0_198, %c0_199] : memref<2x8x256xf32, #tpu.memory_space<vmem>>, vector<1x8x256xf32>
    %517 = vector.shape_cast %516 : vector<1x8x256xf32> to vector<8x256xf32>
    %518 = vector.shape_cast %515 : vector<8x256xf32> to vector<1x8x256xf32>
    tpu.vector_store %arg10[%c1_197, %c0_198, %c0_199], %518 {strides = array<i32>} : memref<2x8x256xf32, #tpu.memory_space<vmem>>, vector<1x8x256xf32>,
    %c1_200 = arith.constant 1 : index
    %c0_201 = arith.constant 0 : index
    %c0_202 = arith.constant 0 : index
    %519 = vector.load %arg7[%c1_200, %c0_201, %c0_202] : memref<2x64x256xf32, #tpu.memory_space<vmem>>, vector<1x64x256xf32>
    %520 = vector.shape_cast %519 : vector<1x64x256xf32> to vector<64x256xf32>
    %cst_203 = arith.constant 0.000000e+00 : f32
    %521 = vector.broadcast %cst_203 : f32 to vector<2x64xf32>
    %cst_204 = arith.constant 0.000000e+00 : f32
    %522 = vector.broadcast %cst_204 : f32 to vector<2x64xf32>
    %cst_205 = arith.constant 0.000000e+00 : f32
    %523 = vector.broadcast %cst_205 : f32 to vector<2x64xf32>
    %c0_206 = arith.constant 0 : index
    %c0_207 = arith.constant 0 : index
    %c0_208 = arith.constant 0 : index
    %524 = vector.load %arg10[%c0_206, %c0_207, %c0_208] : memref<2x8x256xf32, #tpu.memory_space<vmem>>, vector<2x1x256xf32>
    %525 = vector.shape_cast %524 : vector<2x1x256xf32> to vector<2x256xf32>
    %c0_209 = arith.constant 0 : index
    %c7_210 = arith.constant 7 : index
    %c0_211 = arith.constant 0 : index
    %526 = vector.load %arg10[%c0_209, %c7_210, %c0_211] : memref<2x8x256xf32, #tpu.memory_space<vmem>>, vector<2x1x256xf32>
    %527 = vector.shape_cast %526 : vector<2x1x256xf32> to vector<2x256xf32>
    %528 = vector.shape_cast %30 : vector<1x256xi1> to vector<1x256xi1>
    %529 = vector.broadcast %528 : vector<1x256xi1> to vector<2x256xi1>
    %530 = arith.select %529, %525, %527 : vector<2x256xi1>, vector<2x256xf32>
    %cst_212 = arith.constant dense<0.000000e+00> : vector<2x256xf32>
    %531 = tpu.matmul %521, %520, %cst_212 {dimension_numbers = #tpu.dot_dimension_numbers<[1], [0], [0], [1], [0, 0, 1, 1], [], []>} : vector<2x64xf32>, vector<64x256xf32>, vector<2x256xf32> -> vector<2x256xf32>
    %532 = arith.addf %530, %531 : vector<2x256xf32>
    %533 = arith.negf %532 : vector<2x256xf32>
    %534 = math.exp %533 : vector<2x256xf32>
    %cst_213 = arith.constant 1.000000e+00 : f32
    %535 = vector.broadcast %cst_213 : f32 to vector<2x256xf32>
    %536 = arith.addf %535, %534 : vector<2x256xf32>
    %537 = arith.divf %535, %536 : vector<2x256xf32>
    %538 = math.tanh %532 : vector<2x256xf32>
    %539 = vector.extract_strided_slice %537 {offsets = [0, 0], sizes = [2, 64], strides = [1, 1]} : vector<2x256xf32> to vector<2x64xf32>
    %540 = vector.extract_strided_slice %537 {offsets = [0, 64], sizes = [2, 64], strides = [1, 1]} : vector<2x256xf32> to vector<2x64xf32>
    %541 = vector.extract_strided_slice %538 {offsets = [0, 128], sizes = [2, 64], strides = [1, 1]} : vector<2x256xf32> to vector<2x64xf32>
    %542 = vector.extract_strided_slice %537 {offsets = [0, 192], sizes = [2, 64], strides = [1, 1]} : vector<2x256xf32> to vector<2x64xf32>
    %543 = arith.mulf %540, %522 : vector<2x64xf32>
    %544 = arith.mulf %539, %541 : vector<2x64xf32>
    %545 = arith.addf %543, %544 : vector<2x64xf32>
    %546 = math.tanh %545 : vector<2x64xf32>
    %547 = arith.mulf %542, %546 : vector<2x64xf32>
    %cst_214 = arith.constant 0.000000e+00 : f32
    %cst_215 = arith.constant 7.000000e+00 : f32
    %548 = vector.broadcast %cst_214 : f32 to vector<1x64xf32>
    %549 = vector.broadcast %cst_215 : f32 to vector<1x64xf32>
    %550 = arith.select %25, %548, %549 : vector<1x64xi1>, vector<1x64xf32>
    %551 = vector.broadcast %31 : vector<2x1xf32> to vector<2x64xf32>
    %552 = vector.broadcast %550 : vector<1x64xf32> to vector<2x64xf32>
    %553 = arith.cmpf ogt, %551, %552 : vector<2x64xf32>
    %554 = arith.select %553, %547, %521 : vector<2x64xi1>, vector<2x64xf32>
    %555 = arith.select %553, %545, %522 : vector<2x64xi1>, vector<2x64xf32>
    %cst_216 = arith.constant 0.000000e+00 : f32
    %556 = vector.broadcast %cst_216 : f32 to vector<2x64xf32>
    %557 = arith.select %553, %547, %556 : vector<2x64xi1>, vector<2x64xf32>
    %558 = vector.extract_strided_slice %22 {offsets = [0, 0, 0], sizes = [2, 1, 1], strides = [1, 1, 1]} : vector<2x8x1xf32> to vector<2x1x1xf32>
    %559 = vector.shape_cast %558 : vector<2x1x1xf32> to vector<2x1xf32>
    %560 = vector.extract_strided_slice %22 {offsets = [0, 7, 0], sizes = [2, 1, 1], strides = [1, 1, 1]} : vector<2x8x1xf32> to vector<2x1x1xf32>
    %561 = vector.shape_cast %560 : vector<2x1x1xf32> to vector<2x1xf32>
    %562 = vector.shape_cast %25 : vector<1x64xi1> to vector<1x64xi1>
    %563 = vector.broadcast %562 : vector<1x64xi1> to vector<2x64xi1>
    %564 = vector.shape_cast %559 : vector<2x1xf32> to vector<2x1xf32>
    %565 = vector.broadcast %564 : vector<2x1xf32> to vector<2x64xf32>
    %566 = vector.shape_cast %561 : vector<2x1xf32> to vector<2x1xf32>
    %567 = vector.broadcast %566 : vector<2x1xf32> to vector<2x64xf32>
    %568 = arith.select %563, %565, %567 : vector<2x64xi1>, vector<2x64xf32>
    %569 = arith.mulf %568, %557 : vector<2x64xf32>
    %570 = arith.addf %523, %569 : vector<2x64xf32>
    %c0_217 = arith.constant 0 : index
    %c1_218 = arith.constant 1 : index
    %c0_219 = arith.constant 0 : index
    %571 = vector.load %arg10[%c0_217, %c1_218, %c0_219] : memref<2x8x256xf32, #tpu.memory_space<vmem>>, vector<2x1x256xf32>
    %572 = vector.shape_cast %571 : vector<2x1x256xf32> to vector<2x256xf32>
    %c0_220 = arith.constant 0 : index
    %c6_221 = arith.constant 6 : index
    %c0_222 = arith.constant 0 : index
    %573 = vector.load %arg10[%c0_220, %c6_221, %c0_222] : memref<2x8x256xf32, #tpu.memory_space<vmem>>, vector<2x1x256xf32>
    %574 = vector.shape_cast %573 : vector<2x1x256xf32> to vector<2x256xf32>
    %575 = vector.shape_cast %30 : vector<1x256xi1> to vector<1x256xi1>
    %576 = vector.broadcast %575 : vector<1x256xi1> to vector<2x256xi1>
    %577 = arith.select %576, %572, %574 : vector<2x256xi1>, vector<2x256xf32>
    %cst_223 = arith.constant dense<0.000000e+00> : vector<2x256xf32>
    %578 = tpu.matmul %554, %520, %cst_223 {dimension_numbers = #tpu.dot_dimension_numbers<[1], [0], [0], [1], [0, 0, 1, 1], [], []>} : vector<2x64xf32>, vector<64x256xf32>, vector<2x256xf32> -> vector<2x256xf32>
    %579 = arith.addf %577, %578 : vector<2x256xf32>
    %580 = arith.negf %579 : vector<2x256xf32>
    %581 = math.exp %580 : vector<2x256xf32>
    %cst_224 = arith.constant 1.000000e+00 : f32
    %582 = vector.broadcast %cst_224 : f32 to vector<2x256xf32>
    %583 = arith.addf %582, %581 : vector<2x256xf32>
    %584 = arith.divf %582, %583 : vector<2x256xf32>
    %585 = math.tanh %579 : vector<2x256xf32>
    %586 = vector.extract_strided_slice %584 {offsets = [0, 0], sizes = [2, 64], strides = [1, 1]} : vector<2x256xf32> to vector<2x64xf32>
    %587 = vector.extract_strided_slice %584 {offsets = [0, 64], sizes = [2, 64], strides = [1, 1]} : vector<2x256xf32> to vector<2x64xf32>
    %588 = vector.extract_strided_slice %585 {offsets = [0, 128], sizes = [2, 64], strides = [1, 1]} : vector<2x256xf32> to vector<2x64xf32>
    %589 = vector.extract_strided_slice %584 {offsets = [0, 192], sizes = [2, 64], strides = [1, 1]} : vector<2x256xf32> to vector<2x64xf32>
    %590 = arith.mulf %587, %555 : vector<2x64xf32>
    %591 = arith.mulf %586, %588 : vector<2x64xf32>
    %592 = arith.addf %590, %591 : vector<2x64xf32>
    %593 = math.tanh %592 : vector<2x64xf32>
    %594 = arith.mulf %589, %593 : vector<2x64xf32>
    %cst_225 = arith.constant 1.000000e+00 : f32
    %cst_226 = arith.constant 6.000000e+00 : f32
    %595 = vector.broadcast %cst_225 : f32 to vector<1x64xf32>
    %596 = vector.broadcast %cst_226 : f32 to vector<1x64xf32>
    %597 = arith.select %25, %595, %596 : vector<1x64xi1>, vector<1x64xf32>
    %598 = vector.broadcast %31 : vector<2x1xf32> to vector<2x64xf32>
    %599 = vector.broadcast %597 : vector<1x64xf32> to vector<2x64xf32>
    %600 = arith.cmpf ogt, %598, %599 : vector<2x64xf32>
    %601 = arith.select %600, %594, %554 : vector<2x64xi1>, vector<2x64xf32>
    %602 = arith.select %600, %592, %555 : vector<2x64xi1>, vector<2x64xf32>
    %cst_227 = arith.constant 0.000000e+00 : f32
    %603 = vector.broadcast %cst_227 : f32 to vector<2x64xf32>
    %604 = arith.select %600, %594, %603 : vector<2x64xi1>, vector<2x64xf32>
    %605 = vector.extract_strided_slice %22 {offsets = [0, 1, 0], sizes = [2, 1, 1], strides = [1, 1, 1]} : vector<2x8x1xf32> to vector<2x1x1xf32>
    %606 = vector.shape_cast %605 : vector<2x1x1xf32> to vector<2x1xf32>
    %607 = vector.extract_strided_slice %22 {offsets = [0, 6, 0], sizes = [2, 1, 1], strides = [1, 1, 1]} : vector<2x8x1xf32> to vector<2x1x1xf32>
    %608 = vector.shape_cast %607 : vector<2x1x1xf32> to vector<2x1xf32>
    %609 = vector.shape_cast %25 : vector<1x64xi1> to vector<1x64xi1>
    %610 = vector.broadcast %609 : vector<1x64xi1> to vector<2x64xi1>
    %611 = vector.shape_cast %606 : vector<2x1xf32> to vector<2x1xf32>
    %612 = vector.broadcast %611 : vector<2x1xf32> to vector<2x64xf32>
    %613 = vector.shape_cast %608 : vector<2x1xf32> to vector<2x1xf32>
    %614 = vector.broadcast %613 : vector<2x1xf32> to vector<2x64xf32>
    %615 = arith.select %610, %612, %614 : vector<2x64xi1>, vector<2x64xf32>
    %616 = arith.mulf %615, %604 : vector<2x64xf32>
    %617 = arith.addf %570, %616 : vector<2x64xf32>
    %c0_228 = arith.constant 0 : index
    %c2_229 = arith.constant 2 : index
    %c0_230 = arith.constant 0 : index
    %618 = vector.load %arg10[%c0_228, %c2_229, %c0_230] : memref<2x8x256xf32, #tpu.memory_space<vmem>>, vector<2x1x256xf32>
    %619 = vector.shape_cast %618 : vector<2x1x256xf32> to vector<2x256xf32>
    %c0_231 = arith.constant 0 : index
    %c5_232 = arith.constant 5 : index
    %c0_233 = arith.constant 0 : index
    %620 = vector.load %arg10[%c0_231, %c5_232, %c0_233] : memref<2x8x256xf32, #tpu.memory_space<vmem>>, vector<2x1x256xf32>
    %621 = vector.shape_cast %620 : vector<2x1x256xf32> to vector<2x256xf32>
    %622 = vector.shape_cast %30 : vector<1x256xi1> to vector<1x256xi1>
    %623 = vector.broadcast %622 : vector<1x256xi1> to vector<2x256xi1>
    %624 = arith.select %623, %619, %621 : vector<2x256xi1>, vector<2x256xf32>
    %cst_234 = arith.constant dense<0.000000e+00> : vector<2x256xf32>
    %625 = tpu.matmul %601, %520, %cst_234 {dimension_numbers = #tpu.dot_dimension_numbers<[1], [0], [0], [1], [0, 0, 1, 1], [], []>} : vector<2x64xf32>, vector<64x256xf32>, vector<2x256xf32> -> vector<2x256xf32>
    %626 = arith.addf %624, %625 : vector<2x256xf32>
    %627 = arith.negf %626 : vector<2x256xf32>
    %628 = math.exp %627 : vector<2x256xf32>
    %cst_235 = arith.constant 1.000000e+00 : f32
    %629 = vector.broadcast %cst_235 : f32 to vector<2x256xf32>
    %630 = arith.addf %629, %628 : vector<2x256xf32>
    %631 = arith.divf %629, %630 : vector<2x256xf32>
    %632 = math.tanh %626 : vector<2x256xf32>
    %633 = vector.extract_strided_slice %631 {offsets = [0, 0], sizes = [2, 64], strides = [1, 1]} : vector<2x256xf32> to vector<2x64xf32>
    %634 = vector.extract_strided_slice %631 {offsets = [0, 64], sizes = [2, 64], strides = [1, 1]} : vector<2x256xf32> to vector<2x64xf32>
    %635 = vector.extract_strided_slice %632 {offsets = [0, 128], sizes = [2, 64], strides = [1, 1]} : vector<2x256xf32> to vector<2x64xf32>
    %636 = vector.extract_strided_slice %631 {offsets = [0, 192], sizes = [2, 64], strides = [1, 1]} : vector<2x256xf32> to vector<2x64xf32>
    %637 = arith.mulf %634, %602 : vector<2x64xf32>
    %638 = arith.mulf %633, %635 : vector<2x64xf32>
    %639 = arith.addf %637, %638 : vector<2x64xf32>
    %640 = math.tanh %639 : vector<2x64xf32>
    %641 = arith.mulf %636, %640 : vector<2x64xf32>
    %cst_236 = arith.constant 2.000000e+00 : f32
    %cst_237 = arith.constant 5.000000e+00 : f32
    %642 = vector.broadcast %cst_236 : f32 to vector<1x64xf32>
    %643 = vector.broadcast %cst_237 : f32 to vector<1x64xf32>
    %644 = arith.select %25, %642, %643 : vector<1x64xi1>, vector<1x64xf32>
    %645 = vector.broadcast %31 : vector<2x1xf32> to vector<2x64xf32>
    %646 = vector.broadcast %644 : vector<1x64xf32> to vector<2x64xf32>
    %647 = arith.cmpf ogt, %645, %646 : vector<2x64xf32>
    %648 = arith.select %647, %641, %601 : vector<2x64xi1>, vector<2x64xf32>
    %649 = arith.select %647, %639, %602 : vector<2x64xi1>, vector<2x64xf32>
    %cst_238 = arith.constant 0.000000e+00 : f32
    %650 = vector.broadcast %cst_238 : f32 to vector<2x64xf32>
    %651 = arith.select %647, %641, %650 : vector<2x64xi1>, vector<2x64xf32>
    %652 = vector.extract_strided_slice %22 {offsets = [0, 2, 0], sizes = [2, 1, 1], strides = [1, 1, 1]} : vector<2x8x1xf32> to vector<2x1x1xf32>
    %653 = vector.shape_cast %652 : vector<2x1x1xf32> to vector<2x1xf32>
    %654 = vector.extract_strided_slice %22 {offsets = [0, 5, 0], sizes = [2, 1, 1], strides = [1, 1, 1]} : vector<2x8x1xf32> to vector<2x1x1xf32>
    %655 = vector.shape_cast %654 : vector<2x1x1xf32> to vector<2x1xf32>
    %656 = vector.shape_cast %25 : vector<1x64xi1> to vector<1x64xi1>
    %657 = vector.broadcast %656 : vector<1x64xi1> to vector<2x64xi1>
    %658 = vector.shape_cast %653 : vector<2x1xf32> to vector<2x1xf32>
    %659 = vector.broadcast %658 : vector<2x1xf32> to vector<2x64xf32>
    %660 = vector.shape_cast %655 : vector<2x1xf32> to vector<2x1xf32>
    %661 = vector.broadcast %660 : vector<2x1xf32> to vector<2x64xf32>
    %662 = arith.select %657, %659, %661 : vector<2x64xi1>, vector<2x64xf32>
    %663 = arith.mulf %662, %651 : vector<2x64xf32>
    %664 = arith.addf %617, %663 : vector<2x64xf32>
    %c0_239 = arith.constant 0 : index
    %c3_240 = arith.constant 3 : index
    %c0_241 = arith.constant 0 : index
    %665 = vector.load %arg10[%c0_239, %c3_240, %c0_241] : memref<2x8x256xf32, #tpu.memory_space<vmem>>, vector<2x1x256xf32>
    %666 = vector.shape_cast %665 : vector<2x1x256xf32> to vector<2x256xf32>
    %c0_242 = arith.constant 0 : index
    %c4_243 = arith.constant 4 : index
    %c0_244 = arith.constant 0 : index
    %667 = vector.load %arg10[%c0_242, %c4_243, %c0_244] : memref<2x8x256xf32, #tpu.memory_space<vmem>>, vector<2x1x256xf32>
    %668 = vector.shape_cast %667 : vector<2x1x256xf32> to vector<2x256xf32>
    %669 = vector.shape_cast %30 : vector<1x256xi1> to vector<1x256xi1>
    %670 = vector.broadcast %669 : vector<1x256xi1> to vector<2x256xi1>
    %671 = arith.select %670, %666, %668 : vector<2x256xi1>, vector<2x256xf32>
    %cst_245 = arith.constant dense<0.000000e+00> : vector<2x256xf32>
    %672 = tpu.matmul %648, %520, %cst_245 {dimension_numbers = #tpu.dot_dimension_numbers<[1], [0], [0], [1], [0, 0, 1, 1], [], []>} : vector<2x64xf32>, vector<64x256xf32>, vector<2x256xf32> -> vector<2x256xf32>
    %673 = arith.addf %671, %672 : vector<2x256xf32>
    %674 = arith.negf %673 : vector<2x256xf32>
    %675 = math.exp %674 : vector<2x256xf32>
    %cst_246 = arith.constant 1.000000e+00 : f32
    %676 = vector.broadcast %cst_246 : f32 to vector<2x256xf32>
    %677 = arith.addf %676, %675 : vector<2x256xf32>
    %678 = arith.divf %676, %677 : vector<2x256xf32>
    %679 = math.tanh %673 : vector<2x256xf32>
    %680 = vector.extract_strided_slice %678 {offsets = [0, 0], sizes = [2, 64], strides = [1, 1]} : vector<2x256xf32> to vector<2x64xf32>
    %681 = vector.extract_strided_slice %678 {offsets = [0, 64], sizes = [2, 64], strides = [1, 1]} : vector<2x256xf32> to vector<2x64xf32>
    %682 = vector.extract_strided_slice %679 {offsets = [0, 128], sizes = [2, 64], strides = [1, 1]} : vector<2x256xf32> to vector<2x64xf32>
    %683 = vector.extract_strided_slice %678 {offsets = [0, 192], sizes = [2, 64], strides = [1, 1]} : vector<2x256xf32> to vector<2x64xf32>
    %684 = arith.mulf %681, %649 : vector<2x64xf32>
    %685 = arith.mulf %680, %682 : vector<2x64xf32>
    %686 = arith.addf %684, %685 : vector<2x64xf32>
    %687 = math.tanh %686 : vector<2x64xf32>
    %688 = arith.mulf %683, %687 : vector<2x64xf32>
    %cst_247 = arith.constant 3.000000e+00 : f32
    %cst_248 = arith.constant 4.000000e+00 : f32
    %689 = vector.broadcast %cst_247 : f32 to vector<1x64xf32>
    %690 = vector.broadcast %cst_248 : f32 to vector<1x64xf32>
    %691 = arith.select %25, %689, %690 : vector<1x64xi1>, vector<1x64xf32>
    %692 = vector.broadcast %31 : vector<2x1xf32> to vector<2x64xf32>
    %693 = vector.broadcast %691 : vector<1x64xf32> to vector<2x64xf32>
    %694 = arith.cmpf ogt, %692, %693 : vector<2x64xf32>
    %695 = arith.select %694, %688, %648 : vector<2x64xi1>, vector<2x64xf32>
    %696 = arith.select %694, %686, %649 : vector<2x64xi1>, vector<2x64xf32>
    %cst_249 = arith.constant 0.000000e+00 : f32
    %697 = vector.broadcast %cst_249 : f32 to vector<2x64xf32>
    %698 = arith.select %694, %688, %697 : vector<2x64xi1>, vector<2x64xf32>
    %699 = vector.extract_strided_slice %22 {offsets = [0, 3, 0], sizes = [2, 1, 1], strides = [1, 1, 1]} : vector<2x8x1xf32> to vector<2x1x1xf32>
    %700 = vector.shape_cast %699 : vector<2x1x1xf32> to vector<2x1xf32>
    %701 = vector.extract_strided_slice %22 {offsets = [0, 4, 0], sizes = [2, 1, 1], strides = [1, 1, 1]} : vector<2x8x1xf32> to vector<2x1x1xf32>
    %702 = vector.shape_cast %701 : vector<2x1x1xf32> to vector<2x1xf32>
    %703 = vector.shape_cast %25 : vector<1x64xi1> to vector<1x64xi1>
    %704 = vector.broadcast %703 : vector<1x64xi1> to vector<2x64xi1>
    %705 = vector.shape_cast %700 : vector<2x1xf32> to vector<2x1xf32>
    %706 = vector.broadcast %705 : vector<2x1xf32> to vector<2x64xf32>
    %707 = vector.shape_cast %702 : vector<2x1xf32> to vector<2x1xf32>
    %708 = vector.broadcast %707 : vector<2x1xf32> to vector<2x64xf32>
    %709 = arith.select %704, %706, %708 : vector<2x64xi1>, vector<2x64xf32>
    %710 = arith.mulf %709, %698 : vector<2x64xf32>
    %711 = arith.addf %664, %710 : vector<2x64xf32>
    %c0_250 = arith.constant 0 : index
    %c4_251 = arith.constant 4 : index
    %c0_252 = arith.constant 0 : index
    %712 = vector.load %arg10[%c0_250, %c4_251, %c0_252] : memref<2x8x256xf32, #tpu.memory_space<vmem>>, vector<2x1x256xf32>
    %713 = vector.shape_cast %712 : vector<2x1x256xf32> to vector<2x256xf32>
    %c0_253 = arith.constant 0 : index
    %c3_254 = arith.constant 3 : index
    %c0_255 = arith.constant 0 : index
    %714 = vector.load %arg10[%c0_253, %c3_254, %c0_255] : memref<2x8x256xf32, #tpu.memory_space<vmem>>, vector<2x1x256xf32>
    %715 = vector.shape_cast %714 : vector<2x1x256xf32> to vector<2x256xf32>
    %716 = vector.shape_cast %30 : vector<1x256xi1> to vector<1x256xi1>
    %717 = vector.broadcast %716 : vector<1x256xi1> to vector<2x256xi1>
    %718 = arith.select %717, %713, %715 : vector<2x256xi1>, vector<2x256xf32>
    %cst_256 = arith.constant dense<0.000000e+00> : vector<2x256xf32>
    %719 = tpu.matmul %695, %520, %cst_256 {dimension_numbers = #tpu.dot_dimension_numbers<[1], [0], [0], [1], [0, 0, 1, 1], [], []>} : vector<2x64xf32>, vector<64x256xf32>, vector<2x256xf32> -> vector<2x256xf32>
    %720 = arith.addf %718, %719 : vector<2x256xf32>
    %721 = arith.negf %720 : vector<2x256xf32>
    %722 = math.exp %721 : vector<2x256xf32>
    %cst_257 = arith.constant 1.000000e+00 : f32
    %723 = vector.broadcast %cst_257 : f32 to vector<2x256xf32>
    %724 = arith.addf %723, %722 : vector<2x256xf32>
    %725 = arith.divf %723, %724 : vector<2x256xf32>
    %726 = math.tanh %720 : vector<2x256xf32>
    %727 = vector.extract_strided_slice %725 {offsets = [0, 0], sizes = [2, 64], strides = [1, 1]} : vector<2x256xf32> to vector<2x64xf32>
    %728 = vector.extract_strided_slice %725 {offsets = [0, 64], sizes = [2, 64], strides = [1, 1]} : vector<2x256xf32> to vector<2x64xf32>
    %729 = vector.extract_strided_slice %726 {offsets = [0, 128], sizes = [2, 64], strides = [1, 1]} : vector<2x256xf32> to vector<2x64xf32>
    %730 = vector.extract_strided_slice %725 {offsets = [0, 192], sizes = [2, 64], strides = [1, 1]} : vector<2x256xf32> to vector<2x64xf32>
    %731 = arith.mulf %728, %696 : vector<2x64xf32>
    %732 = arith.mulf %727, %729 : vector<2x64xf32>
    %733 = arith.addf %731, %732 : vector<2x64xf32>
    %734 = math.tanh %733 : vector<2x64xf32>
    %735 = arith.mulf %730, %734 : vector<2x64xf32>
    %cst_258 = arith.constant 4.000000e+00 : f32
    %cst_259 = arith.constant 3.000000e+00 : f32
    %736 = vector.broadcast %cst_258 : f32 to vector<1x64xf32>
    %737 = vector.broadcast %cst_259 : f32 to vector<1x64xf32>
    %738 = arith.select %25, %736, %737 : vector<1x64xi1>, vector<1x64xf32>
    %739 = vector.broadcast %31 : vector<2x1xf32> to vector<2x64xf32>
    %740 = vector.broadcast %738 : vector<1x64xf32> to vector<2x64xf32>
    %741 = arith.cmpf ogt, %739, %740 : vector<2x64xf32>
    %742 = arith.select %741, %735, %695 : vector<2x64xi1>, vector<2x64xf32>
    %743 = arith.select %741, %733, %696 : vector<2x64xi1>, vector<2x64xf32>
    %cst_260 = arith.constant 0.000000e+00 : f32
    %744 = vector.broadcast %cst_260 : f32 to vector<2x64xf32>
    %745 = arith.select %741, %735, %744 : vector<2x64xi1>, vector<2x64xf32>
    %746 = vector.extract_strided_slice %22 {offsets = [0, 4, 0], sizes = [2, 1, 1], strides = [1, 1, 1]} : vector<2x8x1xf32> to vector<2x1x1xf32>
    %747 = vector.shape_cast %746 : vector<2x1x1xf32> to vector<2x1xf32>
    %748 = vector.extract_strided_slice %22 {offsets = [0, 3, 0], sizes = [2, 1, 1], strides = [1, 1, 1]} : vector<2x8x1xf32> to vector<2x1x1xf32>
    %749 = vector.shape_cast %748 : vector<2x1x1xf32> to vector<2x1xf32>
    %750 = vector.shape_cast %25 : vector<1x64xi1> to vector<1x64xi1>
    %751 = vector.broadcast %750 : vector<1x64xi1> to vector<2x64xi1>
    %752 = vector.shape_cast %747 : vector<2x1xf32> to vector<2x1xf32>
    %753 = vector.broadcast %752 : vector<2x1xf32> to vector<2x64xf32>
    %754 = vector.shape_cast %749 : vector<2x1xf32> to vector<2x1xf32>
    %755 = vector.broadcast %754 : vector<2x1xf32> to vector<2x64xf32>
    %756 = arith.select %751, %753, %755 : vector<2x64xi1>, vector<2x64xf32>
    %757 = arith.mulf %756, %745 : vector<2x64xf32>
    %758 = arith.addf %711, %757 : vector<2x64xf32>
    %c0_261 = arith.constant 0 : index
    %c5_262 = arith.constant 5 : index
    %c0_263 = arith.constant 0 : index
    %759 = vector.load %arg10[%c0_261, %c5_262, %c0_263] : memref<2x8x256xf32, #tpu.memory_space<vmem>>, vector<2x1x256xf32>
    %760 = vector.shape_cast %759 : vector<2x1x256xf32> to vector<2x256xf32>
    %c0_264 = arith.constant 0 : index
    %c2_265 = arith.constant 2 : index
    %c0_266 = arith.constant 0 : index
    %761 = vector.load %arg10[%c0_264, %c2_265, %c0_266] : memref<2x8x256xf32, #tpu.memory_space<vmem>>, vector<2x1x256xf32>
    %762 = vector.shape_cast %761 : vector<2x1x256xf32> to vector<2x256xf32>
    %763 = vector.shape_cast %30 : vector<1x256xi1> to vector<1x256xi1>
    %764 = vector.broadcast %763 : vector<1x256xi1> to vector<2x256xi1>
    %765 = arith.select %764, %760, %762 : vector<2x256xi1>, vector<2x256xf32>
    %cst_267 = arith.constant dense<0.000000e+00> : vector<2x256xf32>
    %766 = tpu.matmul %742, %520, %cst_267 {dimension_numbers = #tpu.dot_dimension_numbers<[1], [0], [0], [1], [0, 0, 1, 1], [], []>} : vector<2x64xf32>, vector<64x256xf32>, vector<2x256xf32> -> vector<2x256xf32>
    %767 = arith.addf %765, %766 : vector<2x256xf32>
    %768 = arith.negf %767 : vector<2x256xf32>
    %769 = math.exp %768 : vector<2x256xf32>
    %cst_268 = arith.constant 1.000000e+00 : f32
    %770 = vector.broadcast %cst_268 : f32 to vector<2x256xf32>
    %771 = arith.addf %770, %769 : vector<2x256xf32>
    %772 = arith.divf %770, %771 : vector<2x256xf32>
    %773 = math.tanh %767 : vector<2x256xf32>
    %774 = vector.extract_strided_slice %772 {offsets = [0, 0], sizes = [2, 64], strides = [1, 1]} : vector<2x256xf32> to vector<2x64xf32>
    %775 = vector.extract_strided_slice %772 {offsets = [0, 64], sizes = [2, 64], strides = [1, 1]} : vector<2x256xf32> to vector<2x64xf32>
    %776 = vector.extract_strided_slice %773 {offsets = [0, 128], sizes = [2, 64], strides = [1, 1]} : vector<2x256xf32> to vector<2x64xf32>
    %777 = vector.extract_strided_slice %772 {offsets = [0, 192], sizes = [2, 64], strides = [1, 1]} : vector<2x256xf32> to vector<2x64xf32>
    %778 = arith.mulf %775, %743 : vector<2x64xf32>
    %779 = arith.mulf %774, %776 : vector<2x64xf32>
    %780 = arith.addf %778, %779 : vector<2x64xf32>
    %781 = math.tanh %780 : vector<2x64xf32>
    %782 = arith.mulf %777, %781 : vector<2x64xf32>
    %cst_269 = arith.constant 5.000000e+00 : f32
    %cst_270 = arith.constant 2.000000e+00 : f32
    %783 = vector.broadcast %cst_269 : f32 to vector<1x64xf32>
    %784 = vector.broadcast %cst_270 : f32 to vector<1x64xf32>
    %785 = arith.select %25, %783, %784 : vector<1x64xi1>, vector<1x64xf32>
    %786 = vector.broadcast %31 : vector<2x1xf32> to vector<2x64xf32>
    %787 = vector.broadcast %785 : vector<1x64xf32> to vector<2x64xf32>
    %788 = arith.cmpf ogt, %786, %787 : vector<2x64xf32>
    %789 = arith.select %788, %782, %742 : vector<2x64xi1>, vector<2x64xf32>
    %790 = arith.select %788, %780, %743 : vector<2x64xi1>, vector<2x64xf32>
    %cst_271 = arith.constant 0.000000e+00 : f32
    %791 = vector.broadcast %cst_271 : f32 to vector<2x64xf32>
    %792 = arith.select %788, %782, %791 : vector<2x64xi1>, vector<2x64xf32>
    %793 = vector.extract_strided_slice %22 {offsets = [0, 5, 0], sizes = [2, 1, 1], strides = [1, 1, 1]} : vector<2x8x1xf32> to vector<2x1x1xf32>
    %794 = vector.shape_cast %793 : vector<2x1x1xf32> to vector<2x1xf32>
    %795 = vector.extract_strided_slice %22 {offsets = [0, 2, 0], sizes = [2, 1, 1], strides = [1, 1, 1]} : vector<2x8x1xf32> to vector<2x1x1xf32>
    %796 = vector.shape_cast %795 : vector<2x1x1xf32> to vector<2x1xf32>
    %797 = vector.shape_cast %25 : vector<1x64xi1> to vector<1x64xi1>
    %798 = vector.broadcast %797 : vector<1x64xi1> to vector<2x64xi1>
    %799 = vector.shape_cast %794 : vector<2x1xf32> to vector<2x1xf32>
    %800 = vector.broadcast %799 : vector<2x1xf32> to vector<2x64xf32>
    %801 = vector.shape_cast %796 : vector<2x1xf32> to vector<2x1xf32>
    %802 = vector.broadcast %801 : vector<2x1xf32> to vector<2x64xf32>
    %803 = arith.select %798, %800, %802 : vector<2x64xi1>, vector<2x64xf32>
    %804 = arith.mulf %803, %792 : vector<2x64xf32>
    %805 = arith.addf %758, %804 : vector<2x64xf32>
    %c0_272 = arith.constant 0 : index
    %c6_273 = arith.constant 6 : index
    %c0_274 = arith.constant 0 : index
    %806 = vector.load %arg10[%c0_272, %c6_273, %c0_274] : memref<2x8x256xf32, #tpu.memory_space<vmem>>, vector<2x1x256xf32>
    %807 = vector.shape_cast %806 : vector<2x1x256xf32> to vector<2x256xf32>
    %c0_275 = arith.constant 0 : index
    %c1_276 = arith.constant 1 : index
    %c0_277 = arith.constant 0 : index
    %808 = vector.load %arg10[%c0_275, %c1_276, %c0_277] : memref<2x8x256xf32, #tpu.memory_space<vmem>>, vector<2x1x256xf32>
    %809 = vector.shape_cast %808 : vector<2x1x256xf32> to vector<2x256xf32>
    %810 = vector.shape_cast %30 : vector<1x256xi1> to vector<1x256xi1>
    %811 = vector.broadcast %810 : vector<1x256xi1> to vector<2x256xi1>
    %812 = arith.select %811, %807, %809 : vector<2x256xi1>, vector<2x256xf32>
    %cst_278 = arith.constant dense<0.000000e+00> : vector<2x256xf32>
    %813 = tpu.matmul %789, %520, %cst_278 {dimension_numbers = #tpu.dot_dimension_numbers<[1], [0], [0], [1], [0, 0, 1, 1], [], []>} : vector<2x64xf32>, vector<64x256xf32>, vector<2x256xf32> -> vector<2x256xf32>
    %814 = arith.addf %812, %813 : vector<2x256xf32>
    %815 = arith.negf %814 : vector<2x256xf32>
    %816 = math.exp %815 : vector<2x256xf32>
    %cst_279 = arith.constant 1.000000e+00 : f32
    %817 = vector.broadcast %cst_279 : f32 to vector<2x256xf32>
    %818 = arith.addf %817, %816 : vector<2x256xf32>
    %819 = arith.divf %817, %818 : vector<2x256xf32>
    %820 = math.tanh %814 : vector<2x256xf32>
    %821 = vector.extract_strided_slice %819 {offsets = [0, 0], sizes = [2, 64], strides = [1, 1]} : vector<2x256xf32> to vector<2x64xf32>
    %822 = vector.extract_strided_slice %819 {offsets = [0, 64], sizes = [2, 64], strides = [1, 1]} : vector<2x256xf32> to vector<2x64xf32>
    %823 = vector.extract_strided_slice %820 {offsets = [0, 128], sizes = [2, 64], strides = [1, 1]} : vector<2x256xf32> to vector<2x64xf32>
    %824 = vector.extract_strided_slice %819 {offsets = [0, 192], sizes = [2, 64], strides = [1, 1]} : vector<2x256xf32> to vector<2x64xf32>
    %825 = arith.mulf %822, %790 : vector<2x64xf32>
    %826 = arith.mulf %821, %823 : vector<2x64xf32>
    %827 = arith.addf %825, %826 : vector<2x64xf32>
    %828 = math.tanh %827 : vector<2x64xf32>
    %829 = arith.mulf %824, %828 : vector<2x64xf32>
    %cst_280 = arith.constant 6.000000e+00 : f32
    %cst_281 = arith.constant 1.000000e+00 : f32
    %830 = vector.broadcast %cst_280 : f32 to vector<1x64xf32>
    %831 = vector.broadcast %cst_281 : f32 to vector<1x64xf32>
    %832 = arith.select %25, %830, %831 : vector<1x64xi1>, vector<1x64xf32>
    %833 = vector.broadcast %31 : vector<2x1xf32> to vector<2x64xf32>
    %834 = vector.broadcast %832 : vector<1x64xf32> to vector<2x64xf32>
    %835 = arith.cmpf ogt, %833, %834 : vector<2x64xf32>
    %836 = arith.select %835, %829, %789 : vector<2x64xi1>, vector<2x64xf32>
    %837 = arith.select %835, %827, %790 : vector<2x64xi1>, vector<2x64xf32>
    %cst_282 = arith.constant 0.000000e+00 : f32
    %838 = vector.broadcast %cst_282 : f32 to vector<2x64xf32>
    %839 = arith.select %835, %829, %838 : vector<2x64xi1>, vector<2x64xf32>
    %840 = vector.extract_strided_slice %22 {offsets = [0, 6, 0], sizes = [2, 1, 1], strides = [1, 1, 1]} : vector<2x8x1xf32> to vector<2x1x1xf32>
    %841 = vector.shape_cast %840 : vector<2x1x1xf32> to vector<2x1xf32>
    %842 = vector.extract_strided_slice %22 {offsets = [0, 1, 0], sizes = [2, 1, 1], strides = [1, 1, 1]} : vector<2x8x1xf32> to vector<2x1x1xf32>
    %843 = vector.shape_cast %842 : vector<2x1x1xf32> to vector<2x1xf32>
    %844 = vector.shape_cast %25 : vector<1x64xi1> to vector<1x64xi1>
    %845 = vector.broadcast %844 : vector<1x64xi1> to vector<2x64xi1>
    %846 = vector.shape_cast %841 : vector<2x1xf32> to vector<2x1xf32>
    %847 = vector.broadcast %846 : vector<2x1xf32> to vector<2x64xf32>
    %848 = vector.shape_cast %843 : vector<2x1xf32> to vector<2x1xf32>
    %849 = vector.broadcast %848 : vector<2x1xf32> to vector<2x64xf32>
    %850 = arith.select %845, %847, %849 : vector<2x64xi1>, vector<2x64xf32>
    %851 = arith.mulf %850, %839 : vector<2x64xf32>
    %852 = arith.addf %805, %851 : vector<2x64xf32>
    %c0_283 = arith.constant 0 : index
    %c7_284 = arith.constant 7 : index
    %c0_285 = arith.constant 0 : index
    %853 = vector.load %arg10[%c0_283, %c7_284, %c0_285] : memref<2x8x256xf32, #tpu.memory_space<vmem>>, vector<2x1x256xf32>
    %854 = vector.shape_cast %853 : vector<2x1x256xf32> to vector<2x256xf32>
    %c0_286 = arith.constant 0 : index
    %c0_287 = arith.constant 0 : index
    %c0_288 = arith.constant 0 : index
    %855 = vector.load %arg10[%c0_286, %c0_287, %c0_288] : memref<2x8x256xf32, #tpu.memory_space<vmem>>, vector<2x1x256xf32>
    %856 = vector.shape_cast %855 : vector<2x1x256xf32> to vector<2x256xf32>
    %857 = vector.shape_cast %30 : vector<1x256xi1> to vector<1x256xi1>
    %858 = vector.broadcast %857 : vector<1x256xi1> to vector<2x256xi1>
    %859 = arith.select %858, %854, %856 : vector<2x256xi1>, vector<2x256xf32>
    %cst_289 = arith.constant dense<0.000000e+00> : vector<2x256xf32>
    %860 = tpu.matmul %836, %520, %cst_289 {dimension_numbers = #tpu.dot_dimension_numbers<[1], [0], [0], [1], [0, 0, 1, 1], [], []>} : vector<2x64xf32>, vector<64x256xf32>, vector<2x256xf32> -> vector<2x256xf32>
    %861 = arith.addf %859, %860 : vector<2x256xf32>
    %862 = arith.negf %861 : vector<2x256xf32>
    %863 = math.exp %862 : vector<2x256xf32>
    %cst_290 = arith.constant 1.000000e+00 : f32
    %864 = vector.broadcast %cst_290 : f32 to vector<2x256xf32>
    %865 = arith.addf %864, %863 : vector<2x256xf32>
    %866 = arith.divf %864, %865 : vector<2x256xf32>
    %867 = math.tanh %861 : vector<2x256xf32>
    %868 = vector.extract_strided_slice %866 {offsets = [0, 0], sizes = [2, 64], strides = [1, 1]} : vector<2x256xf32> to vector<2x64xf32>
    %869 = vector.extract_strided_slice %866 {offsets = [0, 64], sizes = [2, 64], strides = [1, 1]} : vector<2x256xf32> to vector<2x64xf32>
    %870 = vector.extract_strided_slice %867 {offsets = [0, 128], sizes = [2, 64], strides = [1, 1]} : vector<2x256xf32> to vector<2x64xf32>
    %871 = vector.extract_strided_slice %866 {offsets = [0, 192], sizes = [2, 64], strides = [1, 1]} : vector<2x256xf32> to vector<2x64xf32>
    %872 = arith.mulf %869, %837 : vector<2x64xf32>
    %873 = arith.mulf %868, %870 : vector<2x64xf32>
    %874 = arith.addf %872, %873 : vector<2x64xf32>
    %875 = math.tanh %874 : vector<2x64xf32>
    %876 = arith.mulf %871, %875 : vector<2x64xf32>
    %cst_291 = arith.constant 7.000000e+00 : f32
    %cst_292 = arith.constant 0.000000e+00 : f32
    %877 = vector.broadcast %cst_291 : f32 to vector<1x64xf32>
    %878 = vector.broadcast %cst_292 : f32 to vector<1x64xf32>
    %879 = arith.select %25, %877, %878 : vector<1x64xi1>, vector<1x64xf32>
    %880 = vector.broadcast %31 : vector<2x1xf32> to vector<2x64xf32>
    %881 = vector.broadcast %879 : vector<1x64xf32> to vector<2x64xf32>
    %882 = arith.cmpf ogt, %880, %881 : vector<2x64xf32>
    %cst_293 = arith.constant 0.000000e+00 : f32
    %883 = vector.broadcast %cst_293 : f32 to vector<2x64xf32>
    %884 = arith.select %882, %876, %883 : vector<2x64xi1>, vector<2x64xf32>
    %885 = vector.extract_strided_slice %22 {offsets = [0, 7, 0], sizes = [2, 1, 1], strides = [1, 1, 1]} : vector<2x8x1xf32> to vector<2x1x1xf32>
    %886 = vector.shape_cast %885 : vector<2x1x1xf32> to vector<2x1xf32>
    %887 = vector.extract_strided_slice %22 {offsets = [0, 0, 0], sizes = [2, 1, 1], strides = [1, 1, 1]} : vector<2x8x1xf32> to vector<2x1x1xf32>
    %888 = vector.shape_cast %887 : vector<2x1x1xf32> to vector<2x1xf32>
    %889 = vector.shape_cast %25 : vector<1x64xi1> to vector<1x64xi1>
    %890 = vector.broadcast %889 : vector<1x64xi1> to vector<2x64xi1>
    %891 = vector.shape_cast %886 : vector<2x1xf32> to vector<2x1xf32>
    %892 = vector.broadcast %891 : vector<2x1xf32> to vector<2x64xf32>
    %893 = vector.shape_cast %888 : vector<2x1xf32> to vector<2x1xf32>
    %894 = vector.broadcast %893 : vector<2x1xf32> to vector<2x64xf32>
    %895 = arith.select %890, %892, %894 : vector<2x64xi1>, vector<2x64xf32>
    %896 = arith.mulf %895, %884 : vector<2x64xf32>
    %897 = arith.addf %852, %896 : vector<2x64xf32>
    %898 = tpu.concatenate %496, %897 in 1 : vector<2x64xf32>, vector<2x64xf32> -> vector<2x128xf32>
    %c0_294 = arith.constant 0 : index
    %c0_295 = arith.constant 0 : index
    %899 = vector.load %arg9[%c0_294, %c0_295] : memref<2x128xf32, #tpu.memory_space<vmem>>, vector<2x128xf32>
    tpu.vector_store %arg9[%c0_294, %c0_295], %898 {strides = array<i32>} : memref<2x128xf32, #tpu.memory_space<vmem>>, vector<2x128xf32>,
    return
  }
}

</mosaic_0001>

<bundles_post_ra>
// kernel: question_encoding_forward.1
= control target key start
LH: loop header
LB: loop body
LE: loop exit
PB: predicated region body
PF: predicated region fallthrough
CT: control target
= control target key end

     0   :  { %s5221_s0 = inlined_call_operand.vmem [shape: f32[2,8,16], index: 0, kind: input, shape index: {}]   ;;  %s5222_s1 = inlined_call_operand.vmem [shape: f32[2,8,1], index: 1, kind: input, shape index: {}]   ;;  %s5223_s2 = inlined_call_operand.vmem [shape: f32[2,1], index: 2, kind: input, shape index: {}]   ;;  %s5224_s3 = inlined_call_operand.hbm [shape: f32[1,1,16], index: 3, kind: input, shape index: {}]   ;;  %s5225_s4 = inlined_call_operand.<no memory space> [shape: f32[1,1,1], index: 4, kind: input, shape index: {}]   ;;  %s5226_s5 = inlined_call_operand.vmem [shape: f32[16,256], index: 5, kind: input, shape index: {}]   ;;  %s5227_s6 = inlined_call_operand.hbm [shape: f32[64,256], index: 6, kind: input, shape index: {}]   ;;  %s5228_s7 = inlined_call_operand.hbm [shape: f32[2,64,256], index: 7, kind: input, shape index: {}]   ;;  %s5229_s8 = inlined_call_operand.hbm [shape: f32[2,1,256], index: 8, kind: input, shape index: {}]   ;;  %s5230_s9 = inlined_call_operand.hbm [shape: f32[2,128], index: 9, kind: output, shape index: {}]  }
   0x1   :  { %v14_v0 = vstv %s5225_s4 }
   0x2   :  { %15 = vst [vmem:[#allocation4] sm:$0x1] %v14_v0 }
   0x3   :  { %16 = vsyncpa [#allocation6], 0 }
   0x4   :  { %17 = vsyncpa [#allocation9], 0 }
   0x5   :  { %18 = vsyncpa [#allocation12], 0 }
   0x6   :  { %19 = vsyncpa [#allocation7], 0  ;;  %s4180_s11 = smov [#allocation8]   ;;  %s4062_s15 = scalar_lea.hbm %s5227_s6, 2048 }
   0x7   :  { %s45_s12 = sshll.u32 %s4180_s11, 4  ;;  %p4063_p0 = scmp.ne.s32.totalorder %s5227_s6, %s4062_s15  ;;  %s46_s12 = int_to_ptr.vmem [resolvable:$true] %s45_s12 }
   0x8   :  { %p4066_p1 = scmp.lt.u32.totalorder %s4062_s15, %s5227_s6 }
   0xa   :  { %p4068_p2 = pnand %p4066_p1, %p4063_p0 }
   0xc   :  { %4071 = shalt.err (!%p4068_p2)
}
   0xd   :  { %s4072_s4 = scalar_lea.vmem %s46_s12, 2048  ;;  %p4077_p4 = scmp.lt.s32.totalorder %s46_s12, %s46_s12 }
   0xe   :  { %p4073_p3 = scmp.ne.s32.totalorder %s46_s12, %s4072_s4  ;;  %p4078_p5 = scmp.lt.s32.totalorder %s4072_s4, %s4072_s4 }
  0x10   :  { %p4079_p6 = por %p4078_p5, %p4077_p4 }
  0x12   :  { %p4080_p7 = pnand %p4079_p6, %p4073_p3 }
  0x14   :  { %4083 = shalt.err (!%p4080_p7)
}
  0x15   :  { %s4181_s20 = smov 256   ;;  %s4182_s21 = smov 16  }
  0x16   :  { %51 = dma.hbm_to_vmem [thread:$0]  %s5227_s6, 2048, %s46_s12, [#allocation9], %s4181_s20, %s4181_s20, %s4182_s21  }
  0x17   :  { %s4183_s24 = smov [#allocation5]   ;;  %s4184_s26 = smov [#allocation10]  }
  0x18   :  { %s32_s25 = sshll.u32 %s4183_s24, 4  ;;  %s57_s27 = sshll.u32 %s4184_s26, 4  ;;  %s33_s25 = int_to_ptr.vmem [resolvable:$true] %s32_s25  ;;  %s58_s27 = int_to_ptr.vmem [resolvable:$true] %s57_s27 }
  0x19   :  { %s4084_s30 = scalar_lea.hbm %s5224_s3, 16 }
  0x1a   :  { %p4085_p8 = scmp.ne.s32.totalorder %s5224_s3, %s4084_s30  ;;  %p4088_p9 = scmp.lt.u32.totalorder %s4084_s30, %s5224_s3 }
  0x1c   :  { %p4090_p10 = pnand %p4088_p9, %p4085_p8 }
  0x1e   :  { %4093 = shalt.err (!%p4090_p10)
}
  0x1f   :  { %s4094_s6 = scalar_lea.vmem %s33_s25, 16  ;;  %s4098_s12 = scalar_lea.vmem %s33_s25, 32 }
  0x20   :  { %p4095_p11 = scmp.ne.s32.totalorder %s33_s25, %s4094_s6  ;;  %p4099_p12 = scmp.lt.s32.totalorder %s33_s25, %s33_s25 }
  0x21   :  { %p4100_p13 = scmp.lt.s32.totalorder %s4098_s12, %s4094_s6 }
  0x23   :  { %p4101_p0 = por %p4100_p13, %p4099_p12 }
  0x25   :  { %p4102_p1 = pnand %p4101_p0, %p4095_p11 }
  0x27   :  { %4105 = shalt.err (!%p4102_p1)
}
  0x28   :  { %35 = dma.hbm_to_vmem [thread:$0]  %s5224_s3, 16, %s33_s25, [#allocation6]  }
  0x29   :  { %s4106_s19 = scalar_lea.hbm %s5228_s7, 4096 }
  0x2a   :  { %p4107_p2 = scmp.ne.s32.totalorder %s5228_s7, %s4106_s19  ;;  %p4110_p3 = scmp.lt.u32.totalorder %s4106_s19, %s5228_s7 }
  0x2c   :  { %p4112_p4 = pnand %p4110_p3, %p4107_p2 }
  0x2e   :  { %4115 = shalt.err (!%p4112_p4)
}
  0x2f   :  { %s4116_s26 = scalar_lea.vmem %s58_s27, 4096  ;;  %p4121_p6 = scmp.lt.s32.totalorder %s58_s27, %s58_s27 }
  0x30   :  { %p4117_p5 = scmp.ne.s32.totalorder %s58_s27, %s4116_s26  ;;  %p4122_p7 = scmp.lt.s32.totalorder %s4116_s26, %s4116_s26 }
  0x32   :  { %p4123_p8 = por %p4122_p7, %p4121_p6 }
  0x34   :  { %p4124_p9 = pnand %p4123_p8, %p4117_p5 }
  0x36   :  { %4127 = shalt.err (!%p4124_p9)
}
  0x37   :  { %63 = dma.hbm_to_vmem [thread:$0]  %s5228_s7, 4096, %s58_s27, [#allocation9], %s4181_s20, %s4181_s20, %s4182_s21  }
  0x38   :  { %s4185_s28 = smov [#allocation11]   ;;  %s4128_s11 = scalar_lea.hbm %s5229_s8, 64 }
  0x39   :  { %s69_s29 = sshll.u32 %s4185_s28, 4  ;;  %p4129_p10 = scmp.ne.s32.totalorder %s5229_s8, %s4128_s11  ;;  %s70_s29 = int_to_ptr.vmem [resolvable:$true] %s69_s29 }
  0x3a   :  { %p4132_p11 = scmp.lt.u32.totalorder %s4128_s11, %s5229_s8 }
  0x3c   :  { %p4134_p12 = pnand %p4132_p11, %p4129_p10 }
  0x3e   :  { %4137 = shalt.err (!%p4134_p12)
}
  0x3f   :  { %s4138_s15 = scalar_lea.vmem %s70_s29, 64  ;;  %p4143_p0 = scmp.lt.s32.totalorder %s70_s29, %s70_s29 }
  0x40   :  { %p4139_p13 = scmp.ne.s32.totalorder %s70_s29, %s4138_s15  ;;  %p4144_p1 = scmp.lt.s32.totalorder %s4138_s15, %s4138_s15 }
  0x42   :  { %p4145_p2 = por %p4144_p1, %p4143_p0 }
  0x44   :  { %p4146_p3 = pnand %p4145_p2, %p4139_p13 }
  0x46   :  { %4149 = shalt.err (!%p4146_p3)
}
  0x47   :  { %s4186_s7 = smov 32   ;;  %s4187_s20 = smov 2  }
  0x48   :  { %75 = dma.hbm_to_vmem [thread:$0]  %s5229_s8, 64, %s70_s29, [#allocation12], %s4186_s7, %s4186_s7, %s4187_s20  }
  0x49   :  { %4172 = dma.done.wait [#allocation6], 16  }
  0x4a   :  { %4173 = vsyncadd [#allocation6], 4294967280 }
  0x4b   :  { %4174 = dma.done.wait [#allocation9], 6144  }
  0x4c   :  { %4175 = vsyncadd [#allocation9], 4294961152 }
  0x4d   :  { %4176 = dma.done.wait [#allocation12], 64  }
  0x4e   :  { %4177 = vsyncadd [#allocation12], 4294967232  ;;  %v4188_v1 = vmov 0.0   ;;  %v171_v2 = vld [vmem:[%s5226_s5 + $0x8] sm:$0xff]  ;;  %v173_v3 = vld [vmem:[%s5226_s5 + $0x18] sm:$0xff]  ;;  %vm99_vm0 = vcmask 130048   ;;  %v160_v34 = vlaneseq }
  0x4f   :  { %253 = vmatprep.mubr.f32.mxu0 %v4188_v1  ;;  %347 = vmatprep.mubr.f32.mxu1 %v4188_v1  ;;  %v170_v4 = vld [vmem:[%s5226_s5] sm:$0xff]  ;;  %v3544_v5 = vpack.c.bf16 %v173_v3, %v171_v2  ;;  %v172_v6 = vld [vmem:[%s5226_s5 + $0x10] sm:$0xff]  ;;  %v3494_v16 = vld [vmem:[%s5221_s0 + $0x8] sm:$0xff]  ;;  %v4189_v50 = vmov 1966171168   ;;  %s4191_s25 = smov 64  }
  0x50   :  { %v3546_v7 = vpack.c.bf16 %v172_v6, %v170_v4  ;;  %v358_v8 = vld [vmem:[#allocation10 + $0x8] sm:$0xff]  ;;  %v360_v9 = vld [vmem:[#allocation10 + $0x18] sm:$0xff]  ;;  %v357_v10 = vld [vmem:[#allocation10] sm:$0xff]  ;;  %v177_v35 = vshrl.u32 %v160_v34, 7  ;;  %v388_v51 = vunpack.c.l.s4 %v4189_v50  ;;  %v4383_v54 = vand.u32 127, %v160_v34 }
  0x51   :  { %3545 = vmatprep.subr.bf16.mxu0 %v3544_v5  ;;  %3549 = vmatprep.subr.bf16.mxu1 %v3544_v5  ;;  %v4321_v11 = vpack.c.bf16 %v360_v9, %v358_v8  ;;  %v359_v12 = vld [vmem:[#allocation10 + $0x10] sm:$0xff]  ;;  %v362_v13 = vld [vmem:[#allocation10 + $0x28] sm:$0xff]  ;;  %v364_v14 = vld [vmem:[#allocation10 + $0x38] sm:$0xff]  ;;  %vm440_vm5 = vcmask 523264   ;;  %vm581_vm6 = vcmask 253952   ;;  %vm584_vm7 = vcmask 516352  }
  0x52   :  { %3547 = vmatpush1.bf16.msra.mxu0 %v3546_v7  ;;  %3551 = vmatpush1.bf16.msra.mxu1 %v3546_v7  ;;  %v169_v15 = vld [vmem:[%s5221_s0] sm:$0xff]  ;;  %v4329_v17 = vpack.c.bf16 %v359_v12, %v357_v10  ;;  %v4332_v18 = vpack.c.bf16 %v364_v14, %v362_v13  ;;  %v361_v19 = vld [vmem:[#allocation10 + $0x20] sm:$0xff]  ;;  %v368_v22 = vld [vmem:[#allocation10 + $0x58] sm:$0xff]  ;;  %v4375_v36 = vsub.s32 0, %v177_v35  ;;  %v4377_v39 = vsub.s32 1, %v177_v35 }
  0x53   :  { %3553 = vmatprep.subr.bf16.mxu0 %v4321_v11  ;;  %v363_v20 = vld [vmem:[#allocation10 + $0x30] sm:$0xff]  ;;  %3569 = vmatprep.subr.bf16.mxu1 %v4321_v11  ;;  %v366_v21 = vld [vmem:[#allocation10 + $0x48] sm:$0xff]  ;;  %v365_v25 = vld [vmem:[#allocation10 + $0x40] sm:$0xff]  ;;  %v389_v55 = vunpack.c.0.s8 %v388_v51  ;;  %v164_v56 = vand.u32 32, %v4383_v54  ;;  %v163_v8 = vadd.s32 128, %v4383_v54  ;;  %vm162_vm3 = vcmp.lt.s32.totalorder %v4383_v54, 32 }
  0x54   :  { %v4338_v23 = vpack.c.bf16 %v363_v20, %v361_v19  ;;  %v4342_v24 = vpack.c.bf16 %v368_v22, %v366_v21  ;;  %v367_v26 = vld [vmem:[#allocation10 + $0x50] sm:$0xff]  ;;  %v370_v27 = vld [vmem:[#allocation10 + $0x68] sm:$0xff]  ;;  %v372_v28 = vld [vmem:[#allocation10 + $0x78] sm:$0xff] }
  0x55   :  { %3493 = vmatmul.mubr.msk.f32.vlgmr.msra.gmra.mrb[0].mxu0 %vm99_vm0, %v169_v15  ;;  %3495 = vmatmul.mubr.msk.f32.vlgmr.msra.gmra.mrb[0].mxu1 %vm99_vm0, %v3494_v16  ;;  %v4348_v29 = vpack.c.bf16 %v367_v26, %v365_v25  ;;  %v4351_v30 = vpack.c.bf16 %v372_v28, %v370_v27  ;;  %v369_v31 = vld [vmem:[#allocation10 + $0x60] sm:$0xff]  ;;  %v371_v32 = vld [vmem:[#allocation10 + $0x70] sm:$0xff]  ;;  %v4386_v57 = vsub.s32 %v389_v55, %v177_v35  ;;  %vm4390_vm1 = vcmp.eq.s32.totalorder %v164_v56, 0  ;;  %v168_v34 = vld [vmem:[%s5223_s2] sm:$0x3] }
  0x56   :  { %3555 = vmatpush1.bf16.msra.mxu0 %v4329_v17  ;;  %508 = vmatprep.mubr.f32.mxu0 %v4188_v1  ;;  %v4356_v33 = vpack.c.bf16 %v371_v32, %v369_v31  ;;  %v174_v37 = vld [vmem:[#allocation11] sm:$0x3]  ;;  %v165_v14 = vand.u32 32, %v163_v8  ;;  %v4190_v27 = vmov 0  }
  0x57   :  { %3557 = vmatprep.subr.bf16.mxu0 %v4332_v18  ;;  %3571 = vmatpush1.bf16.msra.mxu1 %v4329_v17  ;;  %v268_v38 = vld [vmem:[#allocation11] sm:$0x3]  ;;  %v179_v40 = vrot.slane %v174_v37, %v4375_v36  ;;  %v183_v42 = vrot.slane %v174_v37, %v4377_v39 }
  0x58   :  { %3573 = vmatprep.subr.bf16.mxu1 %v4332_v18  ;;  %738 = vmatprep.mubr.f32.mxu1 %v4188_v1  ;;  %v273_v41 = vrot.slane %v268_v38, %v4375_v36  ;;  %v277_v43 = vrot.slane %v268_v38, %v4377_v39  ;;  %vm4401_vm2 = vcmp.eq.s32.totalorder %v165_v14, 0 }
  0x59   :  { %3860 = vset.pattern.permute.xlu0 %v4190_v27  ;;  %3861 = vset.pattern.permute.xlu1 %v4190_v27 }
  0x5a   :  { %3559 = vmatpush1.bf16.msra.mxu0 %v4338_v23 }
  0x5b   :  { %3561 = vmatprep.subr.bf16.mxu0 %v4342_v24  ;;  %3575 = vmatpush1.bf16.msra.mxu1 %v4338_v23 }
  0x5c   :  { %3577 = vmatprep.subr.bf16.mxu1 %v4342_v24 }
  0x5e   :  { %3563 = vmatpush1.bf16.msra.mxu0 %v4348_v29 }
  0x5f   :  { %3565 = vmatprep.subr.bf16.mxu0 %v4351_v30  ;;  %3579 = vmatpush1.bf16.msra.mxu1 %v4348_v29 }
  0x60   :  { %3581 = vmatprep.subr.bf16.mxu1 %v4351_v30 }
  0x62   :  { %3567 = vmatpush1.bf16.msra.mxu0 %v4356_v33 }
  0x63   :  { %3583 = vmatpush1.bf16.msra.mxu1 %v4356_v33  ;;  %3585 = vmatprep.subr.bf16.mxu0 %v4321_v11 }
  0x64   :  { %3601 = vmatprep.subr.bf16.mxu1 %v4321_v11 }
  0x65   :  { %509 = vmatmul.mubr.f32.vlgmr.msra.gmra.mrb[2].mxu0 %v4188_v1 }
  0x66   :  { %3587 = vmatpush1.bf16.msra.mxu0 %v4329_v17  ;;  %956 = vmatprep.mubr.f32.mxu0 %v4188_v1 }
  0x67   :  { %3589 = vmatprep.subr.bf16.mxu0 %v4332_v18 }
  0x6a   :  { %3591 = vmatpush1.bf16.msra.mxu0 %v4338_v23 }
  0x6b   :  { %3593 = vmatprep.subr.bf16.mxu0 %v4342_v24 }
  0x6e   :  { %3595 = vmatpush1.bf16.msra.mxu0 %v4348_v29 }
  0x6f   :  { %3597 = vmatprep.subr.bf16.mxu0 %v4351_v30 }
  0x72   :  { %3599 = vmatpush1.bf16.msra.mxu0 %v4356_v33 }
  0x73   :  { %3617 = vmatprep.subr.bf16.mxu0 %v4321_v11 }
 0x128   :  { %v255_v44 = vpop.f32.mrb[0].mxu0  ;;  %v349_v45 = vpop.f32.mrb[0].mxu1 }
 0x129   :  { %v256_v46 = vadd.f32 %v255_v44, %v179_v40  ;;  %v350_v47 = vadd.f32 %v349_v45, %v273_v41  ;;  %v257_v48 = vpop.f32.mrb[1].mxu0  ;;  %v351_v49 = vpop.f32.mrb[1].mxu1 }
 0x12a   :  { %v258_v52 = vadd.f32 %v257_v48, %v183_v42  ;;  %v352_v53 = vadd.f32 %v351_v49, %v277_v43 }
 0x12b   :  { %260 = vst [vmem:[#allocation2] sm:$0xff] %v256_v46  ;;  %355 = vst [vmem:[#allocation2 + $0x10] sm:$0xff] %v350_v47  ;;  %v4192_v47 = vmov 7.0  }
 0x12c   :  { %261 = vst [vmem:[#allocation2 + $0x8] sm:$0xff] %v258_v52  ;;  %356 = vst [vmem:[#allocation2 + $0x18] sm:$0xff] %v352_v53  ;;  %v4418_v48 = vsel %vm162_vm3, 0.0, %v4192_v47 }
 0x133   :  { %v373_v58 = vld [vmem:[#allocation2] ss:$8 sm:$0x3]  ;;  %v375_v59 = vld [vmem:[#allocation2 + $0x10] ss:$8 sm:$0x3] }
 0x134   :  { %v377_v60 = vld [vmem:[#allocation2 + $0x7] ss:$8 sm:$0x3]  ;;  %v379_v61 = vld [vmem:[#allocation2 + $0x17] ss:$8 sm:$0x3]  ;;  %v386_v62 = vcombine.low %v373_v58, %v375_v59 }
 0x135   :  { %v413_v63 = vcombine.low %v377_v60, %v379_v61  ;;  %v609_v59 = vld [vmem:[#allocation2 + $0x1] ss:$8 sm:$0x3]  ;;  %v611_v60 = vld [vmem:[#allocation2 + $0x11] ss:$8 sm:$0x3] }
 0x136   :  { %v393_v0 = vrot.slane %v386_v62, %v4386_v57  ;;  %v613_v61 = vld [vmem:[#allocation2 + $0x6] ss:$8 sm:$0x3]  ;;  %v615_v62 = vld [vmem:[#allocation2 + $0x16] ss:$8 sm:$0x3] }
 0x137   :  { %v420_v2 = vrot.slane %v413_v63, %v4386_v57  ;;  %v618_v63 = vcombine.low %v609_v59, %v611_v60 }
 0x138   :  { %v401_v4 = vrot.slane %v393_v0, %v4386_v57  ;;  %v510_v5 = vpop.f32.mrb[2].mxu0  ;;  %v394_v12 = vcombine.high %v393_v0, %v393_v0  ;;  %v645_v0 = vcombine.low %v613_v61, %v615_v62  ;;  %v826_v61 = vld [vmem:[#allocation2 + $0x2] ss:$8 sm:$0x3] }
 0x139   :  { %v428_v6 = vrot.slane %v420_v2, %v4386_v57  ;;  %v512_v7 = vpop.f32.mrb[3].mxu0  ;;  %v421_v13 = vcombine.high %v420_v2, %v420_v2  ;;  %v625_v2 = vrot.slane %v618_v63, %v4386_v57  ;;  %v828_v62 = vld [vmem:[#allocation2 + $0x12] ss:$8 sm:$0x3] }
 0x13a   :  { %v408_v16 = vrot.slane %v394_v12, %v4386_v57  ;;  %v830_v63 = vld [vmem:[#allocation2 + $0x5] ss:$8 sm:$0x3] }
 0x13b   :  { %v438_v9 = vsel %vm4390_vm1, %v401_v4, %v428_v6  ;;  %v435_v19 = vrot.slane %v421_v13, %v4386_v57  ;;  %v652_v4 = vrot.slane %v645_v0, %v4386_v57  ;;  %v626_v13 = vcombine.high %v625_v2, %v625_v2  ;;  %v832_v0 = vld [vmem:[#allocation2 + $0x15] ss:$8 sm:$0x3] }
 0x13c   :  { %v515_v10 = vadd.f32 %v510_v5, %v438_v9  ;;  %v633_v5 = vrot.slane %v625_v2, %v4386_v57  ;;  %v835_v2 = vcombine.low %v826_v61, %v828_v62 }
 0x13d   :  { %v439_v21 = vsel %vm4401_vm2, %v408_v16, %v435_v19  ;;  %v660_v6 = vrot.slane %v652_v4, %v4386_v57  ;;  %v653_v14 = vcombine.high %v652_v4, %v652_v4  ;;  %v862_v4 = vcombine.low %v830_v63, %v832_v0 }
 0x13e   :  { %v3496_v15 = vmul.f32 -1.442695, %v515_v10  ;;  %v516_v22 = vadd.f32 %v512_v7, %v439_v21 }
 0x13f   :  { %v670_v7 = vsel %vm4390_vm1, %v633_v5, %v660_v6  ;;  %v667_v16 = vrot.slane %v653_v14, %v4386_v57  ;;  %v842_v5 = vrot.slane %v835_v2, %v4386_v57  ;;  %v869_v6 = vrot.slane %v862_v4, %v4386_v57  ;;  %v1045_v2 = vld [vmem:[#allocation2 + $0x3] ss:$8 sm:$0x3]  ;;  %v1047_v4 = vld [vmem:[#allocation2 + $0x13] ss:$8 sm:$0x3] }
 0x140   :  { %3862 = vpow2.f32 %v3496_v15  ;;  %v3497_v35 = vmul.f32 -1.442695, %v516_v22  ;;  %v640_v15 = vrot.slane %v626_v13, %v4386_v57 }
 0x141   :  { %3864 = vtanh.f32 %v516_v22 }
 0x142   :  { %v671_v19 = vsel %vm4401_vm2, %v640_v15, %v667_v16  ;;  %v843_v15 = vcombine.high %v842_v5, %v842_v5  ;;  %v870_v16 = vcombine.high %v869_v6, %v869_v6 }
 0x14a   :  { %v3863_v25 = vpop.eup %3862 }
 0x14b   :  { %v523_v26 = vadd.f32 1.0, %v3863_v25  ;;  %v3865_v28 = vpop.eup %3864 }
 0x14d   :  { %3866 = vrcp.f32 %v523_v26 }
 0x14e   :  { %3868 = vpow2.f32 %v3497_v35 }
 0x157   :  { %v3867_v31 = vpop.eup %3866 }
 0x158   :  { %v531_v32 = vmul.f32 %v3867_v31, %v3865_v28  ;;  %v3869_v37 = vpop.eup %3868  ;;  %v530_v40 = vmul.f32 0.0, %v3867_v31 }
 0x159   :  { %v524_v38 = vadd.f32 1.0, %v3869_v37 }
 0x15a   :  { %533 = vrot.lane.b32.xlu0 %v531_v32, %s4191_s25 }
 0x15b   :  { %3870 = vrcp.f32 %v524_v38 }
 0x15e   :  { %542 = vperm.xlu0 %3860, %v168_v34  }
 0x165   :  { %v3871_v43 = vpop.eup %3870 }
 0x1cc   :  { %v534_v41 = vpop.permute.xlu0 %533 }
 0x1cd   :  { %v536_v42 = vadd.f32 %v534_v41, %v530_v40 }
 0x1cf   :  { %3872 = vtanh.f32 %v536_v42 }
 0x1d9   :  { %v3873_v44 = vpop.eup %3872 }
 0x1da   :  { %v538_v45 = vmul.f32 %v3873_v44, %v3871_v43  ;;  %v4193_v44 = vmov 6.0  }
 0x1dc   :  { %547 = vrot.lane.b32.xlu1 %v538_v45, %s4191_s25  ;;  %v773_v45 = vsel %vm162_vm3, 1.0, %v4193_v44 }
 0x1dd   :  { %v4414_v46 = vpop.permute.xlu0 %542 }
 0x1de   :  { %vm545_vm4 = vcmp.gt.f32.partialorder %v4414_v46, %v4418_v48  ;;  %vm4469_vm8 = vcmp.gt.f32.partialorder %v4414_v46, %v773_v45 }
 0x1e0   :  { %552 = vrot.lane.b32.xlu1 %v536_v42, %s4191_s25 }
 0x24e   :  { %v548_v49 = vpop.permute.xlu1 %547 }
 0x24f   :  { %v4425_v50 = vsel %vm545_vm4, %v548_v49, 0.0 }
 0x250   :  { %v563_v51 = vrot.slane %v4425_v50, %v4386_v57  ;;  %3498 = vmatmul.mubr.msk.f32.vlgmr.msra.gmra.mrb[2].mxu1 %vm440_vm5, %v4425_v50 }
 0x251   :  { %3603 = vmatpush1.bf16.msra.mxu1 %v4329_v17  ;;  %1175 = vmatprep.mubr.f32.mxu1 %v4188_v1 }
 0x252   :  { %v564_v52 = vcombine.high %v563_v51, %v563_v51  ;;  %v571_v53 = vrot.slane %v563_v51, %v4386_v57  ;;  %v553_v55 = vpop.permute.xlu1 %552  ;;  %3605 = vmatprep.subr.bf16.mxu1 %v4332_v18 }
 0x253   :  { %v4438_v56 = vsel %vm545_vm4, %v553_v55, 0.0 }
 0x254   :  { %v578_v58 = vrot.slane %v564_v52, %v4386_v57  ;;  %582 = vst.msk [vmem:[#allocation3] sm:$0x1] %vm581_vm6, %v571_v53  ;;  %761 = vrot.lane.b32.xlu1 %v4438_v56, %s4191_s25 }
 0x255   :  { %585 = vst.msk [vmem:[#allocation3 + $0x7] sm:$0x1] %vm584_vm7, %v571_v53  ;;  %3607 = vmatpush1.bf16.msra.mxu1 %v4338_v23 }
 0x256   :  { %583 = vst.msk [vmem:[#allocation3 + $0x8] sm:$0x1] %vm581_vm6, %v578_v58  ;;  %3609 = vmatprep.subr.bf16.mxu1 %v4342_v24 }
 0x257   :  { %586 = vst.msk [vmem:[#allocation3 + $0xf] sm:$0x1] %vm584_vm7, %v578_v58 }
 0x259   :  { %3611 = vmatpush1.bf16.msra.mxu1 %v4348_v29 }
 0x25a   :  { %3613 = vmatprep.subr.bf16.mxu1 %v4351_v30 }
 0x25d   :  { %3615 = vmatpush1.bf16.msra.mxu1 %v4356_v33 }
 0x25e   :  { %3633 = vmatprep.subr.bf16.mxu1 %v4321_v11 }
 0x2c6   :  { %v762_v34 = vpop.permute.xlu1 %761 }
 0x323   :  { %v740_v8 = vpop.f32.mrb[2].mxu1 }
 0x324   :  { %v745_v9 = vadd.f32 %v740_v8, %v670_v7  ;;  %v742_v10 = vpop.f32.mrb[3].mxu1  ;;  %v850_v7 = vrot.slane %v842_v5, %v4386_v57  ;;  %v877_v8 = vrot.slane %v869_v6, %v4386_v57  ;;  %v1049_v5 = vld [vmem:[#allocation2 + $0x4] ss:$8 sm:$0x3] }
 0x325   :  { %v746_v21 = vadd.f32 %v742_v10, %v671_v19  ;;  %v857_v19 = vrot.slane %v843_v15, %v4386_v57  ;;  %v1051_v6 = vld [vmem:[#allocation2 + $0x14] ss:$8 sm:$0x3] }
 0x326   :  { %v3499_v12 = vmul.f32 -1.442695, %v745_v9  ;;  %v887_v9 = vsel %vm4390_vm1, %v850_v7, %v877_v8  ;;  %v1054_v7 = vcombine.low %v1045_v2, %v1047_v4  ;;  %v1081_v8 = vcombine.low %v1049_v5, %v1051_v6 }
 0x327   :  { %v3500_v31 = vmul.f32 -1.442695, %v746_v21 }
 0x328   :  { %3874 = vpow2.f32 %v3499_v12 }
 0x329   :  { %3876 = vtanh.f32 %v746_v21  ;;  %v884_v21 = vrot.slane %v870_v16, %v4386_v57 }
 0x332   :  { %v3875_v22 = vpop.eup %3874 }
 0x333   :  { %v753_v25 = vadd.f32 1.0, %v3875_v22  ;;  %v3877_v26 = vpop.eup %3876  ;;  %v888_v22 = vsel %vm4401_vm2, %v857_v19, %v884_v21 }
 0x335   :  { %3878 = vrcp.f32 %v753_v25 }
 0x336   :  { %3880 = vpow2.f32 %v3500_v31 }
 0x33f   :  { %v3879_v27 = vpop.eup %3878 }
 0x340   :  { %v765_v28 = vmul.f32 %v3879_v27, %v3877_v26  ;;  %v3881_v32 = vpop.eup %3880  ;;  %v764_v37 = vmul.f32 %v3879_v27, %v762_v34 }
 0x341   :  { %v754_v35 = vadd.f32 1.0, %v3881_v32 }
 0x342   :  { %767 = vrot.lane.b32.xlu0 %v765_v28, %s4191_s25 }
 0x343   :  { %3882 = vrcp.f32 %v754_v35 }
 0x34d   :  { %v3883_v41 = vpop.eup %3882 }
 0x3b4   :  { %v768_v38 = vpop.permute.xlu0 %767 }
 0x3b5   :  { %v770_v40 = vadd.f32 %v768_v38, %v764_v37 }
 0x3b7   :  { %3884 = vtanh.f32 %v770_v40  ;;  %781 = vrot.lane.b32.xlu0 %v770_v40, %s4191_s25 }
 0x3c1   :  { %v3885_v42 = vpop.eup %3884 }
 0x3c2   :  { %v772_v43 = vmul.f32 %v3885_v42, %v3883_v41 }
 0x3c4   :  { %776 = vrot.lane.b32.xlu1 %v772_v43, %s4191_s25 }
 0x429   :  { %v782_v47 = vpop.permute.xlu0 %781 }
 0x42a   :  { %v4476_v51 = vsel %vm4469_vm8, %v782_v47, %v4438_v56  ;;  %v4194_v47 = vmov 5.0  }
 0x42b   :  { %979 = vrot.lane.b32.xlu1 %v4476_v51, %s4191_s25 }
 0x436   :  { %v777_v52 = vpop.permute.xlu1 %776 }
 0x437   :  { %v4483_v53 = vsel %vm4469_vm8, %v777_v52, %v4425_v50  ;;  %v4487_v55 = vsel %vm4469_vm8, %v777_v52, 0.0  ;;  %v991_v52 = vsel %vm162_vm3, 2.0, %v4194_v47 }
 0x438   :  { %v793_v58 = vrot.slane %v4487_v55, %v4386_v57  ;;  %3501 = vmatmul.mubr.msk.f32.vlgmr.msra.gmra.mrb[4].mxu0 %vm440_vm5, %v4483_v53  ;;  %vm4524_vm9 = vcmp.gt.f32.partialorder %v4414_v46, %v991_v52 }
 0x439   :  { %3619 = vmatpush1.bf16.msra.mxu0 %v4329_v17  ;;  %1390 = vmatprep.mubr.f32.mxu0 %v4188_v1 }
 0x43a   :  { %v794_v56 = vcombine.high %v793_v58, %v793_v58  ;;  %v801_v59 = vrot.slane %v793_v58, %v4386_v57  ;;  %3621 = vmatprep.subr.bf16.mxu0 %v4332_v18 }
 0x43c   :  { %v808_v60 = vrot.slane %v794_v56, %v4386_v57  ;;  %811 = vst.msk [vmem:[#allocation3 + $0x1] sm:$0x1] %vm581_vm6, %v801_v59 }
 0x43d   :  { %813 = vst.msk [vmem:[#allocation3 + $0x6] sm:$0x1] %vm584_vm7, %v801_v59  ;;  %3623 = vmatpush1.bf16.msra.mxu0 %v4338_v23 }
 0x43e   :  { %812 = vst.msk [vmem:[#allocation3 + $0x9] sm:$0x1] %vm581_vm6, %v808_v60  ;;  %3625 = vmatprep.subr.bf16.mxu0 %v4342_v24 }
 0x43f   :  { %814 = vst.msk [vmem:[#allocation3 + $0xe] sm:$0x1] %vm584_vm7, %v808_v60 }
 0x441   :  { %3627 = vmatpush1.bf16.msra.mxu0 %v4348_v29 }
 0x442   :  { %3629 = vmatprep.subr.bf16.mxu0 %v4351_v30 }
 0x445   :  { %3631 = vmatpush1.bf16.msra.mxu0 %v4356_v33 }
 0x446   :  { %3649 = vmatprep.subr.bf16.mxu0 %v4321_v11 }
 0x49d   :  { %v980_v37 = vpop.permute.xlu1 %979 }
 0x50b   :  { %v958_v10 = vpop.f32.mrb[4].mxu0 }
 0x50c   :  { %v963_v12 = vadd.f32 %v958_v10, %v887_v9  ;;  %v960_v13 = vpop.f32.mrb[5].mxu0  ;;  %v1061_v9 = vrot.slane %v1054_v7, %v4386_v57  ;;  %v1088_v10 = vrot.slane %v1081_v8, %v4386_v57  ;;  %v1263_v8 = vld [vmem:[#allocation2 + $0x4] ss:$8 sm:$0x3] }
 0x50d   :  { %v964_v25 = vadd.f32 %v960_v13, %v888_v22 }
 0x50e   :  { %v3502_v14 = vmul.f32 -1.442695, %v963_v12  ;;  %v1069_v12 = vrot.slane %v1061_v9, %v4386_v57  ;;  %v1096_v13 = vrot.slane %v1088_v10, %v4386_v57  ;;  %v1062_v21 = vcombine.high %v1061_v9, %v1061_v9  ;;  %v1264_v9 = vld [vmem:[#allocation2 + $0x14] ss:$8 sm:$0x3] }
 0x50f   :  { %v3503_v34 = vmul.f32 -1.442695, %v964_v25  ;;  %v1089_v22 = vcombine.high %v1088_v10, %v1088_v10  ;;  %v1265_v10 = vld [vmem:[#allocation2 + $0x3] ss:$8 sm:$0x3] }
 0x510   :  { %3886 = vpow2.f32 %v3502_v14  ;;  %v1106_v14 = vsel %vm4390_vm1, %v1069_v12, %v1096_v13  ;;  %v1266_v12 = vld [vmem:[#allocation2 + $0x13] ss:$8 sm:$0x3]  ;;  %v1269_v13 = vcombine.low %v1263_v8, %v1264_v9 }
 0x511   :  { %3888 = vtanh.f32 %v964_v25  ;;  %v1076_v25 = vrot.slane %v1062_v21, %v4386_v57 }
 0x51a   :  { %v3887_v26 = vpop.eup %3886 }
 0x51b   :  { %v971_v27 = vadd.f32 1.0, %v3887_v26  ;;  %v3889_v28 = vpop.eup %3888  ;;  %v1103_v26 = vrot.slane %v1089_v22, %v4386_v57 }
 0x51d   :  { %3890 = vrcp.f32 %v971_v27  ;;  %v1107_v27 = vsel %vm4401_vm2, %v1076_v25, %v1103_v26 }
 0x51e   :  { %3892 = vpow2.f32 %v3503_v34 }
 0x527   :  { %v3891_v31 = vpop.eup %3890 }
 0x528   :  { %v983_v32 = vmul.f32 %v3891_v31, %v3889_v28  ;;  %v3893_v35 = vpop.eup %3892  ;;  %v982_v40 = vmul.f32 %v3891_v31, %v980_v37 }
 0x529   :  { %v972_v38 = vadd.f32 1.0, %v3893_v35 }
 0x52a   :  { %985 = vrot.lane.b32.xlu0 %v983_v32, %s4191_s25 }
 0x52b   :  { %3894 = vrcp.f32 %v972_v38 }
 0x535   :  { %v3895_v43 = vpop.eup %3894 }
 0x59c   :  { %v986_v41 = vpop.permute.xlu0 %985 }
 0x59d   :  { %v988_v42 = vadd.f32 %v986_v41, %v982_v40 }
 0x59f   :  { %3896 = vtanh.f32 %v988_v42  ;;  %999 = vrot.lane.b32.xlu0 %v988_v42, %s4191_s25 }
 0x5a9   :  { %v3897_v44 = vpop.eup %3896 }
 0x5aa   :  { %v990_v45 = vmul.f32 %v3897_v44, %v3895_v43 }
 0x5ac   :  { %994 = vrot.lane.b32.xlu1 %v990_v45, %s4191_s25 }
 0x611   :  { %v1000_v58 = vpop.permute.xlu0 %999 }
 0x612   :  { %v4531_v59 = vsel %vm4524_vm9, %v1000_v58, %v4476_v51 }
 0x613   :  { %1198 = vrot.lane.b32.xlu1 %v4531_v59, %s4191_s25 }
 0x61e   :  { %v995_v60 = vpop.permute.xlu1 %994 }
 0x61f   :  { %v4538_v61 = vsel %vm4524_vm9, %v995_v60, %v4483_v53  ;;  %v4542_v62 = vsel %vm4524_vm9, %v995_v60, 0.0  ;;  %v4195_v60 = vmov 4.0  }
 0x620   :  { %v1011_v63 = vrot.slane %v4542_v62, %v4386_v57  ;;  %3504 = vmatmul.mubr.msk.f32.vlgmr.msra.gmra.mrb[4].mxu1 %vm440_vm5, %v4538_v61 }
 0x621   :  { %3635 = vmatpush1.bf16.msra.mxu1 %v4329_v17  ;;  %1597 = vmatprep.mubr.f32.mxu1 %v4188_v1 }
 0x622   :  { %v1012_v51 = vcombine.high %v1011_v63, %v1011_v63  ;;  %v1019_v0 = vrot.slane %v1011_v63, %v4386_v57  ;;  %3637 = vmatprep.subr.bf16.mxu1 %v4332_v18  ;;  %v1210_v63 = vsel %vm162_vm3, 3.0, %v4195_v60 }
 0x623   :  { %vm4579_vm10 = vcmp.gt.f32.partialorder %v4414_v46, %v1210_v63 }
 0x624   :  { %v1026_v53 = vrot.slane %v1012_v51, %v4386_v57  ;;  %1029 = vst.msk [vmem:[#allocation3 + $0x2] sm:$0x1] %vm581_vm6, %v1019_v0 }
 0x625   :  { %1031 = vst.msk [vmem:[#allocation3 + $0x5] sm:$0x1] %vm584_vm7, %v1019_v0  ;;  %3639 = vmatpush1.bf16.msra.mxu1 %v4338_v23 }
 0x626   :  { %1030 = vst.msk [vmem:[#allocation3 + $0xa] sm:$0x1] %vm581_vm6, %v1026_v53  ;;  %3641 = vmatprep.subr.bf16.mxu1 %v4342_v24 }
 0x627   :  { %1032 = vst.msk [vmem:[#allocation3 + $0xd] sm:$0x1] %vm584_vm7, %v1026_v53 }
 0x629   :  { %3643 = vmatpush1.bf16.msra.mxu1 %v4348_v29 }
 0x62a   :  { %3645 = vmatprep.subr.bf16.mxu1 %v4351_v30 }
 0x62d   :  { %3647 = vmatpush1.bf16.msra.mxu1 %v4356_v33 }
 0x62e   :  { %3665 = vmatprep.subr.bf16.mxu1 %v4321_v11 }
 0x685   :  { %v1199_v41 = vpop.permute.xlu1 %1198 }
 0x6f3   :  { %v1177_v15 = vpop.f32.mrb[4].mxu1 }
 0x6f4   :  { %v1182_v16 = vadd.f32 %v1177_v15, %v1106_v14  ;;  %v1179_v11 = vpop.f32.mrb[5].mxu1  ;;  %v1296_v14 = vcombine.low %v1265_v10, %v1266_v12  ;;  %v1276_v15 = vrot.slane %v1269_v13, %v4386_v57 }
 0x6f5   :  { %v1183_v28 = vadd.f32 %v1179_v11, %v1107_v27 }
 0x6f6   :  { %v3505_v19 = vmul.f32 -1.442695, %v1182_v16  ;;  %v1303_v16 = vrot.slane %v1296_v14, %v4386_v57  ;;  %v1284_v11 = vrot.slane %v1276_v15, %v4386_v57 }
 0x6f7   :  { %v3506_v38 = vmul.f32 -1.442695, %v1183_v28 }
 0x6f8   :  { %3898 = vpow2.f32 %v3505_v19  ;;  %v1311_v19 = vrot.slane %v1303_v16, %v4386_v57 }
 0x6f9   :  { %3900 = vtanh.f32 %v1183_v28  ;;  %v1277_v28 = vcombine.high %v1276_v15, %v1276_v15 }
 0x6fa   :  { %v1321_v21 = vsel %vm4390_vm1, %v1284_v11, %v1311_v19  ;;  %v1473_v11 = vld [vmem:[#allocation2 + $0x12] ss:$8 sm:$0x3] }
 0x702   :  { %v3899_v31 = vpop.eup %3898 }
 0x703   :  { %v1190_v32 = vadd.f32 1.0, %v3899_v31  ;;  %v3901_v34 = vpop.eup %3900  ;;  %v1304_v31 = vcombine.high %v1303_v16, %v1303_v16  ;;  %v1472_v16 = vld [vmem:[#allocation2 + $0x2] ss:$8 sm:$0x3] }
 0x705   :  { %3902 = vrcp.f32 %v1190_v32  ;;  %v1291_v32 = vrot.slane %v1277_v28, %v4386_v57 }
 0x706   :  { %3904 = vpow2.f32 %v3506_v38 }
 0x70f   :  { %v3903_v35 = vpop.eup %3902 }
 0x710   :  { %v1202_v37 = vmul.f32 %v3903_v35, %v3901_v34  ;;  %v3905_v40 = vpop.eup %3904  ;;  %v1201_v43 = vmul.f32 %v3903_v35, %v1199_v41  ;;  %v1318_v34 = vrot.slane %v1304_v31, %v4386_v57 }
 0x711   :  { %v1191_v42 = vadd.f32 1.0, %v3905_v40 }
 0x712   :  { %1204 = vrot.lane.b32.xlu0 %v1202_v37, %s4191_s25  ;;  %v1322_v35 = vsel %vm4401_vm2, %v1291_v32, %v1318_v34 }
 0x713   :  { %3906 = vrcp.f32 %v1191_v42 }
 0x71d   :  { %v3907_v47 = vpop.eup %3906 }
 0x784   :  { %v1205_v44 = vpop.permute.xlu0 %1204 }
 0x785   :  { %v1207_v45 = vadd.f32 %v1205_v44, %v1201_v43 }
 0x787   :  { %3908 = vtanh.f32 %v1207_v45  ;;  %1218 = vrot.lane.b32.xlu0 %v1207_v45, %s4191_s25 }
 0x791   :  { %v3909_v52 = vpop.eup %3908 }
 0x792   :  { %v1209_v58 = vmul.f32 %v3909_v52, %v3907_v47 }
 0x794   :  { %1213 = vrot.lane.b32.xlu1 %v1209_v58, %s4191_s25 }
 0x7f9   :  { %v1219_v51 = vpop.permute.xlu0 %1218 }
 0x7fa   :  { %v4586_v53 = vsel %vm4579_vm10, %v1219_v51, %v4531_v59 }
 0x7fb   :  { %1413 = vrot.lane.b32.xlu1 %v4586_v53, %s4191_s25 }
 0x806   :  { %v1214_v2 = vpop.permute.xlu1 %1213 }
 0x807   :  { %v4593_v4 = vsel %vm4579_vm10, %v1214_v2, %v4538_v61  ;;  %v4597_v5 = vsel %vm4579_vm10, %v1214_v2, 0.0 }
 0x808   :  { %v1230_v6 = vrot.slane %v4597_v5, %v4386_v57  ;;  %3507 = vmatmul.mubr.msk.f32.vlgmr.msra.gmra.mrb[6].mxu0 %vm440_vm5, %v4593_v4 }
 0x809   :  { %3651 = vmatpush1.bf16.msra.mxu0 %v4329_v17  ;;  %1804 = vmatprep.mubr.f32.mxu0 %v4188_v1 }
 0x80a   :  { %v1231_v59 = vcombine.high %v1230_v6, %v1230_v6  ;;  %v1238_v7 = vrot.slane %v1230_v6, %v4386_v57  ;;  %3653 = vmatprep.subr.bf16.mxu0 %v4332_v18 }
 0x80c   :  { %v1245_v61 = vrot.slane %v1231_v59, %v4386_v57  ;;  %1248 = vst.msk [vmem:[#allocation3 + $0x3] sm:$0x1] %vm581_vm6, %v1238_v7  ;;  %v4196_v59 = vmov 3.0  }
 0x80d   :  { %1250 = vst.msk [vmem:[#allocation3 + $0x4] sm:$0x1] %vm584_vm7, %v1238_v7  ;;  %3655 = vmatpush1.bf16.msra.mxu0 %v4338_v23  ;;  %v1425_v7 = vsel %vm162_vm3, 4.0, %v4196_v59  ;;  %v4197_v59 = vmov 2.0  }
 0x80e   :  { %1249 = vst.msk [vmem:[#allocation3 + $0xb] sm:$0x1] %vm581_vm6, %v1245_v61  ;;  %3657 = vmatprep.subr.bf16.mxu0 %v4342_v24  ;;  %vm4633_vm11 = vcmp.gt.f32.partialorder %v4414_v46, %v1425_v7  ;;  %v1632_v7 = vsel %vm162_vm3, 5.0, %v4197_v59 }
 0x80f   :  { %1251 = vst.msk [vmem:[#allocation3 + $0xc] sm:$0x1] %vm584_vm7, %v1245_v61  ;;  %vm4687_vm12 = vcmp.gt.f32.partialorder %v4414_v46, %v1632_v7 }
 0x811   :  { %3659 = vmatpush1.bf16.msra.mxu0 %v4348_v29 }
 0x812   :  { %3661 = vmatprep.subr.bf16.mxu0 %v4351_v30 }
 0x815   :  { %3663 = vmatpush1.bf16.msra.mxu0 %v4356_v33 }
 0x86d   :  { %v1414_v47 = vpop.permute.xlu1 %1413 }
 0x8db   :  { %v1392_v22 = vpop.f32.mrb[6].mxu0 }
 0x8dc   :  { %v1397_v25 = vadd.f32 %v1392_v22, %v1321_v21  ;;  %v1394_v26 = vpop.f32.mrb[7].mxu0  ;;  %v1503_v21 = vcombine.low %v1472_v16, %v1473_v11  ;;  %v1678_v11 = vld [vmem:[#allocation2 + $0x16] ss:$8 sm:$0x3] }
 0x8dd   :  { %v1398_v37 = vadd.f32 %v1394_v26, %v1322_v35 }
 0x8de   :  { %v3508_v27 = vmul.f32 -1.442695, %v1397_v25  ;;  %v1510_v22 = vrot.slane %v1503_v21, %v4386_v57  ;;  %v1680_v21 = vld [vmem:[#allocation2 + $0x11] ss:$8 sm:$0x3] }
 0x8df   :  { %v3509_v44 = vmul.f32 -1.442695, %v1398_v37 }
 0x8e0   :  { %3910 = vpow2.f32 %v3508_v27  ;;  %v1511_v31 = vcombine.high %v1510_v22, %v1510_v22 }
 0x8e1   :  { %3912 = vtanh.f32 %v1398_v37 }
 0x8e2   :  { %v1525_v34 = vrot.slane %v1511_v31, %v4386_v57 }
 0x8ea   :  { %v3911_v38 = vpop.eup %3910 }
 0x8eb   :  { %v1405_v40 = vadd.f32 1.0, %v3911_v38  ;;  %v3913_v41 = vpop.eup %3912 }
 0x8ed   :  { %3914 = vrcp.f32 %v1405_v40 }
 0x8ee   :  { %3916 = vpow2.f32 %v3509_v44 }
 0x8f7   :  { %v3915_v42 = vpop.eup %3914 }
 0x8f8   :  { %v1417_v43 = vmul.f32 %v3915_v42, %v3913_v41  ;;  %v3917_v45 = vpop.eup %3916  ;;  %v1416_v58 = vmul.f32 %v3915_v42, %v1414_v47 }
 0x8f9   :  { %v1406_v52 = vadd.f32 1.0, %v3917_v45 }
 0x8fa   :  { %1419 = vrot.lane.b32.xlu0 %v1417_v43, %s4191_s25 }
 0x8fb   :  { %3918 = vrcp.f32 %v1406_v52 }
 0x905   :  { %v3919_v51 = vpop.eup %3918 }
 0x96c   :  { %v1420_v60 = vpop.permute.xlu0 %1419 }
 0x96d   :  { %v1422_v63 = vadd.f32 %v1420_v60, %v1416_v58 }
 0x96f   :  { %3920 = vtanh.f32 %v1422_v63  ;;  %1433 = vrot.lane.b32.xlu0 %v1422_v63, %s4191_s25 }
 0x979   :  { %v3921_v2 = vpop.eup %3920 }
 0x97a   :  { %v1424_v6 = vmul.f32 %v3921_v2, %v3919_v51 }
 0x97c   :  { %1428 = vrot.lane.b32.xlu1 %v1424_v6, %s4191_s25 }
 0x9e1   :  { %v1434_v61 = vpop.permute.xlu0 %1433 }
 0x9e2   :  { %v4640_v9 = vsel %vm4633_vm11, %v1434_v61, %v4586_v53 }
 0x9e3   :  { %1620 = vrot.lane.b32.xlu1 %v4640_v9, %s4191_s25 }
 0x9ee   :  { %v1429_v10 = vpop.permute.xlu1 %1428 }
 0x9ef   :  { %v4647_v12 = vsel %vm4633_vm11, %v1429_v10, %v4593_v4  ;;  %v4651_v13 = vsel %vm4633_vm11, %v1429_v10, 0.0 }
 0x9f0   :  { %v1445_v14 = vrot.slane %v4651_v13, %v4386_v57  ;;  %3510 = vmatmul.mubr.msk.f32.vlgmr.msra.gmra.mrb[6].mxu1 %vm440_vm5, %v4647_v12 }
 0x9f1   :  { %3667 = vmatpush1.bf16.msra.mxu1 %v4329_v17  ;;  %2011 = vmatprep.mubr.f32.mxu1 %v4188_v1  ;;  %v1470_v17 = vld [vmem:[#allocation2 + $0x5] ss:$8 sm:$0x3] }
 0x9f2   :  { %v1446_v53 = vcombine.high %v1445_v14, %v1445_v14  ;;  %v1453_v15 = vrot.slane %v1445_v14, %v4386_v57  ;;  %3669 = vmatprep.subr.bf16.mxu1 %v4332_v18  ;;  %v1471_v18 = vld [vmem:[#allocation2 + $0x15] ss:$8 sm:$0x3] }
 0x9f3   :  { %v1476_v19 = vcombine.low %v1470_v17, %v1471_v18 }
 0x9f4   :  { %v1460_v4 = vrot.slane %v1446_v53, %v4386_v57  ;;  %1463 = vst.msk [vmem:[#allocation3 + $0x4] sm:$0x1] %vm581_vm6, %v1453_v15 }
 0x9f5   :  { %1465 = vst.msk [vmem:[#allocation3 + $0x3] sm:$0x1] %vm584_vm7, %v1453_v15  ;;  %3671 = vmatpush1.bf16.msra.mxu1 %v4338_v23  ;;  %v1483_v23 = vrot.slane %v1476_v19, %v4386_v57  ;;  %v1679_v19 = vld [vmem:[#allocation2 + $0x1] ss:$8 sm:$0x3] }
 0x9f6   :  { %1464 = vst.msk [vmem:[#allocation3 + $0xc] sm:$0x1] %vm581_vm6, %v1460_v4  ;;  %3673 = vmatprep.subr.bf16.mxu1 %v4342_v24  ;;  %v1518_v24 = vrot.slane %v1510_v22, %v4386_v57  ;;  %v1710_v22 = vcombine.low %v1679_v19, %v1680_v21 }
 0x9f7   :  { %1466 = vst.msk [vmem:[#allocation3 + $0xb] sm:$0x1] %vm584_vm7, %v1460_v4  ;;  %v1491_v25 = vrot.slane %v1483_v23, %v4386_v57  ;;  %v1484_v28 = vcombine.high %v1483_v23, %v1483_v23 }
 0x9f9   :  { %3675 = vmatpush1.bf16.msra.mxu1 %v4348_v29  ;;  %v1528_v29 = vsel %vm4390_vm1, %v1491_v25, %v1518_v24  ;;  %v1498_v32 = vrot.slane %v1484_v28, %v4386_v57  ;;  %v1717_v24 = vrot.slane %v1710_v22, %v4386_v57  ;;  %v1885_v22 = vld [vmem:[#allocation2 + $0x17] ss:$8 sm:$0x3] }
 0x9fa   :  { %3677 = vmatprep.subr.bf16.mxu1 %v4351_v30 }
 0x9fb   :  { %v1529_v35 = vsel %vm4401_vm2, %v1498_v32, %v1525_v34  ;;  %v1718_v34 = vcombine.high %v1717_v24, %v1717_v24 }
 0x9fd   :  { %3679 = vmatpush1.bf16.msra.mxu1 %v4356_v33 }
 0xa55   :  { %v1621_v47 = vpop.permute.xlu1 %1620 }
 0xac3   :  { %v1599_v30 = vpop.f32.mrb[6].mxu1 }
 0xac4   :  { %v1604_v26 = vadd.f32 %v1599_v30, %v1528_v29  ;;  %v1601_v33 = vpop.f32.mrb[7].mxu1  ;;  %v1725_v30 = vrot.slane %v1717_v24, %v4386_v57  ;;  %v1887_v24 = vld [vmem:[#allocation2 + $0x10] ss:$8 sm:$0x3] }
 0xac5   :  { %v1605_v37 = vadd.f32 %v1601_v33, %v1529_v35 }
 0xac6   :  { %v3511_v27 = vmul.f32 -1.442695, %v1604_v26 }
 0xac7   :  { %v3512_v44 = vmul.f32 -1.442695, %v1605_v37 }
 0xac8   :  { %3922 = vpow2.f32 %v3511_v27 }
 0xac9   :  { %3924 = vtanh.f32 %v1605_v37  ;;  %v1732_v37 = vrot.slane %v1718_v34, %v4386_v57 }
 0xad2   :  { %v3923_v38 = vpop.eup %3922 }
 0xad3   :  { %v1612_v40 = vadd.f32 1.0, %v3923_v38  ;;  %v3925_v41 = vpop.eup %3924 }
 0xad5   :  { %3926 = vrcp.f32 %v1612_v40 }
 0xad6   :  { %3928 = vpow2.f32 %v3512_v44 }
 0xadf   :  { %v3927_v42 = vpop.eup %3926 }
 0xae0   :  { %v1624_v43 = vmul.f32 %v3927_v42, %v3925_v41  ;;  %v3929_v45 = vpop.eup %3928  ;;  %v1623_v58 = vmul.f32 %v3927_v42, %v1621_v47 }
 0xae1   :  { %v1613_v52 = vadd.f32 1.0, %v3929_v45 }
 0xae2   :  { %1626 = vrot.lane.b32.xlu0 %v1624_v43, %s4191_s25 }
 0xae3   :  { %3930 = vrcp.f32 %v1613_v52 }
 0xaed   :  { %v3931_v51 = vpop.eup %3930 }
 0xb54   :  { %v1627_v60 = vpop.permute.xlu0 %1626 }
 0xb55   :  { %v1629_v63 = vadd.f32 %v1627_v60, %v1623_v58 }
 0xb57   :  { %3932 = vtanh.f32 %v1629_v63  ;;  %1640 = vrot.lane.b32.xlu0 %v1629_v63, %s4191_s25 }
 0xb61   :  { %v3933_v2 = vpop.eup %3932 }
 0xb62   :  { %v1631_v6 = vmul.f32 %v3933_v2, %v3931_v51 }
 0xb64   :  { %1635 = vrot.lane.b32.xlu1 %v1631_v6, %s4191_s25 }
 0xbc9   :  { %v1641_v61 = vpop.permute.xlu0 %1640 }
 0xbca   :  { %v4694_v14 = vsel %vm4687_vm12, %v1641_v61, %v4640_v9  ;;  %v4198_v61 = vmov 1.0  }
 0xbcb   :  { %1827 = vrot.lane.b32.xlu1 %v4694_v14, %s4191_s25 }
 0xbd6   :  { %v1636_v53 = vpop.permute.xlu1 %1635 }
 0xbd7   :  { %v4701_v15 = vsel %vm4687_vm12, %v1636_v53, %v4647_v12  ;;  %v4705_v4 = vsel %vm4687_vm12, %v1636_v53, 0.0  ;;  %v1677_v12 = vld [vmem:[#allocation2 + $0x6] ss:$8 sm:$0x3]  ;;  %v1839_v53 = vsel %vm162_vm3, 6.0, %v4198_v61 }
 0xbd8   :  { %v1652_v17 = vrot.slane %v4705_v4, %v4386_v57  ;;  %3513 = vmatmul.mubr.msk.f32.vlgmr.msra.gmra.mrb[8].mxu0 %vm440_vm5, %v4701_v15  ;;  %v1683_v23 = vcombine.low %v1677_v12, %v1678_v11  ;;  %vm4734_vm13 = vcmp.gt.f32.partialorder %v4414_v46, %v1839_v53 }
 0xbd9   :  { %2182 = vmatprep.mubr.f32.mxu0 %v4188_v1 }
 0xbda   :  { %v1653_v9 = vcombine.high %v1652_v17, %v1652_v17  ;;  %v1660_v18 = vrot.slane %v1652_v17, %v4386_v57  ;;  %v1690_v25 = vrot.slane %v1683_v23, %v4386_v57 }
 0xbdc   :  { %v1667_v16 = vrot.slane %v1653_v9, %v4386_v57  ;;  %1670 = vst.msk [vmem:[#allocation3 + $0x5] sm:$0x1] %vm581_vm6, %v1660_v18  ;;  %v1698_v29 = vrot.slane %v1690_v25, %v4386_v57  ;;  %v1691_v32 = vcombine.high %v1690_v25, %v1690_v25  ;;  %v1886_v25 = vld [vmem:[#allocation2] ss:$8 sm:$0x3] }
 0xbdd   :  { %1672 = vst.msk [vmem:[#allocation3 + $0x2] sm:$0x1] %vm584_vm7, %v1660_v18 }
 0xbde   :  { %1671 = vst.msk [vmem:[#allocation3 + $0xd] sm:$0x1] %vm581_vm6, %v1667_v16  ;;  %v1735_v26 = vsel %vm4390_vm1, %v1698_v29, %v1725_v30  ;;  %v1705_v35 = vrot.slane %v1691_v32, %v4386_v57  ;;  %v1917_v30 = vcombine.low %v1886_v25, %v1887_v24  ;;  %v2095_v25 = vld [vmem:[#allocation8 + $0x48] sm:$0xff]  ;;  %v2097_v24 = vld [vmem:[#allocation8 + $0x58] sm:$0xff] }
 0xbdf   :  { %1673 = vst.msk [vmem:[#allocation3 + $0xa] sm:$0x1] %vm584_vm7, %v1667_v16 }
 0xbe0   :  { %v1736_v38 = vsel %vm4401_vm2, %v1705_v35, %v1732_v37 }
 0xc3d   :  { %v1828_v58 = vpop.permute.xlu1 %1827 }
 0xcab   :  { %v1806_v33 = vpop.f32.mrb[8].mxu0 }
 0xcac   :  { %v1811_v27 = vadd.f32 %v1806_v33, %v1735_v26  ;;  %v1808_v28 = vpop.f32.mrb[9].mxu0  ;;  %v1924_v33 = vrot.slane %v1917_v30, %v4386_v57 }
 0xcad   :  { %v1812_v40 = vadd.f32 %v1808_v28, %v1736_v38 }
 0xcae   :  { %v3514_v31 = vmul.f32 -1.442695, %v1811_v27  ;;  %v1932_v28 = vrot.slane %v1924_v33, %v4386_v57 }
 0xcaf   :  { %v3515_v47 = vmul.f32 -1.442695, %v1812_v40 }
 0xcb0   :  { %3934 = vpow2.f32 %v3514_v31 }
 0xcb1   :  { %3936 = vtanh.f32 %v1812_v40  ;;  %v1925_v40 = vcombine.high %v1924_v33, %v1924_v33  ;;  %v2094_v33 = vld [vmem:[#allocation8 + $0x40] sm:$0xff] }
 0xcba   :  { %v3935_v41 = vpop.eup %3934 }
 0xcbb   :  { %v1819_v42 = vadd.f32 1.0, %v3935_v41  ;;  %v3937_v43 = vpop.eup %3936 }
 0xcbd   :  { %3938 = vrcp.f32 %v1819_v42  ;;  %v1939_v42 = vrot.slane %v1925_v40, %v4386_v57  ;;  %v2100_v40 = vld [vmem:[#allocation8 + $0x70] sm:$0xff] }
 0xcbe   :  { %3940 = vpow2.f32 %v3515_v47 }
 0xcc7   :  { %v3939_v44 = vpop.eup %3938 }
 0xcc8   :  { %v1831_v45 = vmul.f32 %v3939_v44, %v3937_v43  ;;  %v3941_v52 = vpop.eup %3940  ;;  %v1830_v63 = vmul.f32 %v3939_v44, %v1828_v58 }
 0xcc9   :  { %v1820_v60 = vadd.f32 1.0, %v3941_v52 }
 0xcca   :  { %1833 = vrot.lane.b32.xlu0 %v1831_v45, %s4191_s25 }
 0xccb   :  { %3942 = vrcp.f32 %v1820_v60 }
 0xcd5   :  { %v3943_v6 = vpop.eup %3942 }
 0xd3c   :  { %v1834_v51 = vpop.permute.xlu0 %1833 }
 0xd3d   :  { %v1836_v2 = vadd.f32 %v1834_v51, %v1830_v63  ;;  %v2087_v63 = vld [vmem:[#allocation8 + $0x8] sm:$0xff]  ;;  %v2089_v51 = vld [vmem:[#allocation8 + $0x18] sm:$0xff] }
 0xd3f   :  { %3944 = vtanh.f32 %v1836_v2  ;;  %1847 = vrot.lane.b32.xlu0 %v1836_v2, %s4191_s25  ;;  %v2086_v2 = vld [vmem:[#allocation8] sm:$0xff] }
 0xd49   :  { %v3945_v59 = vpop.eup %3944 }
 0xd4a   :  { %v1838_v7 = vmul.f32 %v3945_v59, %v3943_v6  ;;  %v3680_v6 = vpack.c.bf16 %v2089_v51, %v2087_v63  ;;  %v2088_v59 = vld [vmem:[#allocation8 + $0x10] sm:$0xff] }
 0xd4c   :  { %1842 = vrot.lane.b32.xlu1 %v1838_v7, %s4191_s25  ;;  %v3682_v7 = vpack.c.bf16 %v2088_v59, %v2086_v2  ;;  %3681 = vmatprep.subr.bf16.mxu0 %v3680_v6  ;;  %v2298_v2 = vld [vmem:[#allocation10 + $0x80] sm:$0xff]  ;;  %v2303_v59 = vld [vmem:[#allocation10 + $0xa8] sm:$0xff] }
 0xd4d   :  { %3697 = vmatprep.subr.bf16.mxu1 %v3680_v6  ;;  %v2300_v6 = vld [vmem:[#allocation10 + $0x90] sm:$0xff] }
 0xd4e   :  { %3683 = vmatpush1.bf16.msra.mxu0 %v3682_v7 }
 0xdb1   :  { %v1848_v17 = vpop.permute.xlu0 %1847 }
 0xdb2   :  { %v1850_v18 = vsel %vm4734_vm13, %v1848_v17, %v4694_v14 }
 0xdb3   :  { %2034 = vrot.lane.b32.xlu1 %v1850_v18, %s4191_s25 }
 0xdbe   :  { %v1843_v16 = vpop.permute.xlu1 %1842 }
 0xdbf   :  { %v1845_v12 = vsel %vm4734_vm13, %v1843_v16, %v4701_v15  ;;  %v4747_v11 = vsel %vm4734_vm13, %v1843_v16, 0.0  ;;  %v1884_v15 = vld [vmem:[#allocation2 + $0x7] ss:$8 sm:$0x3] }
 0xdc0   :  { %v1859_v19 = vrot.slane %v4747_v11, %v4386_v57  ;;  %3516 = vmatmul.mubr.msk.f32.vlgmr.msra.gmra.mrb[8].mxu1 %vm440_vm5, %v1845_v12  ;;  %v1890_v29 = vcombine.low %v1884_v15, %v1885_v22  ;;  %v2092_v22 = vld [vmem:[#allocation8 + $0x30] sm:$0xff] }
 0xdc1   :  { %2288 = vmatprep.mubr.f32.mxu1 %v4188_v1  ;;  %3699 = vmatpush1.bf16.msra.mxu1 %v3682_v7  ;;  %v2305_v7 = vld [vmem:[#allocation10 + $0xb8] sm:$0xff] }
 0xdc2   :  { %v1860_v21 = vcombine.high %v1859_v19, %v1859_v19  ;;  %v1867_v14 = vrot.slane %v1859_v19, %v4386_v57  ;;  %v1897_v26 = vrot.slane %v1890_v29, %v4386_v57 }
 0xdc4   :  { %v1874_v23 = vrot.slane %v1860_v21, %v4386_v57  ;;  %1877 = vst.msk [vmem:[#allocation3 + $0x6] sm:$0x1] %vm581_vm6, %v1867_v14  ;;  %v1905_v27 = vrot.slane %v1897_v26, %v4386_v57  ;;  %v1898_v38 = vcombine.high %v1897_v26, %v1897_v26  ;;  %v2091_v21 = vld [vmem:[#allocation8 + $0x28] sm:$0xff]  ;;  %v3688_v26 = vpack.c.bf16 %v2097_v24, %v2095_v25  ;;  %v2313_v24 = vld [vmem:[#allocation10 + $0xf8] sm:$0xff] }
 0xdc5   :  { %1879 = vst.msk [vmem:[#allocation3 + $0x1] sm:$0x1] %vm584_vm7, %v1867_v14  ;;  %v2093_v14 = vld [vmem:[#allocation8 + $0x38] sm:$0xff]  ;;  %v2311_v25 = vld [vmem:[#allocation10 + $0xe8] sm:$0xff] }
 0xdc6   :  { %1878 = vst.msk [vmem:[#allocation3 + $0xe] sm:$0x1] %vm581_vm6, %v1874_v23  ;;  %v1942_v31 = vsel %vm4390_vm1, %v1905_v27, %v1932_v28  ;;  %v1912_v41 = vrot.slane %v1898_v38, %v4386_v57  ;;  %v3684_v15 = vpack.c.bf16 %v2093_v14, %v2091_v21  ;;  %v2096_v27 = vld [vmem:[#allocation8 + $0x50] sm:$0xff]  ;;  %v2099_v28 = vld [vmem:[#allocation8 + $0x68] sm:$0xff]  ;;  %v2098_v38 = vld [vmem:[#allocation8 + $0x60] sm:$0xff] }
 0xdc7   :  { %1880 = vst.msk [vmem:[#allocation3 + $0x9] sm:$0x1] %vm584_vm7, %v1874_v23  ;;  %v2090_v23 = vld [vmem:[#allocation8 + $0x20] sm:$0xff] }
 0xdc8   :  { %v1943_v43 = vsel %vm4401_vm2, %v1912_v41, %v1939_v42  ;;  %v3686_v30 = vpack.c.bf16 %v2092_v22, %v2090_v23  ;;  %3685 = vmatprep.subr.bf16.mxu0 %v3684_v15  ;;  %3701 = vmatprep.subr.bf16.mxu1 %v3684_v15  ;;  %v3694_v41 = vpack.c.bf16 %v2100_v40, %v2098_v38  ;;  %v2299_v42 = vld [vmem:[#allocation10 + $0x88] sm:$0xff]  ;;  %v2306_v15 = vld [vmem:[#allocation10 + $0xc0] sm:$0xff]  ;;  %v2308_v22 = vld [vmem:[#allocation10 + $0xd0] sm:$0xff] }
 0xdca   :  { %3687 = vmatpush1.bf16.msra.mxu0 %v3686_v30  ;;  %3703 = vmatpush1.bf16.msra.mxu1 %v3686_v30  ;;  %v4815_v30 = vpack.c.bf16 %v2313_v24, %v2311_v25 }
 0xdcb   :  { %3689 = vmatprep.subr.bf16.mxu0 %v3688_v26  ;;  %3705 = vmatprep.subr.bf16.mxu1 %v3688_v26  ;;  %v2310_v26 = vld [vmem:[#allocation10 + $0xe0] sm:$0xff] }
 0xe25   :  { %v2035_v17 = vpop.permute.xlu1 %2034 }
 0xe93   :  { %v2013_v32 = vpop.f32.mrb[8].mxu1 }
 0xe94   :  { %v2018_v34 = vadd.f32 %v2013_v32, %v1942_v31  ;;  %v2015_v35 = vpop.f32.mrb[9].mxu1  ;;  %v2101_v32 = vld [vmem:[#allocation8 + $0x78] sm:$0xff] }
 0xe95   :  { %v2019_v44 = vadd.f32 %v2015_v35, %v1943_v43  ;;  %v3690_v35 = vpack.c.bf16 %v2096_v27, %v2094_v33  ;;  %v2301_v43 = vld [vmem:[#allocation10 + $0x98] sm:$0xff]  ;;  %v2312_v33 = vld [vmem:[#allocation10 + $0xf0] sm:$0xff] }
 0xe96   :  { %v3517_v37 = vmul.f32 -1.442695, %v2018_v34  ;;  %v4820_v27 = vpack.c.bf16 %v2312_v33, %v2310_v26 }
 0xe97   :  { %v3518_v61 = vmul.f32 -1.442695, %v2019_v44  ;;  %3691 = vmatpush1.bf16.msra.mxu0 %v3690_v35  ;;  %3707 = vmatpush1.bf16.msra.mxu1 %v3690_v35 }
 0xe98   :  { %3946 = vpow2.f32 %v3517_v37  ;;  %v3692_v37 = vpack.c.bf16 %v2101_v32, %v2099_v28  ;;  %v2103_v28 = vld [vmem:[#allocation11 + $0x2] sm:$0x3] }
 0xe99   :  { %3948 = vtanh.f32 %v2019_v44  ;;  %v4771_v44 = vpack.c.bf16 %v2301_v43, %v2299_v42  ;;  %v2108_v32 = vrot.slane %v2103_v28, %v4375_v36 }
 0xe9a   :  { %3693 = vmatprep.subr.bf16.mxu0 %v3692_v37  ;;  %3709 = vmatprep.subr.bf16.mxu1 %v3692_v37 }
 0xe9b   :  { %3695 = vmatpush1.bf16.msra.mxu0 %v3694_v41  ;;  %3711 = vmatpush1.bf16.msra.mxu1 %v3694_v41 }
 0xe9c   :  { %3713 = vmatprep.subr.bf16.mxu0 %v4771_v44  ;;  %3729 = vmatprep.subr.bf16.mxu1 %v4771_v44 }
 0xea2   :  { %v3947_v45 = vpop.eup %3946 }
 0xea3   :  { %v2026_v47 = vadd.f32 1.0, %v3947_v45  ;;  %v3949_v52 = vpop.eup %3948  ;;  %v4778_v45 = vsel %vm162_vm3, 7.0, %v4188_v1 }
 0xea4   :  { %vm2047_vm14 = vcmp.gt.f32.partialorder %v4414_v46, %v4778_v45 }
 0xea5   :  { %3950 = vrcp.f32 %v2026_v47 }
 0xea6   :  { %3952 = vpow2.f32 %v3518_v61  ;;  %v4795_v61 = vpack.c.bf16 %v2300_v6, %v2298_v2 }
 0xeaf   :  { %v3951_v58 = vpop.eup %3950 }
 0xeb0   :  { %v2038_v60 = vmul.f32 %v3951_v58, %v3949_v52  ;;  %v3953_v53 = vpop.eup %3952  ;;  %v2037_v16 = vmul.f32 %v3951_v58, %v2035_v17  ;;  %v2302_v17 = vld [vmem:[#allocation10 + $0xa0] sm:$0xff] }
 0xeb1   :  { %v2027_v18 = vadd.f32 1.0, %v3953_v53  ;;  %v4797_v53 = vpack.c.bf16 %v2305_v7, %v2303_v59 }
 0xeb2   :  { %2040 = vrot.lane.b32.xlu0 %v2038_v60, %s4191_s25 }
 0xeb3   :  { %3954 = vrcp.f32 %v2027_v18  ;;  %v2304_v18 = vld [vmem:[#allocation10 + $0xb0] sm:$0xff] }
 0xeb4   :  { %v4801_v14 = vpack.c.bf16 %v2304_v18, %v2302_v17 }
 0xebd   :  { %v3955_v29 = vpop.eup %3954 }
 0xf24   :  { %v2041_v12 = vpop.permute.xlu0 %2040 }
 0xf25   :  { %v2043_v19 = vadd.f32 %v2041_v12, %v2037_v16  ;;  %v2307_v12 = vld [vmem:[#allocation10 + $0xc8] sm:$0xff] }
 0xf27   :  { %3956 = vtanh.f32 %v2043_v19  ;;  %v2309_v19 = vld [vmem:[#allocation10 + $0xd8] sm:$0xff] }
 0xf28   :  { %v4806_v23 = vpack.c.bf16 %v2309_v19, %v2307_v12 }
 0xf31   :  { %v3957_v31 = vpop.eup %3956 }
 0xf32   :  { %v2045_v34 = vmul.f32 %v3957_v31, %v3955_v29  ;;  %v4812_v29 = vpack.c.bf16 %v2308_v22, %v2306_v15  ;;  %v2209_v31 = vld [vmem:[#allocation11 + $0x2] sm:$0x3] }
 0xf33   :  { %v2214_v35 = vrot.slane %v2209_v31, %v4375_v36  ;;  %v2218_v38 = vrot.slane %v2209_v31, %v4377_v39 }
 0xf34   :  { %2049 = vrot.lane.b32.xlu1 %v2045_v34, %s4191_s25  ;;  %v2112_v34 = vrot.slane %v2103_v28, %v4377_v39 }
 0xfa6   :  { %v2050_v47 = vpop.permute.xlu1 %2049 }
 0xfa7   :  { %v4785_v52 = vsel %vm2047_vm14, %v2050_v47, 0.0 }
 0xfa8   :  { %v2060_v58 = vrot.slane %v4785_v52, %v4386_v57 }
 0xfaa   :  { %v2061_v60 = vcombine.high %v2060_v58, %v2060_v58  ;;  %v2068_v63 = vrot.slane %v2060_v58, %v4386_v57 }
 0xfac   :  { %v2075_v51 = vrot.slane %v2061_v60, %v4386_v57  ;;  %2078 = vst.msk [vmem:[#allocation3 + $0x7] sm:$0x1] %vm581_vm6, %v2068_v63 }
 0xfad   :  { %2080 = vst.msk [vmem:[#allocation3] sm:$0x1] %vm584_vm7, %v2068_v63 }
 0xfae   :  { %2079 = vst.msk [vmem:[#allocation3 + $0xf] sm:$0x1] %vm581_vm6, %v2075_v51 }
 0xfaf   :  { %2081 = vst.msk [vmem:[#allocation3 + $0x8] sm:$0x1] %vm584_vm7, %v2075_v51 }
 0xfb4   :  { %v2085_v16 = vld [vmem:[#allocation3] sm:$0xff] }
 0xfb5   :  { %3519 = vmatmul.mubr.msk.f32.vlgmr.msra.gmra.mrb[10].mxu0 %vm440_vm5, %v2085_v16 }
 0xfb6   :  { %v2192_v21 = vld [vmem:[#allocation3 + $0x8] sm:$0xff]  ;;  %3715 = vmatpush1.bf16.msra.mxu0 %v4795_v61  ;;  %2438 = vmatprep.mubr.f32.mxu0 %v4188_v1 }
 0xfb7   :  { %3520 = vmatmul.mubr.msk.f32.vlgmr.msra.gmra.mrb[10].mxu1 %vm440_vm5, %v2192_v21  ;;  %3717 = vmatprep.subr.bf16.mxu0 %v4797_v53 }
 0xfb8   :  { %3731 = vmatpush1.bf16.msra.mxu1 %v4795_v61  ;;  %2608 = vmatprep.mubr.f32.mxu1 %v4188_v1 }
 0xfb9   :  { %3733 = vmatprep.subr.bf16.mxu1 %v4797_v53 }
 0xfba   :  { %3719 = vmatpush1.bf16.msra.mxu0 %v4801_v14 }
 0xfbb   :  { %3721 = vmatprep.subr.bf16.mxu0 %v4806_v23 }
 0xfbc   :  { %3735 = vmatpush1.bf16.msra.mxu1 %v4801_v14 }
 0xfbd   :  { %3737 = vmatprep.subr.bf16.mxu1 %v4806_v23 }
 0xfbe   :  { %3723 = vmatpush1.bf16.msra.mxu0 %v4812_v29 }
 0xfbf   :  { %3725 = vmatprep.subr.bf16.mxu0 %v4815_v30 }
 0xfc0   :  { %3739 = vmatpush1.bf16.msra.mxu1 %v4812_v29 }
 0xfc1   :  { %3741 = vmatprep.subr.bf16.mxu1 %v4815_v30 }
 0xfc2   :  { %3727 = vmatpush1.bf16.msra.mxu0 %v4820_v27 }
 0xfc3   :  { %3745 = vmatprep.subr.bf16.mxu0 %v4771_v44 }
 0xfc4   :  { %3743 = vmatpush1.bf16.msra.mxu1 %v4820_v27 }
 0xfc5   :  { %2439 = vmatmul.mubr.f32.vlgmr.msra.gmra.mrb[12].mxu0 %v4188_v1  ;;  %3761 = vmatprep.subr.bf16.mxu1 %v4771_v44 }
 0xfc6   :  { %3747 = vmatpush1.bf16.msra.mxu0 %v4795_v61  ;;  %2783 = vmatprep.mubr.f32.mxu0 %v4188_v1 }
 0xfc7   :  { %3749 = vmatprep.subr.bf16.mxu0 %v4797_v53 }
 0xfca   :  { %3751 = vmatpush1.bf16.msra.mxu0 %v4801_v14 }
 0xfcb   :  { %3753 = vmatprep.subr.bf16.mxu0 %v4806_v23 }
 0xfce   :  { %3755 = vmatpush1.bf16.msra.mxu0 %v4812_v29 }
 0xfcf   :  { %3757 = vmatprep.subr.bf16.mxu0 %v4815_v30 }
 0xfd2   :  { %3759 = vmatpush1.bf16.msra.mxu0 %v4820_v27 }
 0xfd3   :  { %3777 = vmatprep.subr.bf16.mxu0 %v4771_v44 }
0x1088   :  { %v2184_v37 = vpop.f32.mrb[10].mxu0 }
0x1089   :  { %v2185_v40 = vadd.f32 %v2184_v37, %v2108_v32  ;;  %v2186_v41 = vpop.f32.mrb[11].mxu0 }
0x108a   :  { %v2187_v42 = vadd.f32 %v2186_v41, %v2112_v34  ;;  %v2290_v43 = vpop.f32.mrb[10].mxu1 }
0x108b   :  { %2189 = vst [vmem:[#allocation2] sm:$0xff] %v2185_v40  ;;  %v2291_v47 = vadd.f32 %v2290_v43, %v2214_v35  ;;  %v2292_v58 = vpop.f32.mrb[11].mxu1 }
0x108c   :  { %2190 = vst [vmem:[#allocation2 + $0x8] sm:$0xff] %v2187_v42  ;;  %v2293_v60 = vadd.f32 %v2292_v58, %v2218_v38 }
0x108d   :  { %2295 = vst [vmem:[#allocation2 + $0x10] sm:$0xff] %v2291_v47 }
0x108e   :  { %2296 = vst [vmem:[#allocation2 + $0x18] sm:$0xff] %v2293_v60 }
0x1093   :  { %v2314_v63 = vld [vmem:[#allocation2] ss:$8 sm:$0x3]  ;;  %v2316_v51 = vld [vmem:[#allocation2 + $0x7] ss:$8 sm:$0x3] }
0x1094   :  { %v2481_v2 = vld [vmem:[#allocation2 + $0x1] ss:$8 sm:$0x3]  ;;  %v2483_v6 = vld [vmem:[#allocation2 + $0x6] ss:$8 sm:$0x3] }
0x1095   :  { %v2315_v59 = vld [vmem:[#allocation2 + $0x10] ss:$8 sm:$0x3]  ;;  %v2317_v36 = vld [vmem:[#allocation2 + $0x17] ss:$8 sm:$0x3] }
0x1096   :  { %v2320_v7 = vcombine.low %v2314_v63, %v2315_v59  ;;  %v2347_v17 = vcombine.low %v2316_v51, %v2317_v36  ;;  %v2482_v39 = vld [vmem:[#allocation2 + $0x11] ss:$8 sm:$0x3]  ;;  %v2484_v18 = vld [vmem:[#allocation2 + $0x16] ss:$8 sm:$0x3] }
0x1097   :  { %v2487_v16 = vcombine.low %v2481_v2, %v2482_v39  ;;  %v2514_v12 = vcombine.low %v2483_v6, %v2484_v18  ;;  %v2656_v19 = vld [vmem:[#allocation2 + $0x2] ss:$8 sm:$0x3]  ;;  %v2657_v21 = vld [vmem:[#allocation2 + $0x12] ss:$8 sm:$0x3] }
0x1098   :  { %v2327_v15 = vrot.slane %v2320_v7, %v4386_v57  ;;  %v2354_v22 = vrot.slane %v2347_v17, %v4386_v57  ;;  %v2440_v25 = vpop.f32.mrb[12].mxu0  ;;  %v2662_v24 = vcombine.low %v2656_v19, %v2657_v21  ;;  %v2659_v40 = vld [vmem:[#allocation2 + $0x15] ss:$8 sm:$0x3] }
0x1099   :  { %v2442_v26 = vpop.f32.mrb[13].mxu0  ;;  %v2494_v33 = vrot.slane %v2487_v16, %v4386_v57  ;;  %v2521_v28 = vrot.slane %v2514_v12, %v4386_v57  ;;  %v2832_v58 = vld [vmem:[#allocation2 + $0x13] ss:$8 sm:$0x3] }
0x109a   :  { %v4848_v31 = vrot.slane %v2327_v15, %v4386_v57  ;;  %v4851_v32 = vrot.slane %v2354_v22, %v4386_v57  ;;  %v2328_v34 = vcombine.high %v2327_v15, %v2327_v15  ;;  %v2355_v35 = vcombine.high %v2354_v22, %v2354_v22  ;;  %v2658_v2 = vld [vmem:[#allocation2 + $0x5] ss:$8 sm:$0x3]  ;;  %v2834_v6 = vld [vmem:[#allocation2 + $0x14] ss:$8 sm:$0x3] }
0x109b   :  { %v2495_v37 = vcombine.high %v2494_v33, %v2494_v33  ;;  %v2522_v38 = vcombine.high %v2521_v28, %v2521_v28  ;;  %v4858_v42 = vrot.slane %v2494_v33, %v4386_v57  ;;  %v4861_v43 = vrot.slane %v2521_v28, %v4386_v57  ;;  %v2831_v36 = vld [vmem:[#allocation2 + $0x3] ss:$8 sm:$0x3]  ;;  %v2833_v18 = vld [vmem:[#allocation2 + $0x4] ss:$8 sm:$0x3] }
0x109c   :  { %v2372_v41 = vsel %vm4390_vm1, %v4848_v31, %v4851_v32  ;;  %v2669_v47 = vrot.slane %v2662_v24, %v4386_v57  ;;  %v2689_v59 = vcombine.low %v2658_v2, %v2659_v40  ;;  %v4871_v17 = vrot.slane %v2328_v34, %v4386_v57 }
0x109d   :  { %v2445_v60 = vadd.f32 %v2440_v25, %v2372_v41  ;;  %v4865_v63 = vrot.slane %v2495_v37, %v4386_v57  ;;  %v4868_v51 = vrot.slane %v2522_v38, %v4386_v57  ;;  %v2837_v16 = vcombine.low %v2831_v36, %v2832_v58 }
0x109e   :  { %v2670_v39 = vcombine.high %v2669_v47, %v2669_v47  ;;  %v4874_v12 = vrot.slane %v2355_v35, %v4386_v57  ;;  %v2696_v19 = vrot.slane %v2689_v59, %v4386_v57  ;;  %v2864_v21 = vcombine.low %v2833_v18, %v2834_v6 }
0x109f   :  { %v3521_v7 = vmul.f32 -1.442695, %v2445_v60  ;;  %v4882_v22 = vrot.slane %v2669_v47, %v4386_v57  ;;  %v2844_v25 = vrot.slane %v2837_v16, %v4386_v57  ;;  %v2539_v48 = vsel %vm4390_vm1, %v4858_v42, %v4861_v43 }
0x10a0   :  { %v4890_v33 = vrot.slane %v2696_v19, %v4386_v57  ;;  %v2697_v28 = vcombine.high %v2696_v19, %v2696_v19  ;;  %v2871_v34 = vrot.slane %v2864_v21, %v4386_v57  ;;  %v4894_v35 = vrot.slane %v2670_v39, %v4386_v57 }
0x10a1   :  { %3958 = vpow2.f32 %v3521_v7  ;;  %v4897_v37 = vrot.slane %v2844_v25, %v4386_v57  ;;  %v2845_v38 = vcombine.high %v2844_v25, %v2844_v25  ;;  %v2373_v59 = vsel %vm4401_vm2, %v4871_v17, %v4874_v12 }
0x10a2   :  { %v4904_v41 = vrot.slane %v2697_v28, %v4386_v57  ;;  %v4907_v47 = vrot.slane %v2871_v34, %v4386_v57  ;;  %v2872_v58 = vcombine.high %v2871_v34, %v2871_v34  ;;  %v2446_v16 = vadd.f32 %v2442_v26, %v2373_v59 }
0x10a3   :  { %v4910_v60 = vrot.slane %v2845_v38, %v4386_v57 }
0x10a4   :  { %v4925_v36 = vrot.slane %v2872_v58, %v4386_v57  ;;  %v3006_v7 = vsel %vm4390_vm1, %v4907_v47, %v4897_v37  ;;  %3960 = vtanh.f32 %v2446_v16  ;;  %v3522_v34 = vmul.f32 -1.442695, %v2446_v16 }
0x10ab   :  { %v3959_v19 = vpop.eup %3958 }
0x10ac   :  { %v2453_v21 = vadd.f32 1.0, %v3959_v19 }
0x10ae   :  { %3962 = vrcp.f32 %v2453_v21  ;;  %v3961_v57 = vpop.eup %3960 }
0x10af   :  { %3964 = vpow2.f32 %v3522_v34  ;;  %v2540_v34 = vsel %vm4401_vm2, %v4865_v63, %v4868_v51 }
0x10b8   :  { %v3963_v25 = vpop.eup %3962 }
0x10b9   :  { %v2461_v28 = vmul.f32 %v3963_v25, %v3961_v57  ;;  %v3965_v38 = vpop.eup %3964  ;;  %v2460_v6 = vmul.f32 0.0, %v3963_v25 }
0x10ba   :  { %v2454_v58 = vadd.f32 1.0, %v3965_v38 }
0x10bb   :  { %2463 = vrot.lane.b32.xlu0 %v2461_v28, %s4191_s25 }
0x10bc   :  { %3966 = vrcp.f32 %v2454_v58 }
0x10c6   :  { %v3967_v26 = vpop.eup %3966 }
0x112d   :  { %v2464_v40 = vpop.permute.xlu0 %2463 }
0x112e   :  { %v2466_v24 = vadd.f32 %v2464_v40, %v2460_v6 }
0x1130   :  { %3968 = vtanh.f32 %v2466_v24  ;;  %2475 = vrot.lane.b32.xlu0 %v2466_v24, %s4191_s25 }
0x113a   :  { %v3969_v59 = vpop.eup %3968 }
0x113b   :  { %v2468_v19 = vmul.f32 %v3969_v59, %v3967_v26 }
0x113d   :  { %2470 = vrot.lane.b32.xlu1 %v2468_v19, %s4191_s25 }
0x11a2   :  { %v2476_v21 = vpop.permute.xlu0 %2475 }
0x11a3   :  { %v2478_v16 = vsel %vm545_vm4, %v2476_v21, 0.0 }
0x11a4   :  { %2631 = vrot.lane.b32.xlu1 %v2478_v16, %s4191_s25 }
0x11af   :  { %v2471_v57 = vpop.permute.xlu1 %2470 }
0x11b0   :  { %v4949_v40 = vsel %vm545_vm4, %v2471_v57, 0.0 }
0x11b1   :  { %3523 = vmatmul.mubr.msk.f32.vlgmr.msra.gmra.mrb[12].mxu1 %vm440_vm5, %v4949_v40 }
0x11b2   :  { %3763 = vmatpush1.bf16.msra.mxu1 %v4795_v61  ;;  %2958 = vmatprep.mubr.f32.mxu1 %v4188_v1 }
0x11b3   :  { %3765 = vmatprep.subr.bf16.mxu1 %v4797_v53 }
0x11b6   :  { %3767 = vmatpush1.bf16.msra.mxu1 %v4801_v14 }
0x11b7   :  { %3769 = vmatprep.subr.bf16.mxu1 %v4806_v23 }
0x11ba   :  { %3771 = vmatpush1.bf16.msra.mxu1 %v4812_v29 }
0x11bb   :  { %3773 = vmatprep.subr.bf16.mxu1 %v4815_v30 }
0x11be   :  { %3775 = vmatpush1.bf16.msra.mxu1 %v4820_v27 }
0x11bf   :  { %3793 = vmatprep.subr.bf16.mxu1 %v4771_v44 }
0x1284   :  { %v2610_v24 = vpop.f32.mrb[12].mxu1 }
0x1285   :  { %v2615_v6 = vadd.f32 %v2610_v24, %v2539_v48  ;;  %v2612_v25 = vpop.f32.mrb[13].mxu1  ;;  %v2632_v24 = vpop.permute.xlu1 %2631 }
0x1286   :  { %v2616_v38 = vadd.f32 %v2612_v25, %v2540_v34 }
0x1287   :  { %v3524_v28 = vmul.f32 -1.442695, %v2615_v6 }
0x1288   :  { %v3525_v57 = vmul.f32 -1.442695, %v2616_v38 }
0x1289   :  { %3970 = vpow2.f32 %v3524_v28 }
0x128a   :  { %3972 = vtanh.f32 %v2616_v38 }
0x1293   :  { %v3971_v58 = vpop.eup %3970 }
0x1294   :  { %v2623_v26 = vadd.f32 1.0, %v3971_v58  ;;  %v3973_v59 = vpop.eup %3972 }
0x1296   :  { %3974 = vrcp.f32 %v2623_v26 }
0x1297   :  { %3976 = vpow2.f32 %v3525_v57 }
0x12a0   :  { %v3975_v19 = vpop.eup %3974 }
0x12a1   :  { %v2635_v21 = vmul.f32 %v3975_v19, %v3973_v59  ;;  %v3977_v48 = vpop.eup %3976  ;;  %v2634_v28 = vmul.f32 %v3975_v19, %v2632_v24 }
0x12a2   :  { %v2624_v6 = vadd.f32 1.0, %v3977_v48  ;;  %v2715_v48 = vsel %vm4401_vm2, %v4894_v35, %v4904_v41 }
0x12a3   :  { %2637 = vrot.lane.b32.xlu0 %v2635_v21, %s4191_s25 }
0x12a4   :  { %3978 = vrcp.f32 %v2624_v6 }
0x12ae   :  { %v3979_v25 = vpop.eup %3978 }
0x1315   :  { %v2638_v15 = vpop.permute.xlu0 %2637 }
0x1316   :  { %v2640_v39 = vadd.f32 %v2638_v15, %v2634_v28 }
0x1318   :  { %3980 = vtanh.f32 %v2640_v39  ;;  %2649 = vrot.lane.b32.xlu0 %v2640_v39, %s4191_s25  ;;  %v2714_v39 = vsel %vm4390_vm1, %v4882_v22, %v4890_v33 }
0x1322   :  { %v3981_v34 = vpop.eup %3980 }
0x1323   :  { %v2642_v58 = vmul.f32 %v3981_v34, %v3979_v25 }
0x1325   :  { %2644 = vrot.lane.b32.xlu1 %v2642_v58, %s4191_s25 }
0x138a   :  { %v2650_v26 = vpop.permute.xlu0 %2649 }
0x138b   :  { %v2652_v38 = vsel %vm4469_vm8, %v2650_v26, %v2478_v16 }
0x138c   :  { %2806 = vrot.lane.b32.xlu1 %v2652_v38, %s4191_s25 }
0x1397   :  { %v4976_v59 = vpop.permute.xlu1 %2644 }
0x1398   :  { %v2647_v15 = vsel %vm4469_vm8, %v4976_v59, %v4949_v40 }
0x1399   :  { %3526 = vmatmul.mubr.msk.f32.vlgmr.msra.gmra.mrb[14].mxu0 %vm440_vm5, %v2647_v15 }
0x139a   :  { %3779 = vmatpush1.bf16.msra.mxu0 %v4795_v61  ;;  %3075 = vmatprep.mubr.f32.mxu0 %v4188_v1 }
0x139b   :  { %3781 = vmatprep.subr.bf16.mxu0 %v4797_v53 }
0x139e   :  { %3783 = vmatpush1.bf16.msra.mxu0 %v4801_v14 }
0x139f   :  { %3785 = vmatprep.subr.bf16.mxu0 %v4806_v23 }
0x13a2   :  { %3787 = vmatpush1.bf16.msra.mxu0 %v4812_v29 }
0x13a3   :  { %3789 = vmatprep.subr.bf16.mxu0 %v4815_v30 }
0x13a6   :  { %3791 = vmatpush1.bf16.msra.mxu0 %v4820_v27 }
0x13a7   :  { %3809 = vmatprep.subr.bf16.mxu0 %v4771_v44 }
0x146c   :  { %v2785_v16 = vpop.f32.mrb[14].mxu0 }
0x146d   :  { %v2790_v19 = vadd.f32 %v2785_v16, %v2714_v39  ;;  %v2787_v21 = vpop.f32.mrb[15].mxu0  ;;  %v2807_v16 = vpop.permute.xlu1 %2806 }
0x146e   :  { %v2791_v24 = vadd.f32 %v2787_v21, %v2715_v48 }
0x146f   :  { %v3527_v57 = vmul.f32 -1.442695, %v2790_v19 }
0x1470   :  { %v3528_v26 = vmul.f32 -1.442695, %v2791_v24 }
0x1471   :  { %3982 = vpow2.f32 %v3527_v57 }
0x1472   :  { %3984 = vtanh.f32 %v2791_v24 }
0x147b   :  { %v3983_v6 = vpop.eup %3982 }
0x147c   :  { %v2798_v28 = vadd.f32 1.0, %v3983_v6  ;;  %v3985_v25 = vpop.eup %3984 }
0x147e   :  { %3986 = vrcp.f32 %v2798_v28 }
0x147f   :  { %3988 = vpow2.f32 %v3528_v26  ;;  %v2890_v26 = vsel %vm4401_vm2, %v4910_v60, %v4925_v36 }
0x1488   :  { %v3987_v34 = vpop.eup %3986 }
0x1489   :  { %v2810_v58 = vmul.f32 %v3987_v34, %v3985_v25  ;;  %v3989_v39 = vpop.eup %3988  ;;  %v2809_v57 = vmul.f32 %v3987_v34, %v2807_v16 }
0x148a   :  { %v2799_v19 = vadd.f32 1.0, %v3989_v39 }
0x148b   :  { %2812 = vrot.lane.b32.xlu0 %v2810_v58, %s4191_s25 }
0x148c   :  { %3990 = vrcp.f32 %v2799_v19 }
0x1496   :  { %v3991_v21 = vpop.eup %3990 }
0x14fd   :  { %v2813_v2 = vpop.permute.xlu0 %2812 }
0x14fe   :  { %v2815_v18 = vadd.f32 %v2813_v2, %v2809_v57 }
0x1500   :  { %3992 = vtanh.f32 %v2815_v18  ;;  %2824 = vrot.lane.b32.xlu0 %v2815_v18, %s4191_s25  ;;  %v2889_v18 = vsel %vm4390_vm1, %v4897_v37, %v4907_v47 }
0x150a   :  { %v3993_v48 = vpop.eup %3992 }
0x150b   :  { %v2817_v6 = vmul.f32 %v3993_v48, %v3991_v21 }
0x150d   :  { %2819 = vrot.lane.b32.xlu1 %v2817_v6, %s4191_s25 }
0x1572   :  { %v2825_v28 = vpop.permute.xlu0 %2824 }
0x1573   :  { %v2827_v24 = vsel %vm4524_vm9, %v2825_v28, %v2652_v38 }
0x1574   :  { %2981 = vrot.lane.b32.xlu1 %v2827_v24, %s4191_s25 }
0x157f   :  { %v5006_v25 = vpop.permute.xlu1 %2819 }
0x1580   :  { %v2822_v2 = vsel %vm4524_vm9, %v5006_v25, %v2647_v15 }
0x1581   :  { %3529 = vmatmul.mubr.msk.f32.vlgmr.msra.gmra.mrb[14].mxu1 %vm440_vm5, %v2822_v2 }
0x1582   :  { %3795 = vmatpush1.bf16.msra.mxu1 %v4795_v61  ;;  %3192 = vmatprep.mubr.f32.mxu1 %v4188_v1 }
0x1583   :  { %3797 = vmatprep.subr.bf16.mxu1 %v4797_v53 }
0x1586   :  { %3799 = vmatpush1.bf16.msra.mxu1 %v4801_v14 }
0x1587   :  { %3801 = vmatprep.subr.bf16.mxu1 %v4806_v23 }
0x158a   :  { %3803 = vmatpush1.bf16.msra.mxu1 %v4812_v29 }
0x158b   :  { %3805 = vmatprep.subr.bf16.mxu1 %v4815_v30 }
0x158e   :  { %3807 = vmatpush1.bf16.msra.mxu1 %v4820_v27 }
0x158f   :  { %3825 = vmatprep.subr.bf16.mxu1 %v4771_v44 }
0x15e6   :  { %v2982_v28 = vpop.permute.xlu1 %2981 }
0x1654   :  { %v2960_v38 = vpop.f32.mrb[14].mxu1 }
0x1655   :  { %v2965_v15 = vadd.f32 %v2960_v38, %v2889_v18  ;;  %v2962_v34 = vpop.f32.mrb[15].mxu1 }
0x1656   :  { %v2966_v39 = vadd.f32 %v2962_v34, %v2890_v26 }
0x1657   :  { %v3530_v58 = vmul.f32 -1.442695, %v2965_v15 }
0x1658   :  { %v3531_v48 = vmul.f32 -1.442695, %v2966_v39 }
0x1659   :  { %3994 = vpow2.f32 %v3530_v58 }
0x165a   :  { %3996 = vtanh.f32 %v2966_v39 }
0x1663   :  { %v3995_v16 = vpop.eup %3994 }
0x1664   :  { %v2973_v19 = vadd.f32 1.0, %v3995_v16  ;;  %v3997_v44 = vpop.eup %3996 }
0x1666   :  { %3998 = vrcp.f32 %v2973_v19 }
0x1667   :  { %4000 = vpow2.f32 %v3531_v48  ;;  %v5247_v48 = vsel %vm4401_vm2, %v4925_v36, %v4910_v60 }
0x1670   :  { %v3999_v57 = vpop.eup %3998 }
0x1671   :  { %v2985_v21 = vmul.f32 %v3999_v57, %v3997_v44  ;;  %v4001_v6 = vpop.eup %4000  ;;  %v2984_v38 = vmul.f32 %v3999_v57, %v2982_v28 }
0x1672   :  { %v2974_v18 = vadd.f32 1.0, %v4001_v6 }
0x1673   :  { %2987 = vrot.lane.b32.xlu0 %v2985_v21, %s4191_s25 }
0x1674   :  { %4002 = vrcp.f32 %v2974_v18 }
0x167e   :  { %v4003_v34 = vpop.eup %4002 }
0x16e5   :  { %v2988_v15 = vpop.permute.xlu0 %2987 }
0x16e6   :  { %v2990_v58 = vadd.f32 %v2988_v15, %v2984_v38 }
0x16e8   :  { %4004 = vtanh.f32 %v2990_v58  ;;  %2999 = vrot.lane.b32.xlu0 %v2990_v58, %s4191_s25 }
0x16f2   :  { %v4005_v26 = vpop.eup %4004 }
0x16f3   :  { %v2992_v16 = vmul.f32 %v4005_v26, %v4003_v34 }
0x16f5   :  { %2994 = vrot.lane.b32.xlu1 %v2992_v16, %s4191_s25 }
0x175a   :  { %v3000_v19 = vpop.permute.xlu0 %2999 }
0x175b   :  { %v3002_v39 = vsel %vm4579_vm10, %v3000_v19, %v2827_v24 }
0x175c   :  { %3098 = vrot.lane.b32.xlu1 %v3002_v39, %s4191_s25 }
0x1767   :  { %v5035_v44 = vpop.permute.xlu1 %2994 }
0x1768   :  { %v2997_v57 = vsel %vm4579_vm10, %v5035_v44, %v2822_v2 }
0x1769   :  { %3532 = vmatmul.mubr.msk.f32.vlgmr.msra.gmra.mrb[16].mxu0 %vm440_vm5, %v2997_v57 }
0x176a   :  { %3811 = vmatpush1.bf16.msra.mxu0 %v4795_v61  ;;  %3309 = vmatprep.mubr.f32.mxu0 %v4188_v1 }
0x176b   :  { %3813 = vmatprep.subr.bf16.mxu0 %v4797_v53 }
0x176e   :  { %3815 = vmatpush1.bf16.msra.mxu0 %v4801_v14 }
0x176f   :  { %3817 = vmatprep.subr.bf16.mxu0 %v4806_v23 }
0x1772   :  { %3819 = vmatpush1.bf16.msra.mxu0 %v4812_v29 }
0x1773   :  { %3821 = vmatprep.subr.bf16.mxu0 %v4815_v30 }
0x1776   :  { %3823 = vmatpush1.bf16.msra.mxu0 %v4820_v27 }
0x183c   :  { %v3077_v24 = vpop.f32.mrb[16].mxu0 }
0x183d   :  { %v3082_v2 = vadd.f32 %v3077_v24, %v3006_v7  ;;  %v3079_v21 = vpop.f32.mrb[17].mxu0  ;;  %v3099_v7 = vpop.permute.xlu1 %3098 }
0x183e   :  { %v3083_v6 = vadd.f32 %v3079_v21, %v5247_v48 }
0x183f   :  { %v3533_v28 = vmul.f32 -1.442695, %v3082_v2 }
0x1840   :  { %v3534_v37 = vmul.f32 -1.442695, %v3083_v6 }
0x1841   :  { %4006 = vpow2.f32 %v3533_v28 }
0x1842   :  { %4008 = vtanh.f32 %v3083_v6 }
0x184b   :  { %v4007_v18 = vpop.eup %4006 }
0x184c   :  { %v3090_v38 = vadd.f32 1.0, %v4007_v18  ;;  %v4009_v15 = vpop.eup %4008 }
0x184e   :  { %4010 = vrcp.f32 %v3090_v38 }
0x184f   :  { %4012 = vpow2.f32 %v3534_v37 }
0x1858   :  { %v4011_v58 = vpop.eup %4010 }
0x1859   :  { %v3102_v34 = vmul.f32 %v4011_v58, %v4009_v15  ;;  %v4013_v47 = vpop.eup %4012  ;;  %v3101_v16 = vmul.f32 %v4011_v58, %v3099_v7 }
0x185a   :  { %v3091_v26 = vadd.f32 1.0, %v4013_v47 }
0x185b   :  { %3104 = vrot.lane.b32.xlu0 %v3102_v34, %s4191_s25 }
0x185c   :  { %4014 = vrcp.f32 %v3091_v26 }
0x1866   :  { %v4015_v36 = vpop.eup %4014 }
0x18cd   :  { %v3105_v19 = vpop.permute.xlu0 %3104 }
0x18ce   :  { %v3107_v60 = vadd.f32 %v3105_v19, %v3101_v16 }
0x18d0   :  { %4016 = vtanh.f32 %v3107_v60  ;;  %3116 = vrot.lane.b32.xlu0 %v3107_v60, %s4191_s25 }
0x18da   :  { %v4017_v24 = vpop.eup %4016 }
0x18db   :  { %v3109_v2 = vmul.f32 %v4017_v24, %v4015_v36  ;;  %v5250_v24 = vsel %vm4390_vm1, %v4861_v43, %v4858_v42  ;;  %v88_v42 = vld [vmem:[%s5221_s0] sm:$0xff]  ;;  %v3491_v43 = vld [vmem:[#allocation5] ss:$0 sm:$0xff] }
0x18dd   :  { %3111 = vrot.lane.b32.xlu1 %v3109_v2, %s4191_s25 }
0x1942   :  { %v3117_v21 = vpop.permute.xlu0 %3116 }
0x1943   :  { %v3119_v48 = vsel %vm4633_vm11, %v3117_v21, %v3002_v39 }
0x1944   :  { %3215 = vrot.lane.b32.xlu1 %v3119_v48, %s4191_s25 }
0x194f   :  { %v5065_v6 = vpop.permute.xlu1 %3111 }
0x1950   :  { %v3114_v28 = vsel %vm4633_vm11, %v5065_v6, %v2997_v57  ;;  %v3120_v49 = vsel %vm4633_vm11, %v5065_v6, 0.0 }
0x1951   :  { %3535 = vmatmul.mubr.msk.f32.vlgmr.msra.gmra.mrb[16].mxu1 %vm440_vm5, %v3114_v28 }
0x1952   :  { %3827 = vmatpush1.bf16.msra.mxu1 %v4795_v61  ;;  %3426 = vmatprep.mubr.f32.mxu1 %v4188_v1  ;;  %v5248_v61 = vsel %vm4390_vm1, %v4890_v33, %v4882_v22 }
0x1953   :  { %3829 = vmatprep.subr.bf16.mxu1 %v4797_v53  ;;  %v5249_v53 = vsel %vm4401_vm2, %v4904_v41, %v4894_v35 }
0x1956   :  { %3831 = vmatpush1.bf16.msra.mxu1 %v4801_v14 }
0x1957   :  { %3833 = vmatprep.subr.bf16.mxu1 %v4806_v23 }
0x195a   :  { %3835 = vmatpush1.bf16.msra.mxu1 %v4812_v29 }
0x195b   :  { %3837 = vmatprep.subr.bf16.mxu1 %v4815_v30 }
0x195e   :  { %3839 = vmatpush1.bf16.msra.mxu1 %v4820_v27 }
0x19b6   :  { %v3216_v15 = vpop.permute.xlu1 %3215 }
0x1a24   :  { %v3194_v39 = vpop.f32.mrb[16].mxu1 }
0x1a25   :  { %v3199_v57 = vadd.f32 %v3194_v39, %v5248_v61  ;;  %v3196_v1 = vpop.f32.mrb[17].mxu1 }
0x1a26   :  { %v3200_v14 = vadd.f32 %v3196_v1, %v5249_v53 }
0x1a27   :  { %v3536_v23 = vmul.f32 -1.442695, %v3199_v57 }
0x1a28   :  { %v3537_v22 = vmul.f32 -1.442695, %v3200_v14 }
0x1a29   :  { %4018 = vpow2.f32 %v3536_v23  ;;  %v97_v23 = vmul.f32 %v3491_v43, %v88_v42 }
0x1a2a   :  { %4020 = vtanh.f32 %v3200_v14 }
0x1a33   :  { %v4019_v29 = vpop.eup %4018 }
0x1a34   :  { %v3207_v30 = vadd.f32 1.0, %v4019_v29  ;;  %v4021_v27 = vpop.eup %4020 }
0x1a36   :  { %4022 = vrcp.f32 %v3207_v30 }
0x1a37   :  { %4024 = vpow2.f32 %v3537_v22 }
0x1a40   :  { %v4023_v18 = vpop.eup %4022 }
0x1a41   :  { %v3219_v38 = vmul.f32 %v4023_v18, %v4021_v27  ;;  %v4025_v33 = vpop.eup %4024  ;;  %v3218_v34 = vmul.f32 %v4023_v18, %v3216_v15 }
0x1a42   :  { %v3208_v58 = vadd.f32 1.0, %v4025_v33 }
0x1a43   :  { %3221 = vrot.lane.b32.xlu0 %v3219_v38, %s4191_s25 }
0x1a44   :  { %4026 = vrcp.f32 %v3208_v58 }
0x1a4e   :  { %v4027_v41 = vpop.eup %4026 }
0x1ab5   :  { %v3222_v37 = vpop.permute.xlu0 %3221 }
0x1ab6   :  { %v3224_v35 = vadd.f32 %v3222_v37, %v3218_v34  ;;  %v89_v34 = vld [vmem:[%s5221_s0 + $0x8] sm:$0xff] }
0x1ab7   :  { %v98_v37 = vmul.f32 %v3491_v43, %v89_v34 }
0x1ab8   :  { %4028 = vtanh.f32 %v3224_v35  ;;  %3233 = vrot.lane.b32.xlu0 %v3224_v35, %s4191_s25 }
0x1ab9   :  { %v103_v35 = vsel %vm99_vm0, %v98_v37, 0.0 }
0x1ac2   :  { %v4029_v47 = vpop.eup %4028 }
0x1ac3   :  { %v3226_v7 = vmul.f32 %v4029_v47, %v4027_v41 }
0x1ac5   :  { %3228 = vrot.lane.b32.xlu1 %v3226_v7, %s4191_s25 }
0x1b2a   :  { %v3234_v26 = vpop.permute.xlu0 %3233 }
0x1b2b   :  { %v3236_v16 = vsel %vm4687_vm12, %v3234_v26, %v3119_v48  ;;  %v5251_v48 = vsel %vm4401_vm2, %v4868_v51, %v4865_v63  ;;  %v100_v63 = vsel %vm99_vm0, %v97_v23, 0.0  ;;  %vm121_vm0 = vcmask 7168  }
0x1b2c   :  { %3332 = vrot.lane.b32.xlu1 %v3236_v16, %s4191_s25 }
0x1b37   :  { %v5095_v19 = vpop.permute.xlu1 %3228 }
0x1b38   :  { %v3231_v60 = vsel %vm4687_vm12, %v5095_v19, %v3114_v28 }
0x1b39   :  { %3538 = vmatmul.mubr.msk.f32.vlgmr.msra.gmra.mrb[18].mxu0 %vm440_vm5, %v3231_v60 }
0x1b9e   :  { %v3333_v30 = vpop.permute.xlu1 %3332 }
0x1c0c   :  { %v3311_v36 = vpop.f32.mrb[18].mxu0 }
0x1c0d   :  { %v3316_v2 = vadd.f32 %v3311_v36, %v5250_v24  ;;  %v3313_v21 = vpop.f32.mrb[19].mxu0  ;;  %v3492_v24 = vld [vmem:[#allocation4] ss:$0 sm:$0xff] }
0x1c0e   :  { %v3317_v39 = vadd.f32 %v3313_v21, %v5251_v48 }
0x1c0f   :  { %v3539_v61 = vmul.f32 -1.442695, %v3316_v2  ;;  %v115_v2 = vld [vmem:[%s5222_s1] sm:$0xff] }
0x1c10   :  { %v3540_v51 = vmul.f32 -1.442695, %v3317_v39  ;;  %vm117_vm15 = vcmp.gt.f32.partialorder %v115_v2, 0.5 }
0x1c11   :  { %4030 = vpow2.f32 %v3539_v61 }
0x1c12   :  { %4032 = vtanh.f32 %v3317_v39 }
0x1c1b   :  { %v4031_v57 = vpop.eup %4030 }
0x1c1c   :  { %v3324_v28 = vadd.f32 1.0, %v4031_v57  ;;  %v4033_v1 = vpop.eup %4032 }
0x1c1e   :  { %4034 = vrcp.f32 %v3324_v28 }
0x1c1f   :  { %4036 = vpow2.f32 %v3540_v51 }
0x1c28   :  { %v4035_v53 = vpop.eup %4034 }
0x1c29   :  { %v3336_v14 = vmul.f32 %v4035_v53, %v4033_v1  ;;  %v4037_v29 = vpop.eup %4036  ;;  %v3335_v18 = vmul.f32 %v4035_v53, %v3333_v30 }
0x1c2a   :  { %v3325_v27 = vadd.f32 1.0, %v4037_v29 }
0x1c2b   :  { %3338 = vrot.lane.b32.xlu0 %v3336_v14, %s4191_s25 }
0x1c2c   :  { %4038 = vrcp.f32 %v3325_v27 }
0x1c36   :  { %v4039_v33 = vpop.eup %4038 }
0x1c4a   :  { %101 = vadd.xlane.f32.xlu0 %v100_v63 }
0x1c9d   :  { %v3339_v38 = vpop.permute.xlu0 %3338 }
0x1c9e   :  { %v3341_v22 = vadd.f32 %v3339_v38, %v3335_v18 }
0x1ca0   :  { %4040 = vtanh.f32 %v3341_v22  ;;  %3350 = vrot.lane.b32.xlu0 %v3341_v22, %s4191_s25  ;;  %v116_v22 = vld [vmem:[%s5222_s1 + $0x8] sm:$0xff]  ;;  %s4199_s1 = smov [#allocation13]  }
0x1ca1   :  { %vm118_vm4 = vcmp.gt.f32.partialorder %v116_v22, 0.5  ;;  %s3480_s12 = sshll.u32 %s4199_s1, 4  ;;  %s3481_s12 = int_to_ptr.vmem [resolvable:$true] %s3480_s12 }
0x1ca2   :  { %s4150_s15 = scalar_lea.vmem %s3481_s12, 32  ;;  %p4155_p5 = scmp.lt.s32.totalorder %s3481_s12, %s3481_s12 }
0x1ca3   :  { %p4151_p4 = scmp.ne.s32.totalorder %s3481_s12, %s4150_s15  ;;  %p4156_p6 = scmp.lt.s32.totalorder %s4150_s15, %s4150_s15 }
0x1ca5   :  { %p4157_p7 = por %p4156_p6, %p4155_p5 }
0x1ca7   :  { %p4158_p8 = pnand %p4157_p7, %p4151_p4 }
0x1caa   :  { %v4041_v15 = vpop.eup %4040 }
0x1cab   :  { %v3343_v58 = vmul.f32 %v4041_v15, %v4039_v33 }
0x1cad   :  { %3345 = vrot.lane.b32.xlu1 %v3343_v58, %s4191_s25 }
0x1cd1   :  { %104 = vadd.xlane.f32.xlu1 %v103_v35 }
0x1cd7   :  { %v102_v41 = vpop.xlane.xlu0 %101 }
0x1cd8   :  { %v113_v21 = vadd.f32 %v3492_v24, %v102_v41 }
0x1cda   :  { %v119_v48 = vsel %vm117_vm15, %v113_v21, -1e+30 }
0x1d12   :  { %v3351_v47 = vpop.permute.xlu0 %3350 }
0x1d13   :  { %v3353_v7 = vsel %vm4734_vm13, %v3351_v47, %v3236_v16  ;;  %v122_v16 = vsel %vm121_vm0, %v119_v48, -inf }
0x1d14   :  { %3449 = vrot.lane.b32.xlu1 %v3353_v7, %s4191_s25  ;;  %v123_v39 = vrot.slane %v122_v16, 4 }
0x1d16   :  { %v124_v61 = vmax.f32 %v122_v16, %v123_v39 }
0x1d18   :  { %v125_v57 = vrot.slane %v124_v61, 2 }
0x1d1a   :  { %v126_v28 = vmax.f32 %v124_v61, %v125_v57 }
0x1d1c   :  { %v127_v1 = vrot.slane %v126_v28, 1 }
0x1d1e   :  { %v128_v53 = vmax.f32 %v126_v28, %v127_v1  ;;  %v5252_v28 = vsel %vm4390_vm1, %v4851_v32, %v4848_v31  ;;  %vm598_vm1 = vcmask 1041409  }
0x1d1f   :  { %v5125_v26 = vpop.permute.xlu1 %3345 }
0x1d20   :  { %v3348_v36 = vsel %vm4734_vm13, %v5125_v26, %v3231_v60  ;;  %v136_v60 = vsub.f32 %v119_v48, %v128_v53 }
0x1d21   :  { %3541 = vmatmul.mubr.msk.f32.vlgmr.msra.gmra.mrb[18].mxu1 %vm440_vm5, %v3348_v36 }
0x1d22   :  { %v138_v14 = vmul.f32 1.442695, %v136_v60  ;;  %v5253_v60 = vsel %vm4401_vm2, %v4874_v12, %v4871_v17 }
0x1d24   :  { %4042 = vpow2.f32 %v138_v14 }
0x1d2e   :  { %v4043_v42 = vpop.eup %4042 }
0x1d2f   :  { %v142_v43 = vsel %vm121_vm0, %v4043_v42, 0.0 }
0x1d30   :  { %v143_v23 = vrot.slane %v142_v43, 4 }
0x1d32   :  { %v144_v63 = vadd.f32 %v143_v23, %v142_v43 }
0x1d34   :  { %v145_v51 = vrot.slane %v144_v63, 2 }
0x1d36   :  { %v146_v29 = vadd.f32 %v145_v51, %v144_v63 }
0x1d38   :  { %v147_v30 = vrot.slane %v146_v29, 1 }
0x1d3a   :  { %v148_v27 = vadd.f32 %v147_v30, %v146_v29 }
0x1d3c   :  { %4044 = vrcp.f32 %v148_v27 }
0x1d46   :  { %v4045_v18 = vpop.eup %4044 }
0x1d47   :  { %v157_v38 = vmul.f32 %v4045_v18, %v4043_v42 }
0x1d49   :  { %591 = vperm.xlu1 %3861, %v157_v38  }
0x1d5e   :  { %v105_v33 = vpop.xlane.xlu1 %104 }
0x1d5f   :  { %v114_v15 = vadd.f32 %v3492_v24, %v105_v33 }
0x1d61   :  { %v120_v58 = vsel %vm118_vm4, %v114_v15, -1e+30 }
0x1d62   :  { %v129_v34 = vsel %vm121_vm0, %v120_v58, -inf }
0x1d63   :  { %v130_v37 = vrot.slane %v129_v34, 4 }
0x1d65   :  { %v131_v35 = vmax.f32 %v129_v34, %v130_v37 }
0x1d67   :  { %v132_v41 = vrot.slane %v131_v35, 2 }
0x1d69   :  { %v133_v47 = vmax.f32 %v131_v35, %v132_v41 }
0x1d6b   :  { %v134_v7 = vrot.slane %v133_v47, 1 }
0x1d6d   :  { %v135_v36 = vmax.f32 %v133_v47, %v134_v7 }
0x1d6f   :  { %v137_v2 = vsub.f32 %v120_v58, %v135_v36 }
0x1d71   :  { %v140_v21 = vmul.f32 1.442695, %v137_v2 }
0x1d73   :  { %4046 = vpow2.f32 %v140_v21 }
0x1d7d   :  { %v4047_v48 = vpop.eup %4046 }
0x1d7e   :  { %v149_v16 = vsel %vm121_vm0, %v4047_v48, 0.0 }
0x1d7f   :  { %v150_v39 = vrot.slane %v149_v16, 4 }
0x1d81   :  { %v151_v61 = vadd.f32 %v150_v39, %v149_v16 }
0x1d83   :  { %v152_v57 = vrot.slane %v151_v61, 2 }
0x1d85   :  { %v153_v43 = vadd.f32 %v152_v57, %v151_v61 }
0x1d86   :  { %v3450_v27 = vpop.permute.xlu1 %3449 }
0x1d87   :  { %v154_v23 = vrot.slane %v153_v43, 1 }
0x1d89   :  { %v155_v63 = vadd.f32 %v154_v23, %v153_v43 }
0x1dc8   :  { %v592_v34 = vpop.permute.xlu1 %591 }
0x1dc9   :  { %v601_v35 = vrot.slane %v592_v34, 7  ;;  %v815_v41 = vrot.slane %v592_v34, 1  ;;  %v818_v47 = vrot.slane %v592_v34, 6  ;;  %v1033_v36 = vrot.slane %v592_v34, 2 }
0x1dca   :  { %v1037_v2 = vrot.slane %v592_v34, 5  ;;  %v1252_v21 = vrot.slane %v592_v34, 3 }
0x1df4   :  { %v3428_v24 = vpop.f32.mrb[18].mxu1 }
0x1df5   :  { %v3433_v1 = vadd.f32 %v3428_v24, %v5252_v28  ;;  %v3430_v53 = vpop.f32.mrb[19].mxu1 }
0x1df6   :  { %v3434_v14 = vadd.f32 %v3430_v53, %v5253_v60 }
0x1df7   :  { %v3542_v42 = vmul.f32 -1.442695, %v3433_v1 }
0x1df8   :  { %v3543_v17 = vmul.f32 -1.442695, %v3434_v14 }
0x1df9   :  { %4048 = vpow2.f32 %v3542_v42 }
0x1dfa   :  { %4050 = vrcp.f32 %v155_v63 }
0x1dfb   :  { %4052 = vtanh.f32 %v3434_v14 }
0x1e03   :  { %v4049_v51 = vpop.eup %4048 }
0x1e04   :  { %v3441_v29 = vadd.f32 1.0, %v4049_v51  ;;  %v4051_v3 = vpop.eup %4050 }
0x1e05   :  { %v4053_v31 = vpop.eup %4052  ;;  %v159_v20 = vmul.f32 %v4051_v3, %v4047_v48  ;;  %v1256_v48 = vrot.slane %v592_v34, 4 }
0x1e06   :  { %4054 = vrcp.f32 %v3441_v29 }
0x1e07   :  { %4056 = vpow2.f32 %v3543_v17 }
0x1e10   :  { %v4055_v32 = vpop.eup %4054 }
0x1e11   :  { %v3453_v30 = vmul.f32 %v4055_v32, %v4053_v31  ;;  %v4057_v12 = vpop.eup %4056  ;;  %v3452_v38 = vmul.f32 %v4055_v32, %v3450_v27 }
0x1e12   :  { %v3442_v18 = vadd.f32 1.0, %v4057_v12 }
0x1e13   :  { %3455 = vrot.lane.b32.xlu0 %v3453_v30, %s4191_s25 }
0x1e14   :  { %4058 = vrcp.f32 %v3442_v18 }
0x1e17   :  { %595 = vperm.xlu0 %3860, %v159_v20  }
0x1e1e   :  { %v4059_v15 = vpop.eup %4058 }
0x1e85   :  { %v3456_v22 = vpop.permute.xlu0 %3455 }
0x1e86   :  { %v3458_v33 = vadd.f32 %v3456_v22, %v3452_v38 }
0x1e88   :  { %4060 = vtanh.f32 %v3458_v33 }
0x1e92   :  { %v4061_v58 = vpop.eup %4060 }
0x1e93   :  { %v3460_v37 = vmul.f32 %v4061_v58, %v4059_v15 }
0x1e95   :  { %3462 = vrot.lane.b32.xlu1 %v3460_v37, %s4191_s25 }
0x1e96   :  { %v596_v7 = vpop.permute.xlu0 %595 }
0x1e97   :  { %v597_v16 = vrot.slane %v596_v7, 7  ;;  %v602_v39 = vrot.slane %v596_v7, 6  ;;  %v819_v61 = vrot.slane %v596_v7, 5  ;;  %v1034_v57 = vrot.slane %v596_v7, 1 }
0x1e98   :  { %v1038_v24 = vrot.slane %v596_v7, 4  ;;  %v1253_v28 = vrot.slane %v596_v7, 2  ;;  %v1257_v1 = vrot.slane %v596_v7, 3  ;;  %v816_v14 = vsel %vm598_vm1, %v596_v7, %v815_v41 }
0x1e99   :  { %v599_v53 = vsel %vm598_vm1, %v597_v16, %v592_v34  ;;  %v603_v60 = vsel %vm598_vm1, %v602_v39, %v601_v35  ;;  %v820_v42 = vsel %vm598_vm1, %v819_v61, %v818_v47  ;;  %v1035_v63 = vsel %vm598_vm1, %v1034_v57, %v1033_v36 }
0x1e9a   :  { %v605_v43 = vsel %vm162_vm3, %v599_v53, %v603_v60  ;;  %v822_v23 = vsel %vm162_vm3, %v816_v14, %v820_v42  ;;  %v1039_v51 = vsel %vm598_vm1, %v1038_v24, %v1037_v2  ;;  %v1254_v32 = vsel %vm598_vm1, %v1253_v28, %v1252_v21 }
0x1e9b   :  { %v606_v29 = vmul.f32 %v605_v43, %v4425_v50  ;;  %v823_v3 = vmul.f32 %v822_v23, %v4487_v55  ;;  %v1041_v31 = vsel %vm162_vm3, %v1035_v63, %v1039_v51  ;;  %v1258_v30 = vsel %vm598_vm1, %v1257_v1, %v1256_v48 }
0x1e9c   :  { %v1042_v17 = vmul.f32 %v1041_v31, %v4542_v62  ;;  %v1260_v12 = vsel %vm162_vm3, %v1254_v32, %v1258_v30  ;;  %v1467_v27 = vsel %vm162_vm3, %v1258_v30, %v1254_v32  ;;  %v1674_v55 = vsel %vm162_vm3, %v1039_v51, %v1035_v63 }
0x1e9d   :  { %v824_v20 = vadd.f32 %v823_v3, %v606_v29  ;;  %v1261_v50 = vmul.f32 %v1260_v12, %v4597_v5  ;;  %v1468_v22 = vmul.f32 %v1467_v27, %v4651_v13  ;;  %v1881_v33 = vsel %vm162_vm3, %v820_v42, %v816_v14 }
0x1e9e   :  { %v1675_v62 = vmul.f32 %v1674_v55, %v4705_v4  ;;  %v1882_v34 = vmul.f32 %v1881_v33, %v4747_v11  ;;  %v2653_v5 = vsel %vm4469_vm8, %v4976_v59, 0.0  ;;  %v2479_v35 = vmul.f32 %v4949_v40, %v605_v43 }
0x1e9f   :  { %v1043_v18 = vadd.f32 %v1042_v17, %v824_v20  ;;  %v2654_v41 = vmul.f32 %v2653_v5, %v822_v23  ;;  %v2828_v13 = vsel %vm4524_vm9, %v5006_v25, 0.0  ;;  %v3003_v4 = vsel %vm4579_vm10, %v5035_v44, 0.0 }
0x1ea0   :  { %v2829_v7 = vmul.f32 %v2828_v13, %v1041_v31  ;;  %v3004_v11 = vmul.f32 %v3003_v4, %v1260_v12  ;;  %v3121_v59 = vmul.f32 %v3120_v49, %v1467_v27  ;;  %v3237_v21 = vsel %vm4687_vm12, %v5095_v19, 0.0 }
0x1ea1   :  { %v1262_v38 = vadd.f32 %v1261_v50, %v1043_v18  ;;  %v2655_v47 = vadd.f32 %v2654_v41, %v2479_v35  ;;  %v3238_v56 = vmul.f32 %v3237_v21, %v1674_v55  ;;  %v3354_v48 = vsel %vm4734_vm13, %v5125_v26, 0.0 }
0x1ea2   :  { %v3355_v44 = vmul.f32 %v3354_v48, %v1881_v33  ;;  %v2082_v16 = vsel %vm162_vm3, %v603_v60, %v599_v53 }
0x1ea3   :  { %v1469_v15 = vadd.f32 %v1468_v22, %v1262_v38  ;;  %v2830_v36 = vadd.f32 %v2829_v7, %v2655_v47  ;;  %v2083_v10 = vmul.f32 %v2082_v16, %v4785_v52 }
0x1ea5   :  { %v1676_v58 = vadd.f32 %v1675_v62, %v1469_v15  ;;  %v3005_v2 = vadd.f32 %v3004_v11, %v2830_v36 }
0x1ea7   :  { %v1883_v37 = vadd.f32 %v1882_v34, %v1676_v58  ;;  %v3122_v40 = vadd.f32 %v3121_v59, %v3005_v2 }
0x1ea9   :  { %v3239_v25 = vadd.f32 %v3238_v56, %v3122_v40  ;;  %v2084_v9 = vadd.f32 %v2083_v10, %v1883_v37 }
0x1eab   :  { %v3356_v6 = vadd.f32 %v3355_v44, %v3239_v25 }
0x1f07   :  { %v3463_v0 = vpop.permute.xlu1 %3462 }
0x1f08   :  { %v3465_v8 = vsel %vm2047_vm14, %v3463_v0, 0.0 }
0x1f09   :  { %v3466_v39 = vmul.f32 %v3465_v8, %v2082_v16 }
0x1f0b   :  { %v3467_v61 = vadd.f32 %v3466_v39, %v3356_v6 }
0x1f0d   :  { %3469 = vrot.lane.b32.xlu0 %v3467_v61, %s4191_s25 }
0x1f7f   :  { %v3470_v19 = vpop.permute.xlu0 %3469 }
0x1f80   :  { %v3472_v26 = vsel %vm440_vm5, %v2084_v9, %v3470_v19 }
0x1f81   :  { %3473 = vst [vmem:[#allocation13] sm:$0x3] %v3472_v26 }
0x1f82   :  { %4161 = shalt.err (!%p4158_p8)
}
0x1f83   :  { %s4162_s21 = scalar_lea.hbm %s5230_s9, 32 }
0x1f84   :  { %p4163_p9 = scmp.ne.s32.totalorder %s5230_s9, %s4162_s21  ;;  %p4166_p10 = scmp.lt.u32.totalorder %s4162_s21, %s5230_s9 }
0x1f86   :  { %p4168_p11 = pnand %p4166_p10, %p4163_p9 }
0x1f88   :  { %4171 = shalt.err (!%p4168_p11)
}
0x1f89   :  { %3483 = dma.vmem_to_hbm [thread:$0]  %s3481_s12, 32, %s5230_s9, [#allocation7]  }
0x1f8a   :  { %4178 = dma.done.wait [#allocation7], 32  }
0x1f8b   :  { %4179 = vsyncadd [#allocation7], 4294967264 }
0x1f8c   :  { %3487 = vsyncpa [#allocation6], 1 }
0x1f8d   :  { %3488 = vsyncpa [#allocation9], 1 }
0x1f8e   :  { %3489 = vsyncpa [#allocation12], 1 }
0x1f8f   :  { %3490 = vsyncpa [#allocation7], 1 }

</bundles_post_ra>
